<compile_context>
chip_gen: v6e
topology: v6e:2x2x1
jax: 0.10.0
libtpu: 0.0.40
codegen_flags: <defaults>
</compile_context>

<pallas_src>
import functools
import math

import jax
import jax.numpy as jnp
from jax.experimental import pallas as pl
from jax.experimental.pallas import tpu as pltpu


def _round_up(x, m):
    return ((x + m - 1) // m) * m


def _vmem_limit_bytes():
    """~75% of physical VMEM: ~96 MiB on v5e/v6e (128 MiB), ~48 MiB on v7x (64 MiB)."""
    cap = 64 * 1024 * 1024
    try:
        info = pltpu.get_tpu_info()
        cap = int(getattr(info, "vmem_capacity_bytes", cap) or cap)
    except Exception:
        pass
    return max(32 * 1024 * 1024, (cap * 3) // 4)


_VMEM_LIMIT = _vmem_limit_bytes()


def _bf16(a):
    return a if a.dtype == jnp.bfloat16 else a.astype(jnp.bfloat16)


def _pad2(a, rows, cols):
    pr, pc = rows - a.shape[0], cols - a.shape[1]
    if pr or pc:
        a = jnp.pad(a, ((0, pr), (0, pc)))
    return a


# ----------------------------------------------------------------------------
# Pallas kernel 1: generic tiled GEMM  out = x1 @ w1 [+ x2 @ w2] + b
# bf16 operands, f32 accumulation in VMEM scratch.  Used for:
#   - hoisted LSTM input projections (incl. fused cat(x, attn) via split weights)
#   - attention q/k projections
#   - the vocab classifier
# ----------------------------------------------------------------------------
def _gemm_kernel(x_ref, w_ref, b_ref, o_ref, acc_ref):
    @pl.when(pl.program_id(2) == 0)
    def _():
        acc_ref[...] = jnp.zeros_like(acc_ref)

    acc_ref[...] += jnp.dot(x_ref[...], w_ref[...],
                            preferred_element_type=jnp.float32)

    @pl.when(pl.program_id(2) == pl.num_programs(2) - 1)
    def _():
        o_ref[...] = (acc_ref[...] + b_ref[...]).astype(o_ref.dtype)


def _gemm2_kernel(x1_ref, w1_ref, x2_ref, w2_ref, b_ref, o_ref, acc_ref):
    @pl.when(pl.program_id(2) == 0)
    def _():
        acc_ref[...] = jnp.zeros_like(acc_ref)

    acc_ref[...] += jnp.dot(x1_ref[...], w1_ref[...],
                            preferred_element_type=jnp.float32)
    acc_ref[...] += jnp.dot(x2_ref[...], w2_ref[...],
                            preferred_element_type=jnp.float32)

    @pl.when(pl.program_id(2) == pl.num_programs(2) - 1)
    def _():
        o_ref[...] = (acc_ref[...] + b_ref[...]).astype(o_ref.dtype)


def matmul_bias(x, w, b, x2=None, w2=None, *, tm_t=512, tn_t=1024, tk_t=512,
                out_dtype=jnp.float32):
    """out = x:(M,K) @ w:(K,N) [+ x2 @ w2] + b:(N,).

    Dimensions that are not multiples of the chosen tile are padded with zeros
    and the result is sliced back — never fall back to a full-dim block (a full
    GNMT-vocab output block would exceed the VMEM budget)."""
    M, K = x.shape
    N = w.shape[1]
    assert w.shape[0] == K
    if x2 is not None:
        assert x2.shape == (M, K) and w2.shape == (K, N)

    tm = min(_round_up(M, 8), tm_t)
    tn = min(_round_up(N, 128), tn_t)
    tk = min(_round_up(K, 128), tk_t)
    Mp, Kp, Np = _round_up(M, tm), _round_up(K, tk), _round_up(N, tn)

    xw_pairs = [(_pad2(_bf16(x), Mp, Kp), _pad2(_bf16(w), Kp, Np))]
    if x2 is not None:
        xw_pairs.append((_pad2(_bf16(x2), Mp, Kp), _pad2(_bf16(w2), Kp, Np)))
    bp = _pad2(b.reshape(1, N).astype(jnp.float32), 1, Np)

    in_specs, args = [], []
    for xa, wa in xw_pairs:
        in_specs += [pl.BlockSpec((tm, tk), lambda i, j, k: (i, k)),
                     pl.BlockSpec((tk, tn), lambda i, j, k: (k, j))]
        args += [xa, wa]
    in_specs.append(pl.BlockSpec((1, tn), lambda i, j, k: (0, j)))
    args.append(bp)
    kernel = _gemm_kernel if x2 is None else _gemm2_kernel

    out = pl.pallas_call(
        kernel,
        grid_spec=pltpu.PrefetchScalarGridSpec(
            num_scalar_prefetch=0,
            grid=(Mp // tm, Np // tn, Kp // tk),
            in_specs=in_specs,
            out_specs=pl.BlockSpec((tm, tn), lambda i, j, k: (i, j)),
            scratch_shapes=[pltpu.VMEM((tm, tn), jnp.float32)]),
        out_shape=jax.ShapeDtypeStruct((Mp, Np), out_dtype),
        compiler_params=pltpu.CompilerParams(
            dimension_semantics=("parallel", "parallel", "arbitrary"),
            vmem_limit_bytes=_VMEM_LIMIT),
    )(*args)
    return out[:M, :N]


# ----------------------------------------------------------------------------
# Pallas kernel 2: LSTM recurrence with precomputed (hoisted) input gates.
# Grid = (batch_tiles [parallel], time_blocks [arbitrary]); h/c carried as
# values across the unrolled per-block time loop and flushed to VMEM scratch
# once per grid step; optional fused residual add on the output.
# ----------------------------------------------------------------------------
def _lstm_cell_step(gx, h, c, whh):
    H = c.shape[-1]
    gates = gx.astype(jnp.float32) + jnp.dot(
        h.astype(jnp.bfloat16), whh, preferred_element_type=jnp.float32)
    # PyTorch gate order: input, forget, cell(g), output
    i = jax.nn.sigmoid(gates[:, 0 * H:1 * H])
    f = jax.nn.sigmoid(gates[:, 1 * H:2 * H])
    g = jnp.tanh(gates[:, 2 * H:3 * H])
    o = jax.nn.sigmoid(gates[:, 3 * H:4 * H])
    c_new = f * c + i * g
    h_new = o * jnp.tanh(c_new)
    return h_new, c_new


def _lstm_rec_kernel(gx_ref, whh_ref, hout_ref, h_scr, c_scr, *, tt):
    @pl.when(pl.program_id(1) == 0)
    def _():
        h_scr[...] = jnp.zeros_like(h_scr)
        c_scr[...] = jnp.zeros_like(c_scr)

    whh = whh_ref[...]
    h, c = h_scr[...], c_scr[...]               # read carry once per grid step
    for s in range(tt):                         # unrolled; h/c carried as values
        h, c = _lstm_cell_step(gx_ref[s], h, c, whh)
        hout_ref[s] = h.astype(hout_ref.dtype)
    h_scr[...] = h                              # write carry once per grid step
    c_scr[...] = c


def _lstm_rec_res_kernel(gx_ref, res_ref, whh_ref, hout_ref, h_scr, c_scr, *, tt):
    @pl.when(pl.program_id(1) == 0)
    def _():
        h_scr[...] = jnp.zeros_like(h_scr)
        c_scr[...] = jnp.zeros_like(c_scr)

    whh = whh_ref[...]
    h, c = h_scr[...], c_scr[...]
    for s in range(tt):
        h, c = _lstm_cell_step(gx_ref[s], h, c, whh)
        hout_ref[s] = (h + res_ref[s]).astype(hout_ref.dtype)   # fused residual
    h_scr[...] = h
    c_scr[...] = c


def lstm_seq(x, lp, *, x2=None, residual=None):
    """Single-layer LSTM over a full sequence, zero initial state.

    x:(T,B,In).  Optional x2 (paired with lp['w_ih_a'] / lp['w_ih_b']) emulates
    LSTM over cat(x, x2) without materializing the concat.  Optional residual
    (T,B,H) is added to the hidden output inside the kernel.  Returns (T,B,H)
    bf16."""
    T, B, _ = x.shape
    H = lp['w_hh'].shape[0]

    # (1) hoisted input projection: one big MXU GEMM over all timesteps (bf16 out)
    if x2 is None:
        gx = matmul_bias(x.reshape(T * B, -1), lp['w_ih'], lp['b'],
                         out_dtype=jnp.bfloat16)
    else:
        gx = matmul_bias(x.reshape(T * B, -1), lp['w_ih_a'], lp['b'],
                         x2=x2.reshape(T * B, -1), w2=lp['w_ih_b'],
                         out_dtype=jnp.bfloat16)
    gx = gx.reshape(T, B, 4 * H)

    # (2) sequential recurrence: only h @ w_hh + gate math per step.
    # Batch split only when each half still fills the MXU's M dimension
    # (>=256 rows); single-TC chips gain nothing from a split.
    bt = B // 2 if (B >= 512 and (B // 2) % 8 == 0) else B
    nb = B // bt
    # Timesteps per grid step, capped so the double-buffered bf16 gx stream
    # stays within ~8 MiB per buffer.
    tt = 8
    while tt > 1 and tt * bt * 4 * H * 2 > 8 * 1024 * 1024:
        tt //= 2
    tt = min(T, tt)
    Tp = _round_up(T, tt)
    if Tp != T:
        gx = jnp.pad(gx, ((0, Tp - T), (0, 0), (0, 0)))
        if residual is not None:
            residual = jnp.pad(residual, ((0, Tp - T), (0, 0), (0, 0)))
    nt = Tp // tt

    whh = _bf16(lp['w_hh'])
    if residual is None:
        kernel = functools.partial(_lstm_rec_kernel, tt=tt)
        in_specs = [pl.BlockSpec((tt, bt, 4 * H), lambda bi, ti: (ti, bi, 0)),
                    pl.BlockSpec((H, 4 * H), lambda bi, ti: (0, 0))]
        args = [gx, whh]
    else:
        kernel = functools.partial(_lstm_rec_res_kernel, tt=tt)
        in_specs = [pl.BlockSpec((tt, bt, 4 * H), lambda bi, ti: (ti, bi, 0)),
                    pl.BlockSpec((tt, bt, H), lambda bi, ti: (ti, bi, 0)),
                    pl.BlockSpec((H, 4 * H), lambda bi, ti: (0, 0))]
        args = [gx, _bf16(residual), whh]

    out = pl.pallas_call(
        kernel,
        grid_spec=pltpu.PrefetchScalarGridSpec(
            num_scalar_prefetch=0,
            grid=(nb, nt),
            in_specs=in_specs,
            out_specs=pl.BlockSpec((tt, bt, H), lambda bi, ti: (ti, bi, 0)),
            scratch_shapes=[pltpu.VMEM((bt, H), jnp.float32),
                            pltpu.VMEM((bt, H), jnp.float32)]),
        out_shape=jax.ShapeDtypeStruct((Tp, B, H), jnp.bfloat16),
        compiler_params=pltpu.CompilerParams(
            dimension_semantics=("parallel", "arbitrary"),
            vmem_limit_bytes=_VMEM_LIMIT),
    )(*args)
    return out[:T]


# ----------------------------------------------------------------------------
# Pallas kernel 3: normalized Bahdanau attention (GNMT) with precomputed
# projections, tiled over query AND key axes with an online softmax.
#   score = v_norm . tanh(Wq q + bias + Wk k);  padded keys get -1e30;
#   softmax over keys; context = probs @ keys.
# ----------------------------------------------------------------------------
def _attn_kernel(pq_ref, pk_ref, k_ref, av_ref, mask_ref, ctx_ref,
                 m_scr, l_scr, acc_scr):
    kv = pl.program_id(2)

    @pl.when(kv == 0)
    def _():
        m_scr[...] = jnp.full_like(m_scr, -jnp.inf)
        l_scr[...] = jnp.zeros_like(l_scr)
        acc_scr[...] = jnp.zeros_like(acc_scr)

    pq = pq_ref[0]                                        # (tq, H)  = q@Wq + bias
    pk = pk_ref[0]                                        # (tkv, H) = k@Wk
    keys = k_ref[0]                                       # (tkv, H) bf16
    th = jnp.tanh(pq[:, None, :] + pk[None, :, :])        # (tq, tkv, H)
    scores = jnp.sum(th * av_ref[...][None, :, :], axis=-1)   # (tq, tkv)

    m = mask_ref[0]                                       # (1, tkv); 1.0 at padded keys
    scores = jnp.where(m > 0.5, jnp.float32(-1e30), scores)

    # online softmax (flash-style) over key tiles
    m_new = jnp.maximum(m_scr[...], jnp.max(scores, axis=-1, keepdims=True))
    alpha = jnp.exp(m_scr[...] - m_new)
    p = jnp.exp(scores - m_new)
    l_scr[...] = alpha * l_scr[...] + jnp.sum(p, axis=-1, keepdims=True)
    acc_scr[...] = alpha * acc_scr[...] + jnp.dot(
        p.astype(jnp.bfloat16), keys, preferred_element_type=jnp.float32)
    m_scr[...] = m_new

    @pl.when(kv == pl.num_programs(2) - 1)
    def _():
        denom = jnp.maximum(l_scr[...], jnp.float32(1e-30))   # guard fully-masked rows
        ctx_ref[0] = (acc_scr[...] / denom).astype(ctx_ref.dtype)


def bahdanau_attention(query_tbh, keys_tbh, src_len, wq, wk, att_v, att_bias,
                       att_scalar):
    q = jnp.transpose(query_tbh, (1, 0, 2))    # (B, Tq, H)
    k = jnp.transpose(keys_tbh, (1, 0, 2))     # (B, Tk, H)
    B, Tq, H = q.shape
    Tk = k.shape[1]

    # Query axis tiled (<=16 rows) so the (tq, tkv, H) tanh temporary stays at a
    # few MiB; key axis tiled at 128, padded keys masked.
    tq = min(_round_up(Tq, 8), 16)
    Tqp = _round_up(Tq, tq)
    tkv = Tk if Tk <= 128 else 128
    Tkp = _round_up(Tk, tkv)
    if Tqp != Tq:
        q = jnp.pad(q, ((0, 0), (0, Tqp - Tq), (0, 0)))
    if Tkp != Tk:
        k = jnp.pad(k, ((0, 0), (0, Tkp - Tk), (0, 0)))

    # hoisted projections as big GEMMs; normalize_bias folded into pq's bias
    pq = matmul_bias(q.reshape(B * Tqp, H), wq, att_bias).reshape(B, Tqp, H)
    pk = matmul_bias(k.reshape(B * Tkp, H), wk,
                     jnp.zeros((H,), jnp.float32)).reshape(B, Tkp, H)

    av = (att_v / jnp.linalg.norm(att_v) * att_scalar).reshape(1, H)
    av = av.astype(jnp.float32)
    mask = (jnp.arange(Tkp)[None, :] >= src_len[:, None]
            ).astype(jnp.float32)[:, None, :]              # (B, 1, Tkp)
    kb = _bf16(k)

    ctx = pl.pallas_call(
        _attn_kernel,
        grid_spec=pltpu.PrefetchScalarGridSpec(
            num_scalar_prefetch=0,
            grid=(B, Tqp // tq, Tkp // tkv),
            in_specs=[
                pl.BlockSpec((1, tq, H), lambda b, qi, kv: (b, qi, 0)),
                pl.BlockSpec((1, tkv, H), lambda b, qi, kv: (b, kv, 0)),
                pl.BlockSpec((1, tkv, H), lambda b, qi, kv: (b, kv, 0)),
                pl.BlockSpec((1, H), lambda b, qi, kv: (0, 0)),
                pl.BlockSpec((1, 1, tkv), lambda b, qi, kv: (b, 0, kv)),
            ],
            out_specs=pl.BlockSpec((1, tq, H), lambda b, qi, kv: (b, qi, 0)),
            scratch_shapes=[pltpu.VMEM((tq, 1), jnp.float32),
                            pltpu.VMEM((tq, 1), jnp.float32),
                            pltpu.VMEM((tq, H), jnp.float32)]),
        out_shape=jax.ShapeDtypeStruct((B, Tqp, H), jnp.bfloat16),
        compiler_params=pltpu.CompilerParams(
            dimension_semantics=("parallel", "parallel", "arbitrary"),
            vmem_limit_bytes=_VMEM_LIMIT),
    )(pq, pk, kb, av, mask)
    return jnp.transpose(ctx[:, :Tq], (1, 0, 2))           # (Tq, B, H)


# ----------------------------------------------------------------------------
# Glue: pack_padded_sequence / pad_packed_sequence emulation for the bidir layer.
# ----------------------------------------------------------------------------
def reverse_by_length(x, lengths):
    """Reverse the first lengths[b] timesteps of each sequence; pads stay put."""
    T = x.shape[0]
    t_idx = jnp.arange(T)[:, None]
    lens = lengths[None, :]
    rev = jnp.where(t_idx < lens, lens - 1 - t_idx, t_idx)     # (T, B)
    return jnp.take_along_axis(x, rev[:, :, None], axis=0)


# ----------------------------------------------------------------------------
# Parameters (deterministic synthetic init, GNMT-style uniform(-0.1, 0.1)).
# ----------------------------------------------------------------------------
def init_params(key, vocab, hidden):
    H, V = hidden, vocab
    init_w = 0.1
    keys = iter(jax.random.split(key, 100))

    def u(shape):
        return jax.random.uniform(next(keys), shape, jnp.float32, -init_w, init_w)

    def lstm_p(in_dim):
        return dict(w_ih=u((in_dim, 4 * H)), w_hh=u((H, 4 * H)),
                    b=u((4 * H,)) + u((4 * H,)))        # b_ih + b_hh

    p = {}
    p['enc_emb'] = u((V, H)).at[0].set(0.0)             # padding_idx=0
    p['dec_emb'] = u((V, H)).at[0].set(0.0)
    p['enc0_f'] = lstm_p(H)                             # bidirectional layer, fwd dir
    p['enc0_b'] = lstm_p(H)                             # bidirectional layer, bwd dir
    p['enc1'] = lstm_p(2 * H)
    p['enc_rest'] = [lstm_p(H) for _ in range(6)]       # encoder layers 2..7 (residual)
    p['dec0'] = lstm_p(H)                               # att_rnn.rnn
    p['wq'] = u((H, H))                                 # attention linear_q (no bias)
    p['wk'] = u((H, H))                                 # attention linear_k (no bias)
    p['att_v'] = u((H,))                                # linear_att
    p['att_bias'] = jnp.zeros((H,), jnp.float32)        # normalize_bias
    p['att_scalar'] = jnp.float32(1.0 / math.sqrt(H))   # normalize_scalar
    p['dec_rest'] = [lstm_p(2 * H) for _ in range(7)]   # decoder layers 1..7
    p['cls_w'] = u((H, V))
    p['cls_b'] = u((V,))
    return p


def prepare_params(p):
    """One-time runtime prep: cast all matmul weights / embeddings to bf16
    (biases stay f32) and pre-split the cat(x, attn) / cat(fwd, bwd) input
    weights so no per-call casts or slices re-stream weights through HBM."""
    H = p['wq'].shape[0]

    def lstm_rt(lp, split):
        d = dict(w_hh=_bf16(lp['w_hh']), b=lp['b'])
        if split:
            d['w_ih_a'] = _bf16(lp['w_ih'][:H])
            d['w_ih_b'] = _bf16(lp['w_ih'][H:])
        else:
            d['w_ih'] = _bf16(lp['w_ih'])
        return d

    return dict(
        enc_emb=_bf16(p['enc_emb']), dec_emb=_bf16(p['dec_emb']),
        enc0_f=lstm_rt(p['enc0_f'], False), enc0_b=lstm_rt(p['enc0_b'], False),
        enc1=lstm_rt(p['enc1'], True),
        enc_rest=[lstm_rt(lp, False) for lp in p['enc_rest']],
        dec0=lstm_rt(p['dec0'], False),
        wq=_bf16(p['wq']), wk=_bf16(p['wk']),
        att_v=p['att_v'], att_bias=p['att_bias'], att_scalar=p['att_scalar'],
        dec_rest=[lstm_rt(lp, True) for lp in p['dec_rest']],
        cls_w=_bf16(p['cls_w']), cls_b=p['cls_b'])


# ----------------------------------------------------------------------------
# GNMT16Partitioned.forward(input0, input1, input2)
#   input0: encoder token ids (Ts, B) int32
#   input1: source lengths    (B,)    int32
#   input2: decoder token ids (Tt, B) int32
# returns out24: logits (Tt, B, vocab) float32
# ----------------------------------------------------------------------------
def gnmt16_forward(params, input0, input1, input2):
    p = params
    Ts, B = input0.shape
    H = p['wq'].shape[0]

    # ---- Stage0: encoder embedding + bidirectional LSTM (packed) + dropout ----
    x = p['enc_emb'][input0]                                             # (Ts,B,H) bf16
    valid = (jnp.arange(Ts)[:, None] < input1[None, :]
             ).astype(jnp.bfloat16)[:, :, None]
    fwd = lstm_seq(x, p['enc0_f']) * valid              # pad_packed -> zeros at pads
    bwd = reverse_by_length(
        lstm_seq(reverse_by_length(x, input1), p['enc0_b']), input1) * valid
    # Dropout(p=0.2): identity in eval.

    # ---- Stage1: encoder LSTM(2H->H) on cat(fwd,bwd) (concat fused into gate GEMM) ----
    h = lstm_seq(fwd, p['enc1'], x2=bwd)
    h = lstm_seq(h, p['enc_rest'][0], residual=h)                        # residual fused

    # ---- Stage2: remaining encoder residual LSTMs; decoder embed + att_rnn + attention ----
    for lp in p['enc_rest'][1:]:
        h = lstm_seq(h, lp, residual=h)
    context = h                                                          # (Ts,B,H)

    y = p['dec_emb'][input2]                                             # (Tt,B,H)
    r = lstm_seq(y, p['dec0'])                                           # att_rnn LSTM
    attn = bahdanau_attention(r, context, input1, p['wq'], p['wk'],
                              p['att_v'], p['att_bias'], p['att_scalar'])  # (Tt,B,H)

    # ---- Stages 3..6: decoder LSTMs on cat(x, attn) (concat + residual fused) ----
    xdec = lstm_seq(r, p['dec_rest'][0], x2=attn)
    for lp in p['dec_rest'][1:]:
        xdec = lstm_seq(xdec, lp, x2=attn, residual=xdec)

    # ---- Stage7: classifier (tiled GEMM over M and vocab) ----
    Tt = input2.shape[0]
    logits = matmul_bias(xdec.reshape(Tt * B, H), p['cls_w'], p['cls_b'])
    return logits.reshape(Tt, B, -1)


if __name__ == "__main__":
    V, H, B, Ts, Tt = 64, 32, 2, 8, 6
    key = jax.random.PRNGKey(0)
    kp, k0, k2 = jax.random.split(key, 3)
    params = prepare_params(init_params(kp, V, H))

    src_len = jnp.array([Ts, 5], dtype=jnp.int32)                        # sorted descending
    src = jax.random.randint(k0, (Ts, B), 1, V, dtype=jnp.int32)
    src = jnp.where(jnp.arange(Ts)[:, None] < src_len[None, :], src, 0)  # pad token = 0
    tgt = jax.random.randint(k2, (Tt, B), 1, V, dtype=jnp.int32)

    out = jax.jit(gnmt16_forward)(params, src, src_len, tgt)
    out = jax.block_until_ready(out)
    assert out.shape == (Tt, B, V), out.shape
    assert bool(jnp.all(jnp.isfinite(out)))
    print("KERNEL_OK")
</pallas_src>

<mosaic_0001>
module attributes {stable_mosaic.version = 11 : i64} {
  func.func @_gemm_kernel(%arg0: i32, %arg1: i32, %arg2: i32, %arg3: memref<16x128xbf16, #tpu.memory_space<vmem>>, %arg4: memref<128x128xbf16, #tpu.memory_space<vmem>>, %arg5: memref<1x128xf32, #tpu.memory_space<vmem>>, %arg6: memref<16x128xbf16, #tpu.memory_space<vmem>>, %arg7: memref<16x128xf32, #tpu.memory_space<vmem>>) attributes {dimension_semantics = [#tpu.dimension_semantics<parallel>, #tpu.dimension_semantics<parallel>, #tpu.dimension_semantics<arbitrary>], iteration_bounds = array<i64: 1, 1, 1>, scalar_prefetch = 0 : i64, scratch_operands = 1 : i64, tpu.core_type = #tpu.core_type<tc>, window_params = [{transform_indices = @transform_0, window_bounds = array<i64: 16, 128>}, {transform_indices = @transform_1, window_bounds = array<i64: 128, 128>}, {transform_indices = @transform_2, window_bounds = array<i64: 1, 128>}, {transform_indices = @transform_3, window_bounds = array<i64: 16, 128>}]} {
    %c0_i32 = arith.constant 0 : i32
    %0 = arith.cmpi eq, %arg2, %c0_i32 : i32
    %1 = arith.extui %0 : i1 to i32
    %c0_i32_0 = arith.constant 0 : i32
    %2 = arith.cmpi ne, %1, %c0_i32_0 : i32
    scf.if %2 {
      %cst_10 = arith.constant 0.000000e+00 : f32
      %12 = vector.broadcast %cst_10 : f32 to vector<16x128xf32>
      %c0_11 = arith.constant 0 : index
      %c0_12 = arith.constant 0 : index
      %13 = vector.load %arg7[%c0_11, %c0_12] : memref<16x128xf32, #tpu.memory_space<vmem>>, vector<16x128xf32>
      tpu.vector_store %arg7[%c0_11, %c0_12], %12 {strides = array<i32>} : memref<16x128xf32, #tpu.memory_space<vmem>>, vector<16x128xf32>,
    } else {
    }
    %c0 = arith.constant 0 : index
    %c0_1 = arith.constant 0 : index
    %3 = vector.load %arg7[%c0, %c0_1] : memref<16x128xf32, #tpu.memory_space<vmem>>, vector<16x128xf32>
    %c0_2 = arith.constant 0 : index
    %c0_3 = arith.constant 0 : index
    %4 = vector.load %arg3[%c0_2, %c0_3] : memref<16x128xbf16, #tpu.memory_space<vmem>>, vector<16x128xbf16>
    %c0_4 = arith.constant 0 : index
    %c0_5 = arith.constant 0 : index
    %5 = vector.load %arg4[%c0_4, %c0_5] : memref<128x128xbf16, #tpu.memory_space<vmem>>, vector<128x128xbf16>
    %cst = arith.constant dense<0.000000e+00> : vector<16x128xf32>
    %6 = tpu.matmul %4, %5, %cst {dimension_numbers = #tpu.dot_dimension_numbers<[1], [0], [0], [1], [0, 0, 1, 1], [], []>} : vector<16x128xbf16>, vector<128x128xbf16>, vector<16x128xf32> -> vector<16x128xf32>
    %7 = arith.addf %3, %6 : vector<16x128xf32>
    %c0_6 = arith.constant 0 : index
    %c0_7 = arith.constant 0 : index
    %8 = vector.load %arg7[%c0_6, %c0_7] : memref<16x128xf32, #tpu.memory_space<vmem>>, vector<16x128xf32>
    tpu.vector_store %arg7[%c0_6, %c0_7], %7 {strides = array<i32>} : memref<16x128xf32, #tpu.memory_space<vmem>>, vector<16x128xf32>,
    %c0_i32_8 = arith.constant 0 : i32
    %9 = arith.cmpi eq, %arg2, %c0_i32_8 : i32
    %10 = arith.extui %9 : i1 to i32
    %c0_i32_9 = arith.constant 0 : i32
    %11 = arith.cmpi ne, %10, %c0_i32_9 : i32
    scf.if %11 {
      %c0_10 = arith.constant 0 : index
      %c0_11 = arith.constant 0 : index
      %12 = vector.load %arg7[%c0_10, %c0_11] : memref<16x128xf32, #tpu.memory_space<vmem>>, vector<16x128xf32>
      %c0_12 = arith.constant 0 : index
      %c0_13 = arith.constant 0 : index
      %13 = vector.load %arg5[%c0_12, %c0_13] : memref<1x128xf32, #tpu.memory_space<vmem>>, vector<1x128xf32>
      %14 = vector.broadcast %13 : vector<1x128xf32> to vector<16x128xf32>
      %15 = arith.addf %12, %14 : vector<16x128xf32>
      %16 = arith.truncf %15 : vector<16x128xf32> to vector<16x128xbf16>
      %c0_14 = arith.constant 0 : index
      %c0_15 = arith.constant 0 : index
      %17 = vector.load %arg6[%c0_14, %c0_15] : memref<16x128xbf16, #tpu.memory_space<vmem>>, vector<16x128xbf16>
      tpu.vector_store %arg6[%c0_14, %c0_15], %16 {strides = array<i32>} : memref<16x128xbf16, #tpu.memory_space<vmem>>, vector<16x128xbf16>,
    } else {
    }
    return
  }
  func.func @transform_0(%arg0: i32, %arg1: i32, %arg2: i32) -> (i32, i32) {
    %c0_i32 = arith.constant 0 : i32
    return %arg0, %arg2 : i32, i32
  }
  func.func @transform_1(%arg0: i32, %arg1: i32, %arg2: i32) -> (i32, i32) {
    %c0_i32 = arith.constant 0 : i32
    return %arg2, %arg1 : i32, i32
  }
  func.func @transform_2(%arg0: i32, %arg1: i32, %arg2: i32) -> (i32, i32) {
    %c0_i32 = arith.constant 0 : i32
    %c0_i32_0 = arith.constant 0 : i32
    return %c0_i32, %arg1 : i32, i32
  }
  func.func @transform_3(%arg0: i32, %arg1: i32, %arg2: i32) -> (i32, i32) {
    %c0_i32 = arith.constant 0 : i32
    return %arg0, %arg1 : i32, i32
  }
}

module attributes {stable_mosaic.version = 11 : i64} {
  func.func @_lstm_rec_kernel(%arg0: i32, %arg1: i32, %arg2: memref<8x2x128xbf16, #tpu.memory_space<vmem>>, %arg3: memref<32x128xbf16, #tpu.memory_space<vmem>>, %arg4: memref<8x2x32xbf16, #tpu.memory_space<vmem>>, %arg5: memref<2x32xf32, #tpu.memory_space<vmem>>, %arg6: memref<2x32xf32, #tpu.memory_space<vmem>>) attributes {dimension_semantics = [#tpu.dimension_semantics<parallel>, #tpu.dimension_semantics<arbitrary>], iteration_bounds = array<i64: 1, 1>, scalar_prefetch = 0 : i64, scratch_operands = 2 : i64, tpu.core_type = #tpu.core_type<tc>, window_params = [{transform_indices = @transform_0, window_bounds = array<i64: 8, 2, 128>}, {pipeline_mode = #tpu.pipeline_mode<synchronous>, transform_indices = @transform_1, window_bounds = array<i64: 32, 128>}, {transform_indices = @transform_2, window_bounds = array<i64: 8, 2, 32>}]} {
    %c0_i32 = arith.constant 0 : i32
    %0 = arith.cmpi eq, %arg1, %c0_i32 : i32
    %1 = arith.extui %0 : i1 to i32
    %c0_i32_0 = arith.constant 0 : i32
    %2 = arith.cmpi ne, %1, %c0_i32_0 : i32
    scf.if %2 {
      %cst_82 = arith.constant 0.000000e+00 : f32
      %288 = vector.broadcast %cst_82 : f32 to vector<2x32xf32>
      %c0_83 = arith.constant 0 : index
      %c0_84 = arith.constant 0 : index
      %289 = vector.load %arg5[%c0_83, %c0_84] : memref<2x32xf32, #tpu.memory_space<vmem>>, vector<2x32xf32>
      tpu.vector_store %arg5[%c0_83, %c0_84], %288 {strides = array<i32>} : memref<2x32xf32, #tpu.memory_space<vmem>>, vector<2x32xf32>,
      %cst_85 = arith.constant 0.000000e+00 : f32
      %290 = vector.broadcast %cst_85 : f32 to vector<2x32xf32>
      %c0_86 = arith.constant 0 : index
      %c0_87 = arith.constant 0 : index
      %291 = vector.load %arg6[%c0_86, %c0_87] : memref<2x32xf32, #tpu.memory_space<vmem>>, vector<2x32xf32>
      tpu.vector_store %arg6[%c0_86, %c0_87], %290 {strides = array<i32>} : memref<2x32xf32, #tpu.memory_space<vmem>>, vector<2x32xf32>,
    } else {
    }
    %c0 = arith.constant 0 : index
    %c0_1 = arith.constant 0 : index
    %3 = vector.load %arg3[%c0, %c0_1] : memref<32x128xbf16, #tpu.memory_space<vmem>>, vector<32x128xbf16>
    %c0_2 = arith.constant 0 : index
    %c0_3 = arith.constant 0 : index
    %4 = vector.load %arg5[%c0_2, %c0_3] : memref<2x32xf32, #tpu.memory_space<vmem>>, vector<2x32xf32>
    %c0_4 = arith.constant 0 : index
    %c0_5 = arith.constant 0 : index
    %5 = vector.load %arg6[%c0_4, %c0_5] : memref<2x32xf32, #tpu.memory_space<vmem>>, vector<2x32xf32>
    %c0_6 = arith.constant 0 : index
    %c0_7 = arith.constant 0 : index
    %c0_8 = arith.constant 0 : index
    %6 = vector.load %arg2[%c0_6, %c0_7, %c0_8] : memref<8x2x128xbf16, #tpu.memory_space<vmem>>, vector<1x2x128xbf16>
    %7 = vector.shape_cast %6 : vector<1x2x128xbf16> to vector<2x128xbf16>
    %8 = arith.extf %7 : vector<2x128xbf16> to vector<2x128xf32>
    %9 = arith.truncf %4 : vector<2x32xf32> to vector<2x32xbf16>
    %cst = arith.constant dense<0.000000e+00> : vector<2x128xf32>
    %10 = tpu.matmul %9, %3, %cst {dimension_numbers = #tpu.dot_dimension_numbers<[1], [0], [0], [1], [0, 0, 1, 1], [], []>} : vector<2x32xbf16>, vector<32x128xbf16>, vector<2x128xf32> -> vector<2x128xf32>
    %11 = arith.addf %8, %10 : vector<2x128xf32>
    %12 = vector.extract_strided_slice %11 {offsets = [0, 0], sizes = [2, 32], strides = [1, 1]} : vector<2x128xf32> to vector<2x32xf32>
    %13 = arith.negf %12 : vector<2x32xf32>
    %14 = math.exp %13 : vector<2x32xf32>
    %cst_9 = arith.constant 1.000000e+00 : f32
    %15 = vector.broadcast %cst_9 : f32 to vector<2x32xf32>
    %16 = arith.addf %15, %14 : vector<2x32xf32>
    %17 = arith.divf %15, %16 : vector<2x32xf32>
    %18 = vector.extract_strided_slice %11 {offsets = [0, 32], sizes = [2, 32], strides = [1, 1]} : vector<2x128xf32> to vector<2x32xf32>
    %19 = arith.negf %18 : vector<2x32xf32>
    %20 = math.exp %19 : vector<2x32xf32>
    %cst_10 = arith.constant 1.000000e+00 : f32
    %21 = vector.broadcast %cst_10 : f32 to vector<2x32xf32>
    %22 = arith.addf %21, %20 : vector<2x32xf32>
    %23 = arith.divf %21, %22 : vector<2x32xf32>
    %24 = vector.extract_strided_slice %11 {offsets = [0, 64], sizes = [2, 32], strides = [1, 1]} : vector<2x128xf32> to vector<2x32xf32>
    %25 = math.tanh %24 : vector<2x32xf32>
    %26 = vector.extract_strided_slice %11 {offsets = [0, 96], sizes = [2, 32], strides = [1, 1]} : vector<2x128xf32> to vector<2x32xf32>
    %27 = arith.negf %26 : vector<2x32xf32>
    %28 = math.exp %27 : vector<2x32xf32>
    %cst_11 = arith.constant 1.000000e+00 : f32
    %29 = vector.broadcast %cst_11 : f32 to vector<2x32xf32>
    %30 = arith.addf %29, %28 : vector<2x32xf32>
    %31 = arith.divf %29, %30 : vector<2x32xf32>
    %32 = arith.mulf %23, %5 : vector<2x32xf32>
    %33 = arith.mulf %17, %25 : vector<2x32xf32>
    %34 = arith.addf %32, %33 : vector<2x32xf32>
    %35 = math.tanh %34 : vector<2x32xf32>
    %36 = arith.mulf %31, %35 : vector<2x32xf32>
    %37 = arith.truncf %36 : vector<2x32xf32> to vector<2x32xbf16>
    %c0_12 = arith.constant 0 : index
    %c0_13 = arith.constant 0 : index
    %c0_14 = arith.constant 0 : index
    %38 = vector.load %arg4[%c0_12, %c0_13, %c0_14] : memref<8x2x32xbf16, #tpu.memory_space<vmem>>, vector<1x2x32xbf16>
    %39 = vector.shape_cast %38 : vector<1x2x32xbf16> to vector<2x32xbf16>
    %40 = vector.shape_cast %37 : vector<2x32xbf16> to vector<1x2x32xbf16>
    tpu.vector_store %arg4[%c0_12, %c0_13, %c0_14], %40 {strides = array<i32>} : memref<8x2x32xbf16, #tpu.memory_space<vmem>>, vector<1x2x32xbf16>,
    %c1 = arith.constant 1 : index
    %c0_15 = arith.constant 0 : index
    %c0_16 = arith.constant 0 : index
    %41 = vector.load %arg2[%c1, %c0_15, %c0_16] : memref<8x2x128xbf16, #tpu.memory_space<vmem>>, vector<1x2x128xbf16>
    %42 = vector.shape_cast %41 : vector<1x2x128xbf16> to vector<2x128xbf16>
    %43 = arith.extf %42 : vector<2x128xbf16> to vector<2x128xf32>
    %44 = arith.truncf %36 : vector<2x32xf32> to vector<2x32xbf16>
    %cst_17 = arith.constant dense<0.000000e+00> : vector<2x128xf32>
    %45 = tpu.matmul %44, %3, %cst_17 {dimension_numbers = #tpu.dot_dimension_numbers<[1], [0], [0], [1], [0, 0, 1, 1], [], []>} : vector<2x32xbf16>, vector<32x128xbf16>, vector<2x128xf32> -> vector<2x128xf32>
    %46 = arith.addf %43, %45 : vector<2x128xf32>
    %47 = vector.extract_strided_slice %46 {offsets = [0, 0], sizes = [2, 32], strides = [1, 1]} : vector<2x128xf32> to vector<2x32xf32>
    %48 = arith.negf %47 : vector<2x32xf32>
    %49 = math.exp %48 : vector<2x32xf32>
    %cst_18 = arith.constant 1.000000e+00 : f32
    %50 = vector.broadcast %cst_18 : f32 to vector<2x32xf32>
    %51 = arith.addf %50, %49 : vector<2x32xf32>
    %52 = arith.divf %50, %51 : vector<2x32xf32>
    %53 = vector.extract_strided_slice %46 {offsets = [0, 32], sizes = [2, 32], strides = [1, 1]} : vector<2x128xf32> to vector<2x32xf32>
    %54 = arith.negf %53 : vector<2x32xf32>
    %55 = math.exp %54 : vector<2x32xf32>
    %cst_19 = arith.constant 1.000000e+00 : f32
    %56 = vector.broadcast %cst_19 : f32 to vector<2x32xf32>
    %57 = arith.addf %56, %55 : vector<2x32xf32>
    %58 = arith.divf %56, %57 : vector<2x32xf32>
    %59 = vector.extract_strided_slice %46 {offsets = [0, 64], sizes = [2, 32], strides = [1, 1]} : vector<2x128xf32> to vector<2x32xf32>
    %60 = math.tanh %59 : vector<2x32xf32>
    %61 = vector.extract_strided_slice %46 {offsets = [0, 96], sizes = [2, 32], strides = [1, 1]} : vector<2x128xf32> to vector<2x32xf32>
    %62 = arith.negf %61 : vector<2x32xf32>
    %63 = math.exp %62 : vector<2x32xf32>
    %cst_20 = arith.constant 1.000000e+00 : f32
    %64 = vector.broadcast %cst_20 : f32 to vector<2x32xf32>
    %65 = arith.addf %64, %63 : vector<2x32xf32>
    %66 = arith.divf %64, %65 : vector<2x32xf32>
    %67 = arith.mulf %58, %34 : vector<2x32xf32>
    %68 = arith.mulf %52, %60 : vector<2x32xf32>
    %69 = arith.addf %67, %68 : vector<2x32xf32>
    %70 = math.tanh %69 : vector<2x32xf32>
    %71 = arith.mulf %66, %70 : vector<2x32xf32>
    %72 = arith.truncf %71 : vector<2x32xf32> to vector<2x32xbf16>
    %c1_21 = arith.constant 1 : index
    %c0_22 = arith.constant 0 : index
    %c0_23 = arith.constant 0 : index
    %73 = vector.load %arg4[%c1_21, %c0_22, %c0_23] : memref<8x2x32xbf16, #tpu.memory_space<vmem>>, vector<1x2x32xbf16>
    %74 = vector.shape_cast %73 : vector<1x2x32xbf16> to vector<2x32xbf16>
    %75 = vector.shape_cast %72 : vector<2x32xbf16> to vector<1x2x32xbf16>
    tpu.vector_store %arg4[%c1_21, %c0_22, %c0_23], %75 {strides = array<i32>} : memref<8x2x32xbf16, #tpu.memory_space<vmem>>, vector<1x2x32xbf16>,
    %c2 = arith.constant 2 : index
    %c0_24 = arith.constant 0 : index
    %c0_25 = arith.constant 0 : index
    %76 = vector.load %arg2[%c2, %c0_24, %c0_25] : memref<8x2x128xbf16, #tpu.memory_space<vmem>>, vector<1x2x128xbf16>
    %77 = vector.shape_cast %76 : vector<1x2x128xbf16> to vector<2x128xbf16>
    %78 = arith.extf %77 : vector<2x128xbf16> to vector<2x128xf32>
    %79 = arith.truncf %71 : vector<2x32xf32> to vector<2x32xbf16>
    %cst_26 = arith.constant dense<0.000000e+00> : vector<2x128xf32>
    %80 = tpu.matmul %79, %3, %cst_26 {dimension_numbers = #tpu.dot_dimension_numbers<[1], [0], [0], [1], [0, 0, 1, 1], [], []>} : vector<2x32xbf16>, vector<32x128xbf16>, vector<2x128xf32> -> vector<2x128xf32>
    %81 = arith.addf %78, %80 : vector<2x128xf32>
    %82 = vector.extract_strided_slice %81 {offsets = [0, 0], sizes = [2, 32], strides = [1, 1]} : vector<2x128xf32> to vector<2x32xf32>
    %83 = arith.negf %82 : vector<2x32xf32>
    %84 = math.exp %83 : vector<2x32xf32>
    %cst_27 = arith.constant 1.000000e+00 : f32
    %85 = vector.broadcast %cst_27 : f32 to vector<2x32xf32>
    %86 = arith.addf %85, %84 : vector<2x32xf32>
    %87 = arith.divf %85, %86 : vector<2x32xf32>
    %88 = vector.extract_strided_slice %81 {offsets = [0, 32], sizes = [2, 32], strides = [1, 1]} : vector<2x128xf32> to vector<2x32xf32>
    %89 = arith.negf %88 : vector<2x32xf32>
    %90 = math.exp %89 : vector<2x32xf32>
    %cst_28 = arith.constant 1.000000e+00 : f32
    %91 = vector.broadcast %cst_28 : f32 to vector<2x32xf32>
    %92 = arith.addf %91, %90 : vector<2x32xf32>
    %93 = arith.divf %91, %92 : vector<2x32xf32>
    %94 = vector.extract_strided_slice %81 {offsets = [0, 64], sizes = [2, 32], strides = [1, 1]} : vector<2x128xf32> to vector<2x32xf32>
    %95 = math.tanh %94 : vector<2x32xf32>
    %96 = vector.extract_strided_slice %81 {offsets = [0, 96], sizes = [2, 32], strides = [1, 1]} : vector<2x128xf32> to vector<2x32xf32>
    %97 = arith.negf %96 : vector<2x32xf32>
    %98 = math.exp %97 : vector<2x32xf32>
    %cst_29 = arith.constant 1.000000e+00 : f32
    %99 = vector.broadcast %cst_29 : f32 to vector<2x32xf32>
    %100 = arith.addf %99, %98 : vector<2x32xf32>
    %101 = arith.divf %99, %100 : vector<2x32xf32>
    %102 = arith.mulf %93, %69 : vector<2x32xf32>
    %103 = arith.mulf %87, %95 : vector<2x32xf32>
    %104 = arith.addf %102, %103 : vector<2x32xf32>
    %105 = math.tanh %104 : vector<2x32xf32>
    %106 = arith.mulf %101, %105 : vector<2x32xf32>
    %107 = arith.truncf %106 : vector<2x32xf32> to vector<2x32xbf16>
    %c2_30 = arith.constant 2 : index
    %c0_31 = arith.constant 0 : index
    %c0_32 = arith.constant 0 : index
    %108 = vector.load %arg4[%c2_30, %c0_31, %c0_32] : memref<8x2x32xbf16, #tpu.memory_space<vmem>>, vector<1x2x32xbf16>
    %109 = vector.shape_cast %108 : vector<1x2x32xbf16> to vector<2x32xbf16>
    %110 = vector.shape_cast %107 : vector<2x32xbf16> to vector<1x2x32xbf16>
    tpu.vector_store %arg4[%c2_30, %c0_31, %c0_32], %110 {strides = array<i32>} : memref<8x2x32xbf16, #tpu.memory_space<vmem>>, vector<1x2x32xbf16>,
    %c3 = arith.constant 3 : index
    %c0_33 = arith.constant 0 : index
    %c0_34 = arith.constant 0 : index
    %111 = vector.load %arg2[%c3, %c0_33, %c0_34] : memref<8x2x128xbf16, #tpu.memory_space<vmem>>, vector<1x2x128xbf16>
    %112 = vector.shape_cast %111 : vector<1x2x128xbf16> to vector<2x128xbf16>
    %113 = arith.extf %112 : vector<2x128xbf16> to vector<2x128xf32>
    %114 = arith.truncf %106 : vector<2x32xf32> to vector<2x32xbf16>
    %cst_35 = arith.constant dense<0.000000e+00> : vector<2x128xf32>
    %115 = tpu.matmul %114, %3, %cst_35 {dimension_numbers = #tpu.dot_dimension_numbers<[1], [0], [0], [1], [0, 0, 1, 1], [], []>} : vector<2x32xbf16>, vector<32x128xbf16>, vector<2x128xf32> -> vector<2x128xf32>
    %116 = arith.addf %113, %115 : vector<2x128xf32>
    %117 = vector.extract_strided_slice %116 {offsets = [0, 0], sizes = [2, 32], strides = [1, 1]} : vector<2x128xf32> to vector<2x32xf32>
    %118 = arith.negf %117 : vector<2x32xf32>
    %119 = math.exp %118 : vector<2x32xf32>
    %cst_36 = arith.constant 1.000000e+00 : f32
    %120 = vector.broadcast %cst_36 : f32 to vector<2x32xf32>
    %121 = arith.addf %120, %119 : vector<2x32xf32>
    %122 = arith.divf %120, %121 : vector<2x32xf32>
    %123 = vector.extract_strided_slice %116 {offsets = [0, 32], sizes = [2, 32], strides = [1, 1]} : vector<2x128xf32> to vector<2x32xf32>
    %124 = arith.negf %123 : vector<2x32xf32>
    %125 = math.exp %124 : vector<2x32xf32>
    %cst_37 = arith.constant 1.000000e+00 : f32
    %126 = vector.broadcast %cst_37 : f32 to vector<2x32xf32>
    %127 = arith.addf %126, %125 : vector<2x32xf32>
    %128 = arith.divf %126, %127 : vector<2x32xf32>
    %129 = vector.extract_strided_slice %116 {offsets = [0, 64], sizes = [2, 32], strides = [1, 1]} : vector<2x128xf32> to vector<2x32xf32>
    %130 = math.tanh %129 : vector<2x32xf32>
    %131 = vector.extract_strided_slice %116 {offsets = [0, 96], sizes = [2, 32], strides = [1, 1]} : vector<2x128xf32> to vector<2x32xf32>
    %132 = arith.negf %131 : vector<2x32xf32>
    %133 = math.exp %132 : vector<2x32xf32>
    %cst_38 = arith.constant 1.000000e+00 : f32
    %134 = vector.broadcast %cst_38 : f32 to vector<2x32xf32>
    %135 = arith.addf %134, %133 : vector<2x32xf32>
    %136 = arith.divf %134, %135 : vector<2x32xf32>
    %137 = arith.mulf %128, %104 : vector<2x32xf32>
    %138 = arith.mulf %122, %130 : vector<2x32xf32>
    %139 = arith.addf %137, %138 : vector<2x32xf32>
    %140 = math.tanh %139 : vector<2x32xf32>
    %141 = arith.mulf %136, %140 : vector<2x32xf32>
    %142 = arith.truncf %141 : vector<2x32xf32> to vector<2x32xbf16>
    %c3_39 = arith.constant 3 : index
    %c0_40 = arith.constant 0 : index
    %c0_41 = arith.constant 0 : index
    %143 = vector.load %arg4[%c3_39, %c0_40, %c0_41] : memref<8x2x32xbf16, #tpu.memory_space<vmem>>, vector<1x2x32xbf16>
    %144 = vector.shape_cast %143 : vector<1x2x32xbf16> to vector<2x32xbf16>
    %145 = vector.shape_cast %142 : vector<2x32xbf16> to vector<1x2x32xbf16>
    tpu.vector_store %arg4[%c3_39, %c0_40, %c0_41], %145 {strides = array<i32>} : memref<8x2x32xbf16, #tpu.memory_space<vmem>>, vector<1x2x32xbf16>,
    %c4 = arith.constant 4 : index
    %c0_42 = arith.constant 0 : index
    %c0_43 = arith.constant 0 : index
    %146 = vector.load %arg2[%c4, %c0_42, %c0_43] : memref<8x2x128xbf16, #tpu.memory_space<vmem>>, vector<1x2x128xbf16>
    %147 = vector.shape_cast %146 : vector<1x2x128xbf16> to vector<2x128xbf16>
    %148 = arith.extf %147 : vector<2x128xbf16> to vector<2x128xf32>
    %149 = arith.truncf %141 : vector<2x32xf32> to vector<2x32xbf16>
    %cst_44 = arith.constant dense<0.000000e+00> : vector<2x128xf32>
    %150 = tpu.matmul %149, %3, %cst_44 {dimension_numbers = #tpu.dot_dimension_numbers<[1], [0], [0], [1], [0, 0, 1, 1], [], []>} : vector<2x32xbf16>, vector<32x128xbf16>, vector<2x128xf32> -> vector<2x128xf32>
    %151 = arith.addf %148, %150 : vector<2x128xf32>
    %152 = vector.extract_strided_slice %151 {offsets = [0, 0], sizes = [2, 32], strides = [1, 1]} : vector<2x128xf32> to vector<2x32xf32>
    %153 = arith.negf %152 : vector<2x32xf32>
    %154 = math.exp %153 : vector<2x32xf32>
    %cst_45 = arith.constant 1.000000e+00 : f32
    %155 = vector.broadcast %cst_45 : f32 to vector<2x32xf32>
    %156 = arith.addf %155, %154 : vector<2x32xf32>
    %157 = arith.divf %155, %156 : vector<2x32xf32>
    %158 = vector.extract_strided_slice %151 {offsets = [0, 32], sizes = [2, 32], strides = [1, 1]} : vector<2x128xf32> to vector<2x32xf32>
    %159 = arith.negf %158 : vector<2x32xf32>
    %160 = math.exp %159 : vector<2x32xf32>
    %cst_46 = arith.constant 1.000000e+00 : f32
    %161 = vector.broadcast %cst_46 : f32 to vector<2x32xf32>
    %162 = arith.addf %161, %160 : vector<2x32xf32>
    %163 = arith.divf %161, %162 : vector<2x32xf32>
    %164 = vector.extract_strided_slice %151 {offsets = [0, 64], sizes = [2, 32], strides = [1, 1]} : vector<2x128xf32> to vector<2x32xf32>
    %165 = math.tanh %164 : vector<2x32xf32>
    %166 = vector.extract_strided_slice %151 {offsets = [0, 96], sizes = [2, 32], strides = [1, 1]} : vector<2x128xf32> to vector<2x32xf32>
    %167 = arith.negf %166 : vector<2x32xf32>
    %168 = math.exp %167 : vector<2x32xf32>
    %cst_47 = arith.constant 1.000000e+00 : f32
    %169 = vector.broadcast %cst_47 : f32 to vector<2x32xf32>
    %170 = arith.addf %169, %168 : vector<2x32xf32>
    %171 = arith.divf %169, %170 : vector<2x32xf32>
    %172 = arith.mulf %163, %139 : vector<2x32xf32>
    %173 = arith.mulf %157, %165 : vector<2x32xf32>
    %174 = arith.addf %172, %173 : vector<2x32xf32>
    %175 = math.tanh %174 : vector<2x32xf32>
    %176 = arith.mulf %171, %175 : vector<2x32xf32>
    %177 = arith.truncf %176 : vector<2x32xf32> to vector<2x32xbf16>
    %c4_48 = arith.constant 4 : index
    %c0_49 = arith.constant 0 : index
    %c0_50 = arith.constant 0 : index
    %178 = vector.load %arg4[%c4_48, %c0_49, %c0_50] : memref<8x2x32xbf16, #tpu.memory_space<vmem>>, vector<1x2x32xbf16>
    %179 = vector.shape_cast %178 : vector<1x2x32xbf16> to vector<2x32xbf16>
    %180 = vector.shape_cast %177 : vector<2x32xbf16> to vector<1x2x32xbf16>
    tpu.vector_store %arg4[%c4_48, %c0_49, %c0_50], %180 {strides = array<i32>} : memref<8x2x32xbf16, #tpu.memory_space<vmem>>, vector<1x2x32xbf16>,
    %c5 = arith.constant 5 : index
    %c0_51 = arith.constant 0 : index
    %c0_52 = arith.constant 0 : index
    %181 = vector.load %arg2[%c5, %c0_51, %c0_52] : memref<8x2x128xbf16, #tpu.memory_space<vmem>>, vector<1x2x128xbf16>
    %182 = vector.shape_cast %181 : vector<1x2x128xbf16> to vector<2x128xbf16>
    %183 = arith.extf %182 : vector<2x128xbf16> to vector<2x128xf32>
    %184 = arith.truncf %176 : vector<2x32xf32> to vector<2x32xbf16>
    %cst_53 = arith.constant dense<0.000000e+00> : vector<2x128xf32>
    %185 = tpu.matmul %184, %3, %cst_53 {dimension_numbers = #tpu.dot_dimension_numbers<[1], [0], [0], [1], [0, 0, 1, 1], [], []>} : vector<2x32xbf16>, vector<32x128xbf16>, vector<2x128xf32> -> vector<2x128xf32>
    %186 = arith.addf %183, %185 : vector<2x128xf32>
    %187 = vector.extract_strided_slice %186 {offsets = [0, 0], sizes = [2, 32], strides = [1, 1]} : vector<2x128xf32> to vector<2x32xf32>
    %188 = arith.negf %187 : vector<2x32xf32>
    %189 = math.exp %188 : vector<2x32xf32>
    %cst_54 = arith.constant 1.000000e+00 : f32
    %190 = vector.broadcast %cst_54 : f32 to vector<2x32xf32>
    %191 = arith.addf %190, %189 : vector<2x32xf32>
    %192 = arith.divf %190, %191 : vector<2x32xf32>
    %193 = vector.extract_strided_slice %186 {offsets = [0, 32], sizes = [2, 32], strides = [1, 1]} : vector<2x128xf32> to vector<2x32xf32>
    %194 = arith.negf %193 : vector<2x32xf32>
    %195 = math.exp %194 : vector<2x32xf32>
    %cst_55 = arith.constant 1.000000e+00 : f32
    %196 = vector.broadcast %cst_55 : f32 to vector<2x32xf32>
    %197 = arith.addf %196, %195 : vector<2x32xf32>
    %198 = arith.divf %196, %197 : vector<2x32xf32>
    %199 = vector.extract_strided_slice %186 {offsets = [0, 64], sizes = [2, 32], strides = [1, 1]} : vector<2x128xf32> to vector<2x32xf32>
    %200 = math.tanh %199 : vector<2x32xf32>
    %201 = vector.extract_strided_slice %186 {offsets = [0, 96], sizes = [2, 32], strides = [1, 1]} : vector<2x128xf32> to vector<2x32xf32>
    %202 = arith.negf %201 : vector<2x32xf32>
    %203 = math.exp %202 : vector<2x32xf32>
    %cst_56 = arith.constant 1.000000e+00 : f32
    %204 = vector.broadcast %cst_56 : f32 to vector<2x32xf32>
    %205 = arith.addf %204, %203 : vector<2x32xf32>
    %206 = arith.divf %204, %205 : vector<2x32xf32>
    %207 = arith.mulf %198, %174 : vector<2x32xf32>
    %208 = arith.mulf %192, %200 : vector<2x32xf32>
    %209 = arith.addf %207, %208 : vector<2x32xf32>
    %210 = math.tanh %209 : vector<2x32xf32>
    %211 = arith.mulf %206, %210 : vector<2x32xf32>
    %212 = arith.truncf %211 : vector<2x32xf32> to vector<2x32xbf16>
    %c5_57 = arith.constant 5 : index
    %c0_58 = arith.constant 0 : index
    %c0_59 = arith.constant 0 : index
    %213 = vector.load %arg4[%c5_57, %c0_58, %c0_59] : memref<8x2x32xbf16, #tpu.memory_space<vmem>>, vector<1x2x32xbf16>
    %214 = vector.shape_cast %213 : vector<1x2x32xbf16> to vector<2x32xbf16>
    %215 = vector.shape_cast %212 : vector<2x32xbf16> to vector<1x2x32xbf16>
    tpu.vector_store %arg4[%c5_57, %c0_58, %c0_59], %215 {strides = array<i32>} : memref<8x2x32xbf16, #tpu.memory_space<vmem>>, vector<1x2x32xbf16>,
    %c6 = arith.constant 6 : index
    %c0_60 = arith.constant 0 : index
    %c0_61 = arith.constant 0 : index
    %216 = vector.load %arg2[%c6, %c0_60, %c0_61] : memref<8x2x128xbf16, #tpu.memory_space<vmem>>, vector<1x2x128xbf16>
    %217 = vector.shape_cast %216 : vector<1x2x128xbf16> to vector<2x128xbf16>
    %218 = arith.extf %217 : vector<2x128xbf16> to vector<2x128xf32>
    %219 = arith.truncf %211 : vector<2x32xf32> to vector<2x32xbf16>
    %cst_62 = arith.constant dense<0.000000e+00> : vector<2x128xf32>
    %220 = tpu.matmul %219, %3, %cst_62 {dimension_numbers = #tpu.dot_dimension_numbers<[1], [0], [0], [1], [0, 0, 1, 1], [], []>} : vector<2x32xbf16>, vector<32x128xbf16>, vector<2x128xf32> -> vector<2x128xf32>
    %221 = arith.addf %218, %220 : vector<2x128xf32>
    %222 = vector.extract_strided_slice %221 {offsets = [0, 0], sizes = [2, 32], strides = [1, 1]} : vector<2x128xf32> to vector<2x32xf32>
    %223 = arith.negf %222 : vector<2x32xf32>
    %224 = math.exp %223 : vector<2x32xf32>
    %cst_63 = arith.constant 1.000000e+00 : f32
    %225 = vector.broadcast %cst_63 : f32 to vector<2x32xf32>
    %226 = arith.addf %225, %224 : vector<2x32xf32>
    %227 = arith.divf %225, %226 : vector<2x32xf32>
    %228 = vector.extract_strided_slice %221 {offsets = [0, 32], sizes = [2, 32], strides = [1, 1]} : vector<2x128xf32> to vector<2x32xf32>
    %229 = arith.negf %228 : vector<2x32xf32>
    %230 = math.exp %229 : vector<2x32xf32>
    %cst_64 = arith.constant 1.000000e+00 : f32
    %231 = vector.broadcast %cst_64 : f32 to vector<2x32xf32>
    %232 = arith.addf %231, %230 : vector<2x32xf32>
    %233 = arith.divf %231, %232 : vector<2x32xf32>
    %234 = vector.extract_strided_slice %221 {offsets = [0, 64], sizes = [2, 32], strides = [1, 1]} : vector<2x128xf32> to vector<2x32xf32>
    %235 = math.tanh %234 : vector<2x32xf32>
    %236 = vector.extract_strided_slice %221 {offsets = [0, 96], sizes = [2, 32], strides = [1, 1]} : vector<2x128xf32> to vector<2x32xf32>
    %237 = arith.negf %236 : vector<2x32xf32>
    %238 = math.exp %237 : vector<2x32xf32>
    %cst_65 = arith.constant 1.000000e+00 : f32
    %239 = vector.broadcast %cst_65 : f32 to vector<2x32xf32>
    %240 = arith.addf %239, %238 : vector<2x32xf32>
    %241 = arith.divf %239, %240 : vector<2x32xf32>
    %242 = arith.mulf %233, %209 : vector<2x32xf32>
    %243 = arith.mulf %227, %235 : vector<2x32xf32>
    %244 = arith.addf %242, %243 : vector<2x32xf32>
    %245 = math.tanh %244 : vector<2x32xf32>
    %246 = arith.mulf %241, %245 : vector<2x32xf32>
    %247 = arith.truncf %246 : vector<2x32xf32> to vector<2x32xbf16>
    %c6_66 = arith.constant 6 : index
    %c0_67 = arith.constant 0 : index
    %c0_68 = arith.constant 0 : index
    %248 = vector.load %arg4[%c6_66, %c0_67, %c0_68] : memref<8x2x32xbf16, #tpu.memory_space<vmem>>, vector<1x2x32xbf16>
    %249 = vector.shape_cast %248 : vector<1x2x32xbf16> to vector<2x32xbf16>
    %250 = vector.shape_cast %247 : vector<2x32xbf16> to vector<1x2x32xbf16>
    tpu.vector_store %arg4[%c6_66, %c0_67, %c0_68], %250 {strides = array<i32>} : memref<8x2x32xbf16, #tpu.memory_space<vmem>>, vector<1x2x32xbf16>,
    %c7 = arith.constant 7 : index
    %c0_69 = arith.constant 0 : index
    %c0_70 = arith.constant 0 : index
    %251 = vector.load %arg2[%c7, %c0_69, %c0_70] : memref<8x2x128xbf16, #tpu.memory_space<vmem>>, vector<1x2x128xbf16>
    %252 = vector.shape_cast %251 : vector<1x2x128xbf16> to vector<2x128xbf16>
    %253 = arith.extf %252 : vector<2x128xbf16> to vector<2x128xf32>
    %254 = arith.truncf %246 : vector<2x32xf32> to vector<2x32xbf16>
    %cst_71 = arith.constant dense<0.000000e+00> : vector<2x128xf32>
    %255 = tpu.matmul %254, %3, %cst_71 {dimension_numbers = #tpu.dot_dimension_numbers<[1], [0], [0], [1], [0, 0, 1, 1], [], []>} : vector<2x32xbf16>, vector<32x128xbf16>, vector<2x128xf32> -> vector<2x128xf32>
    %256 = arith.addf %253, %255 : vector<2x128xf32>
    %257 = vector.extract_strided_slice %256 {offsets = [0, 0], sizes = [2, 32], strides = [1, 1]} : vector<2x128xf32> to vector<2x32xf32>
    %258 = arith.negf %257 : vector<2x32xf32>
    %259 = math.exp %258 : vector<2x32xf32>
    %cst_72 = arith.constant 1.000000e+00 : f32
    %260 = vector.broadcast %cst_72 : f32 to vector<2x32xf32>
    %261 = arith.addf %260, %259 : vector<2x32xf32>
    %262 = arith.divf %260, %261 : vector<2x32xf32>
    %263 = vector.extract_strided_slice %256 {offsets = [0, 32], sizes = [2, 32], strides = [1, 1]} : vector<2x128xf32> to vector<2x32xf32>
    %264 = arith.negf %263 : vector<2x32xf32>
    %265 = math.exp %264 : vector<2x32xf32>
    %cst_73 = arith.constant 1.000000e+00 : f32
    %266 = vector.broadcast %cst_73 : f32 to vector<2x32xf32>
    %267 = arith.addf %266, %265 : vector<2x32xf32>
    %268 = arith.divf %266, %267 : vector<2x32xf32>
    %269 = vector.extract_strided_slice %256 {offsets = [0, 64], sizes = [2, 32], strides = [1, 1]} : vector<2x128xf32> to vector<2x32xf32>
    %270 = math.tanh %269 : vector<2x32xf32>
    %271 = vector.extract_strided_slice %256 {offsets = [0, 96], sizes = [2, 32], strides = [1, 1]} : vector<2x128xf32> to vector<2x32xf32>
    %272 = arith.negf %271 : vector<2x32xf32>
    %273 = math.exp %272 : vector<2x32xf32>
    %cst_74 = arith.constant 1.000000e+00 : f32
    %274 = vector.broadcast %cst_74 : f32 to vector<2x32xf32>
    %275 = arith.addf %274, %273 : vector<2x32xf32>
    %276 = arith.divf %274, %275 : vector<2x32xf32>
    %277 = arith.mulf %268, %244 : vector<2x32xf32>
    %278 = arith.mulf %262, %270 : vector<2x32xf32>
    %279 = arith.addf %277, %278 : vector<2x32xf32>
    %280 = math.tanh %279 : vector<2x32xf32>
    %281 = arith.mulf %276, %280 : vector<2x32xf32>
    %282 = arith.truncf %281 : vector<2x32xf32> to vector<2x32xbf16>
    %c7_75 = arith.constant 7 : index
    %c0_76 = arith.constant 0 : index
    %c0_77 = arith.constant 0 : index
    %283 = vector.load %arg4[%c7_75, %c0_76, %c0_77] : memref<8x2x32xbf16, #tpu.memory_space<vmem>>, vector<1x2x32xbf16>
    %284 = vector.shape_cast %283 : vector<1x2x32xbf16> to vector<2x32xbf16>
    %285 = vector.shape_cast %282 : vector<2x32xbf16> to vector<1x2x32xbf16>
    tpu.vector_store %arg4[%c7_75, %c0_76, %c0_77], %285 {strides = array<i32>} : memref<8x2x32xbf16, #tpu.memory_space<vmem>>, vector<1x2x32xbf16>,
    %c0_78 = arith.constant 0 : index
    %c0_79 = arith.constant 0 : index
    %286 = vector.load %arg5[%c0_78, %c0_79] : memref<2x32xf32, #tpu.memory_space<vmem>>, vector<2x32xf32>
    tpu.vector_store %arg5[%c0_78, %c0_79], %281 {strides = array<i32>} : memref<2x32xf32, #tpu.memory_space<vmem>>, vector<2x32xf32>,
    %c0_80 = arith.constant 0 : index
    %c0_81 = arith.constant 0 : index
    %287 = vector.load %arg6[%c0_80, %c0_81] : memref<2x32xf32, #tpu.memory_space<vmem>>, vector<2x32xf32>
    tpu.vector_store %arg6[%c0_80, %c0_81], %279 {strides = array<i32>} : memref<2x32xf32, #tpu.memory_space<vmem>>, vector<2x32xf32>,
    return
  }
  func.func @transform_0(%arg0: i32, %arg1: i32) -> (i32, i32, i32) {
    %c0_i32 = arith.constant 0 : i32
    %c0_i32_0 = arith.constant 0 : i32
    return %arg1, %arg0, %c0_i32 : i32, i32, i32
  }
  func.func @transform_1(%arg0: i32, %arg1: i32) -> (i32, i32) {
    %c0_i32 = arith.constant 0 : i32
    %c0_i32_0 = arith.constant 0 : i32
    %c0_i32_1 = arith.constant 0 : i32
    return %c0_i32, %c0_i32_0 : i32, i32
  }
  func.func @transform_2(%arg0: i32, %arg1: i32) -> (i32, i32, i32) {
    %c0_i32 = arith.constant 0 : i32
    %c0_i32_0 = arith.constant 0 : i32
    return %arg1, %arg0, %c0_i32 : i32, i32, i32
  }
}

module attributes {stable_mosaic.version = 11 : i64} {
  func.func @_gemm2_kernel(%arg0: i32, %arg1: i32, %arg2: i32, %arg3: memref<16x128xbf16, #tpu.memory_space<vmem>>, %arg4: memref<128x128xbf16, #tpu.memory_space<vmem>>, %arg5: memref<16x128xbf16, #tpu.memory_space<vmem>>, %arg6: memref<128x128xbf16, #tpu.memory_space<vmem>>, %arg7: memref<1x128xf32, #tpu.memory_space<vmem>>, %arg8: memref<16x128xbf16, #tpu.memory_space<vmem>>, %arg9: memref<16x128xf32, #tpu.memory_space<vmem>>) attributes {dimension_semantics = [#tpu.dimension_semantics<parallel>, #tpu.dimension_semantics<parallel>, #tpu.dimension_semantics<arbitrary>], iteration_bounds = array<i64: 1, 1, 1>, scalar_prefetch = 0 : i64, scratch_operands = 1 : i64, tpu.core_type = #tpu.core_type<tc>, window_params = [{transform_indices = @transform_0, window_bounds = array<i64: 16, 128>}, {transform_indices = @transform_1, window_bounds = array<i64: 128, 128>}, {transform_indices = @transform_2, window_bounds = array<i64: 16, 128>}, {transform_indices = @transform_3, window_bounds = array<i64: 128, 128>}, {transform_indices = @transform_4, window_bounds = array<i64: 1, 128>}, {transform_indices = @transform_5, window_bounds = array<i64: 16, 128>}]} {
    %c0_i32 = arith.constant 0 : i32
    %0 = arith.cmpi eq, %arg2, %c0_i32 : i32
    %1 = arith.extui %0 : i1 to i32
    %c0_i32_0 = arith.constant 0 : i32
    %2 = arith.cmpi ne, %1, %c0_i32_0 : i32
    scf.if %2 {
      %cst_19 = arith.constant 0.000000e+00 : f32
      %18 = vector.broadcast %cst_19 : f32 to vector<16x128xf32>
      %c0_20 = arith.constant 0 : index
      %c0_21 = arith.constant 0 : index
      %19 = vector.load %arg9[%c0_20, %c0_21] : memref<16x128xf32, #tpu.memory_space<vmem>>, vector<16x128xf32>
      tpu.vector_store %arg9[%c0_20, %c0_21], %18 {strides = array<i32>} : memref<16x128xf32, #tpu.memory_space<vmem>>, vector<16x128xf32>,
    } else {
    }
    %c0 = arith.constant 0 : index
    %c0_1 = arith.constant 0 : index
    %3 = vector.load %arg9[%c0, %c0_1] : memref<16x128xf32, #tpu.memory_space<vmem>>, vector<16x128xf32>
    %c0_2 = arith.constant 0 : index
    %c0_3 = arith.constant 0 : index
    %4 = vector.load %arg3[%c0_2, %c0_3] : memref<16x128xbf16, #tpu.memory_space<vmem>>, vector<16x128xbf16>
    %c0_4 = arith.constant 0 : index
    %c0_5 = arith.constant 0 : index
    %5 = vector.load %arg4[%c0_4, %c0_5] : memref<128x128xbf16, #tpu.memory_space<vmem>>, vector<128x128xbf16>
    %cst = arith.constant dense<0.000000e+00> : vector<16x128xf32>
    %6 = tpu.matmul %4, %5, %cst {dimension_numbers = #tpu.dot_dimension_numbers<[1], [0], [0], [1], [0, 0, 1, 1], [], []>} : vector<16x128xbf16>, vector<128x128xbf16>, vector<16x128xf32> -> vector<16x128xf32>
    %7 = arith.addf %3, %6 : vector<16x128xf32>
    %c0_6 = arith.constant 0 : index
    %c0_7 = arith.constant 0 : index
    %8 = vector.load %arg9[%c0_6, %c0_7] : memref<16x128xf32, #tpu.memory_space<vmem>>, vector<16x128xf32>
    tpu.vector_store %arg9[%c0_6, %c0_7], %7 {strides = array<i32>} : memref<16x128xf32, #tpu.memory_space<vmem>>, vector<16x128xf32>,
    %c0_8 = arith.constant 0 : index
    %c0_9 = arith.constant 0 : index
    %9 = vector.load %arg9[%c0_8, %c0_9] : memref<16x128xf32, #tpu.memory_space<vmem>>, vector<16x128xf32>
    %c0_10 = arith.constant 0 : index
    %c0_11 = arith.constant 0 : index
    %10 = vector.load %arg5[%c0_10, %c0_11] : memref<16x128xbf16, #tpu.memory_space<vmem>>, vector<16x128xbf16>
    %c0_12 = arith.constant 0 : index
    %c0_13 = arith.constant 0 : index
    %11 = vector.load %arg6[%c0_12, %c0_13] : memref<128x128xbf16, #tpu.memory_space<vmem>>, vector<128x128xbf16>
    %cst_14 = arith.constant dense<0.000000e+00> : vector<16x128xf32>
    %12 = tpu.matmul %10, %11, %cst_14 {dimension_numbers = #tpu.dot_dimension_numbers<[1], [0], [0], [1], [0, 0, 1, 1], [], []>} : vector<16x128xbf16>, vector<128x128xbf16>, vector<16x128xf32> -> vector<16x128xf32>
    %13 = arith.addf %9, %12 : vector<16x128xf32>
    %c0_15 = arith.constant 0 : index
    %c0_16 = arith.constant 0 : index
    %14 = vector.load %arg9[%c0_15, %c0_16] : memref<16x128xf32, #tpu.memory_space<vmem>>, vector<16x128xf32>
    tpu.vector_store %arg9[%c0_15, %c0_16], %13 {strides = array<i32>} : memref<16x128xf32, #tpu.memory_space<vmem>>, vector<16x128xf32>,
    %c0_i32_17 = arith.constant 0 : i32
    %15 = arith.cmpi eq, %arg2, %c0_i32_17 : i32
    %16 = arith.extui %15 : i1 to i32
    %c0_i32_18 = arith.constant 0 : i32
    %17 = arith.cmpi ne, %16, %c0_i32_18 : i32
    scf.if %17 {
      %c0_19 = arith.constant 0 : index
      %c0_20 = arith.constant 0 : index
      %18 = vector.load %arg9[%c0_19, %c0_20] : memref<16x128xf32, #tpu.memory_space<vmem>>, vector<16x128xf32>
      %c0_21 = arith.constant 0 : index
      %c0_22 = arith.constant 0 : index
      %19 = vector.load %arg7[%c0_21, %c0_22] : memref<1x128xf32, #tpu.memory_space<vmem>>, vector<1x128xf32>
      %20 = vector.broadcast %19 : vector<1x128xf32> to vector<16x128xf32>
      %21 = arith.addf %18, %20 : vector<16x128xf32>
      %22 = arith.truncf %21 : vector<16x128xf32> to vector<16x128xbf16>
      %c0_23 = arith.constant 0 : index
      %c0_24 = arith.constant 0 : index
      %23 = vector.load %arg8[%c0_23, %c0_24] : memref<16x128xbf16, #tpu.memory_space<vmem>>, vector<16x128xbf16>
      tpu.vector_store %arg8[%c0_23, %c0_24], %22 {strides = array<i32>} : memref<16x128xbf16, #tpu.memory_space<vmem>>, vector<16x128xbf16>,
    } else {
    }
    return
  }
  func.func @transform_0(%arg0: i32, %arg1: i32, %arg2: i32) -> (i32, i32) {
    %c0_i32 = arith.constant 0 : i32
    return %arg0, %arg2 : i32, i32
  }
  func.func @transform_1(%arg0: i32, %arg1: i32, %arg2: i32) -> (i32, i32) {
    %c0_i32 = arith.constant 0 : i32
    return %arg2, %arg1 : i32, i32
  }
  func.func @transform_2(%arg0: i32, %arg1: i32, %arg2: i32) -> (i32, i32) {
    %c0_i32 = arith.constant 0 : i32
    return %arg0, %arg2 : i32, i32
  }
  func.func @transform_3(%arg0: i32, %arg1: i32, %arg2: i32) -> (i32, i32) {
    %c0_i32 = arith.constant 0 : i32
    return %arg2, %arg1 : i32, i32
  }
  func.func @transform_4(%arg0: i32, %arg1: i32, %arg2: i32) -> (i32, i32) {
    %c0_i32 = arith.constant 0 : i32
    %c0_i32_0 = arith.constant 0 : i32
    return %c0_i32, %arg1 : i32, i32
  }
  func.func @transform_5(%arg0: i32, %arg1: i32, %arg2: i32) -> (i32, i32) {
    %c0_i32 = arith.constant 0 : i32
    return %arg0, %arg1 : i32, i32
  }
}

module attributes {stable_mosaic.version = 11 : i64} {
  func.func @_lstm_rec_res_kernel(%arg0: i32, %arg1: i32, %arg2: memref<8x2x128xbf16, #tpu.memory_space<vmem>>, %arg3: memref<8x2x32xbf16, #tpu.memory_space<vmem>>, %arg4: memref<32x128xbf16, #tpu.memory_space<vmem>>, %arg5: memref<8x2x32xbf16, #tpu.memory_space<vmem>>, %arg6: memref<2x32xf32, #tpu.memory_space<vmem>>, %arg7: memref<2x32xf32, #tpu.memory_space<vmem>>) attributes {dimension_semantics = [#tpu.dimension_semantics<parallel>, #tpu.dimension_semantics<arbitrary>], iteration_bounds = array<i64: 1, 1>, scalar_prefetch = 0 : i64, scratch_operands = 2 : i64, tpu.core_type = #tpu.core_type<tc>, window_params = [{transform_indices = @transform_0, window_bounds = array<i64: 8, 2, 128>}, {transform_indices = @transform_1, window_bounds = array<i64: 8, 2, 32>}, {pipeline_mode = #tpu.pipeline_mode<synchronous>, transform_indices = @transform_2, window_bounds = array<i64: 32, 128>}, {transform_indices = @transform_3, window_bounds = array<i64: 8, 2, 32>}]} {
    %c0_i32 = arith.constant 0 : i32
    %0 = arith.cmpi eq, %arg1, %c0_i32 : i32
    %1 = arith.extui %0 : i1 to i32
    %c0_i32_0 = arith.constant 0 : i32
    %2 = arith.cmpi ne, %1, %c0_i32_0 : i32
    scf.if %2 {
      %cst_106 = arith.constant 0.000000e+00 : f32
      %320 = vector.broadcast %cst_106 : f32 to vector<2x32xf32>
      %c0_107 = arith.constant 0 : index
      %c0_108 = arith.constant 0 : index
      %321 = vector.load %arg6[%c0_107, %c0_108] : memref<2x32xf32, #tpu.memory_space<vmem>>, vector<2x32xf32>
      tpu.vector_store %arg6[%c0_107, %c0_108], %320 {strides = array<i32>} : memref<2x32xf32, #tpu.memory_space<vmem>>, vector<2x32xf32>,
      %cst_109 = arith.constant 0.000000e+00 : f32
      %322 = vector.broadcast %cst_109 : f32 to vector<2x32xf32>
      %c0_110 = arith.constant 0 : index
      %c0_111 = arith.constant 0 : index
      %323 = vector.load %arg7[%c0_110, %c0_111] : memref<2x32xf32, #tpu.memory_space<vmem>>, vector<2x32xf32>
      tpu.vector_store %arg7[%c0_110, %c0_111], %322 {strides = array<i32>} : memref<2x32xf32, #tpu.memory_space<vmem>>, vector<2x32xf32>,
    } else {
    }
    %c0 = arith.constant 0 : index
    %c0_1 = arith.constant 0 : index
    %3 = vector.load %arg4[%c0, %c0_1] : memref<32x128xbf16, #tpu.memory_space<vmem>>, vector<32x128xbf16>
    %c0_2 = arith.constant 0 : index
    %c0_3 = arith.constant 0 : index
    %4 = vector.load %arg6[%c0_2, %c0_3] : memref<2x32xf32, #tpu.memory_space<vmem>>, vector<2x32xf32>
    %c0_4 = arith.constant 0 : index
    %c0_5 = arith.constant 0 : index
    %5 = vector.load %arg7[%c0_4, %c0_5] : memref<2x32xf32, #tpu.memory_space<vmem>>, vector<2x32xf32>
    %c0_6 = arith.constant 0 : index
    %c0_7 = arith.constant 0 : index
    %c0_8 = arith.constant 0 : index
    %6 = vector.load %arg2[%c0_6, %c0_7, %c0_8] : memref<8x2x128xbf16, #tpu.memory_space<vmem>>, vector<1x2x128xbf16>
    %7 = vector.shape_cast %6 : vector<1x2x128xbf16> to vector<2x128xbf16>
    %8 = arith.extf %7 : vector<2x128xbf16> to vector<2x128xf32>
    %9 = arith.truncf %4 : vector<2x32xf32> to vector<2x32xbf16>
    %cst = arith.constant dense<0.000000e+00> : vector<2x128xf32>
    %10 = tpu.matmul %9, %3, %cst {dimension_numbers = #tpu.dot_dimension_numbers<[1], [0], [0], [1], [0, 0, 1, 1], [], []>} : vector<2x32xbf16>, vector<32x128xbf16>, vector<2x128xf32> -> vector<2x128xf32>
    %11 = arith.addf %8, %10 : vector<2x128xf32>
    %12 = vector.extract_strided_slice %11 {offsets = [0, 0], sizes = [2, 32], strides = [1, 1]} : vector<2x128xf32> to vector<2x32xf32>
    %13 = arith.negf %12 : vector<2x32xf32>
    %14 = math.exp %13 : vector<2x32xf32>
    %cst_9 = arith.constant 1.000000e+00 : f32
    %15 = vector.broadcast %cst_9 : f32 to vector<2x32xf32>
    %16 = arith.addf %15, %14 : vector<2x32xf32>
    %17 = arith.divf %15, %16 : vector<2x32xf32>
    %18 = vector.extract_strided_slice %11 {offsets = [0, 32], sizes = [2, 32], strides = [1, 1]} : vector<2x128xf32> to vector<2x32xf32>
    %19 = arith.negf %18 : vector<2x32xf32>
    %20 = math.exp %19 : vector<2x32xf32>
    %cst_10 = arith.constant 1.000000e+00 : f32
    %21 = vector.broadcast %cst_10 : f32 to vector<2x32xf32>
    %22 = arith.addf %21, %20 : vector<2x32xf32>
    %23 = arith.divf %21, %22 : vector<2x32xf32>
    %24 = vector.extract_strided_slice %11 {offsets = [0, 64], sizes = [2, 32], strides = [1, 1]} : vector<2x128xf32> to vector<2x32xf32>
    %25 = math.tanh %24 : vector<2x32xf32>
    %26 = vector.extract_strided_slice %11 {offsets = [0, 96], sizes = [2, 32], strides = [1, 1]} : vector<2x128xf32> to vector<2x32xf32>
    %27 = arith.negf %26 : vector<2x32xf32>
    %28 = math.exp %27 : vector<2x32xf32>
    %cst_11 = arith.constant 1.000000e+00 : f32
    %29 = vector.broadcast %cst_11 : f32 to vector<2x32xf32>
    %30 = arith.addf %29, %28 : vector<2x32xf32>
    %31 = arith.divf %29, %30 : vector<2x32xf32>
    %32 = arith.mulf %23, %5 : vector<2x32xf32>
    %33 = arith.mulf %17, %25 : vector<2x32xf32>
    %34 = arith.addf %32, %33 : vector<2x32xf32>
    %35 = math.tanh %34 : vector<2x32xf32>
    %36 = arith.mulf %31, %35 : vector<2x32xf32>
    %c0_12 = arith.constant 0 : index
    %c0_13 = arith.constant 0 : index
    %c0_14 = arith.constant 0 : index
    %37 = vector.load %arg3[%c0_12, %c0_13, %c0_14] : memref<8x2x32xbf16, #tpu.memory_space<vmem>>, vector<1x2x32xbf16>
    %38 = vector.shape_cast %37 : vector<1x2x32xbf16> to vector<2x32xbf16>
    %39 = arith.extf %38 : vector<2x32xbf16> to vector<2x32xf32>
    %40 = arith.addf %36, %39 : vector<2x32xf32>
    %41 = arith.truncf %40 : vector<2x32xf32> to vector<2x32xbf16>
    %c0_15 = arith.constant 0 : index
    %c0_16 = arith.constant 0 : index
    %c0_17 = arith.constant 0 : index
    %42 = vector.load %arg5[%c0_15, %c0_16, %c0_17] : memref<8x2x32xbf16, #tpu.memory_space<vmem>>, vector<1x2x32xbf16>
    %43 = vector.shape_cast %42 : vector<1x2x32xbf16> to vector<2x32xbf16>
    %44 = vector.shape_cast %41 : vector<2x32xbf16> to vector<1x2x32xbf16>
    tpu.vector_store %arg5[%c0_15, %c0_16, %c0_17], %44 {strides = array<i32>} : memref<8x2x32xbf16, #tpu.memory_space<vmem>>, vector<1x2x32xbf16>,
    %c1 = arith.constant 1 : index
    %c0_18 = arith.constant 0 : index
    %c0_19 = arith.constant 0 : index
    %45 = vector.load %arg2[%c1, %c0_18, %c0_19] : memref<8x2x128xbf16, #tpu.memory_space<vmem>>, vector<1x2x128xbf16>
    %46 = vector.shape_cast %45 : vector<1x2x128xbf16> to vector<2x128xbf16>
    %47 = arith.extf %46 : vector<2x128xbf16> to vector<2x128xf32>
    %48 = arith.truncf %36 : vector<2x32xf32> to vector<2x32xbf16>
    %cst_20 = arith.constant dense<0.000000e+00> : vector<2x128xf32>
    %49 = tpu.matmul %48, %3, %cst_20 {dimension_numbers = #tpu.dot_dimension_numbers<[1], [0], [0], [1], [0, 0, 1, 1], [], []>} : vector<2x32xbf16>, vector<32x128xbf16>, vector<2x128xf32> -> vector<2x128xf32>
    %50 = arith.addf %47, %49 : vector<2x128xf32>
    %51 = vector.extract_strided_slice %50 {offsets = [0, 0], sizes = [2, 32], strides = [1, 1]} : vector<2x128xf32> to vector<2x32xf32>
    %52 = arith.negf %51 : vector<2x32xf32>
    %53 = math.exp %52 : vector<2x32xf32>
    %cst_21 = arith.constant 1.000000e+00 : f32
    %54 = vector.broadcast %cst_21 : f32 to vector<2x32xf32>
    %55 = arith.addf %54, %53 : vector<2x32xf32>
    %56 = arith.divf %54, %55 : vector<2x32xf32>
    %57 = vector.extract_strided_slice %50 {offsets = [0, 32], sizes = [2, 32], strides = [1, 1]} : vector<2x128xf32> to vector<2x32xf32>
    %58 = arith.negf %57 : vector<2x32xf32>
    %59 = math.exp %58 : vector<2x32xf32>
    %cst_22 = arith.constant 1.000000e+00 : f32
    %60 = vector.broadcast %cst_22 : f32 to vector<2x32xf32>
    %61 = arith.addf %60, %59 : vector<2x32xf32>
    %62 = arith.divf %60, %61 : vector<2x32xf32>
    %63 = vector.extract_strided_slice %50 {offsets = [0, 64], sizes = [2, 32], strides = [1, 1]} : vector<2x128xf32> to vector<2x32xf32>
    %64 = math.tanh %63 : vector<2x32xf32>
    %65 = vector.extract_strided_slice %50 {offsets = [0, 96], sizes = [2, 32], strides = [1, 1]} : vector<2x128xf32> to vector<2x32xf32>
    %66 = arith.negf %65 : vector<2x32xf32>
    %67 = math.exp %66 : vector<2x32xf32>
    %cst_23 = arith.constant 1.000000e+00 : f32
    %68 = vector.broadcast %cst_23 : f32 to vector<2x32xf32>
    %69 = arith.addf %68, %67 : vector<2x32xf32>
    %70 = arith.divf %68, %69 : vector<2x32xf32>
    %71 = arith.mulf %62, %34 : vector<2x32xf32>
    %72 = arith.mulf %56, %64 : vector<2x32xf32>
    %73 = arith.addf %71, %72 : vector<2x32xf32>
    %74 = math.tanh %73 : vector<2x32xf32>
    %75 = arith.mulf %70, %74 : vector<2x32xf32>
    %c1_24 = arith.constant 1 : index
    %c0_25 = arith.constant 0 : index
    %c0_26 = arith.constant 0 : index
    %76 = vector.load %arg3[%c1_24, %c0_25, %c0_26] : memref<8x2x32xbf16, #tpu.memory_space<vmem>>, vector<1x2x32xbf16>
    %77 = vector.shape_cast %76 : vector<1x2x32xbf16> to vector<2x32xbf16>
    %78 = arith.extf %77 : vector<2x32xbf16> to vector<2x32xf32>
    %79 = arith.addf %75, %78 : vector<2x32xf32>
    %80 = arith.truncf %79 : vector<2x32xf32> to vector<2x32xbf16>
    %c1_27 = arith.constant 1 : index
    %c0_28 = arith.constant 0 : index
    %c0_29 = arith.constant 0 : index
    %81 = vector.load %arg5[%c1_27, %c0_28, %c0_29] : memref<8x2x32xbf16, #tpu.memory_space<vmem>>, vector<1x2x32xbf16>
    %82 = vector.shape_cast %81 : vector<1x2x32xbf16> to vector<2x32xbf16>
    %83 = vector.shape_cast %80 : vector<2x32xbf16> to vector<1x2x32xbf16>
    tpu.vector_store %arg5[%c1_27, %c0_28, %c0_29], %83 {strides = array<i32>} : memref<8x2x32xbf16, #tpu.memory_space<vmem>>, vector<1x2x32xbf16>,
    %c2 = arith.constant 2 : index
    %c0_30 = arith.constant 0 : index
    %c0_31 = arith.constant 0 : index
    %84 = vector.load %arg2[%c2, %c0_30, %c0_31] : memref<8x2x128xbf16, #tpu.memory_space<vmem>>, vector<1x2x128xbf16>
    %85 = vector.shape_cast %84 : vector<1x2x128xbf16> to vector<2x128xbf16>
    %86 = arith.extf %85 : vector<2x128xbf16> to vector<2x128xf32>
    %87 = arith.truncf %75 : vector<2x32xf32> to vector<2x32xbf16>
    %cst_32 = arith.constant dense<0.000000e+00> : vector<2x128xf32>
    %88 = tpu.matmul %87, %3, %cst_32 {dimension_numbers = #tpu.dot_dimension_numbers<[1], [0], [0], [1], [0, 0, 1, 1], [], []>} : vector<2x32xbf16>, vector<32x128xbf16>, vector<2x128xf32> -> vector<2x128xf32>
    %89 = arith.addf %86, %88 : vector<2x128xf32>
    %90 = vector.extract_strided_slice %89 {offsets = [0, 0], sizes = [2, 32], strides = [1, 1]} : vector<2x128xf32> to vector<2x32xf32>
    %91 = arith.negf %90 : vector<2x32xf32>
    %92 = math.exp %91 : vector<2x32xf32>
    %cst_33 = arith.constant 1.000000e+00 : f32
    %93 = vector.broadcast %cst_33 : f32 to vector<2x32xf32>
    %94 = arith.addf %93, %92 : vector<2x32xf32>
    %95 = arith.divf %93, %94 : vector<2x32xf32>
    %96 = vector.extract_strided_slice %89 {offsets = [0, 32], sizes = [2, 32], strides = [1, 1]} : vector<2x128xf32> to vector<2x32xf32>
    %97 = arith.negf %96 : vector<2x32xf32>
    %98 = math.exp %97 : vector<2x32xf32>
    %cst_34 = arith.constant 1.000000e+00 : f32
    %99 = vector.broadcast %cst_34 : f32 to vector<2x32xf32>
    %100 = arith.addf %99, %98 : vector<2x32xf32>
    %101 = arith.divf %99, %100 : vector<2x32xf32>
    %102 = vector.extract_strided_slice %89 {offsets = [0, 64], sizes = [2, 32], strides = [1, 1]} : vector<2x128xf32> to vector<2x32xf32>
    %103 = math.tanh %102 : vector<2x32xf32>
    %104 = vector.extract_strided_slice %89 {offsets = [0, 96], sizes = [2, 32], strides = [1, 1]} : vector<2x128xf32> to vector<2x32xf32>
    %105 = arith.negf %104 : vector<2x32xf32>
    %106 = math.exp %105 : vector<2x32xf32>
    %cst_35 = arith.constant 1.000000e+00 : f32
    %107 = vector.broadcast %cst_35 : f32 to vector<2x32xf32>
    %108 = arith.addf %107, %106 : vector<2x32xf32>
    %109 = arith.divf %107, %108 : vector<2x32xf32>
    %110 = arith.mulf %101, %73 : vector<2x32xf32>
    %111 = arith.mulf %95, %103 : vector<2x32xf32>
    %112 = arith.addf %110, %111 : vector<2x32xf32>
    %113 = math.tanh %112 : vector<2x32xf32>
    %114 = arith.mulf %109, %113 : vector<2x32xf32>
    %c2_36 = arith.constant 2 : index
    %c0_37 = arith.constant 0 : index
    %c0_38 = arith.constant 0 : index
    %115 = vector.load %arg3[%c2_36, %c0_37, %c0_38] : memref<8x2x32xbf16, #tpu.memory_space<vmem>>, vector<1x2x32xbf16>
    %116 = vector.shape_cast %115 : vector<1x2x32xbf16> to vector<2x32xbf16>
    %117 = arith.extf %116 : vector<2x32xbf16> to vector<2x32xf32>
    %118 = arith.addf %114, %117 : vector<2x32xf32>
    %119 = arith.truncf %118 : vector<2x32xf32> to vector<2x32xbf16>
    %c2_39 = arith.constant 2 : index
    %c0_40 = arith.constant 0 : index
    %c0_41 = arith.constant 0 : index
    %120 = vector.load %arg5[%c2_39, %c0_40, %c0_41] : memref<8x2x32xbf16, #tpu.memory_space<vmem>>, vector<1x2x32xbf16>
    %121 = vector.shape_cast %120 : vector<1x2x32xbf16> to vector<2x32xbf16>
    %122 = vector.shape_cast %119 : vector<2x32xbf16> to vector<1x2x32xbf16>
    tpu.vector_store %arg5[%c2_39, %c0_40, %c0_41], %122 {strides = array<i32>} : memref<8x2x32xbf16, #tpu.memory_space<vmem>>, vector<1x2x32xbf16>,
    %c3 = arith.constant 3 : index
    %c0_42 = arith.constant 0 : index
    %c0_43 = arith.constant 0 : index
    %123 = vector.load %arg2[%c3, %c0_42, %c0_43] : memref<8x2x128xbf16, #tpu.memory_space<vmem>>, vector<1x2x128xbf16>
    %124 = vector.shape_cast %123 : vector<1x2x128xbf16> to vector<2x128xbf16>
    %125 = arith.extf %124 : vector<2x128xbf16> to vector<2x128xf32>
    %126 = arith.truncf %114 : vector<2x32xf32> to vector<2x32xbf16>
    %cst_44 = arith.constant dense<0.000000e+00> : vector<2x128xf32>
    %127 = tpu.matmul %126, %3, %cst_44 {dimension_numbers = #tpu.dot_dimension_numbers<[1], [0], [0], [1], [0, 0, 1, 1], [], []>} : vector<2x32xbf16>, vector<32x128xbf16>, vector<2x128xf32> -> vector<2x128xf32>
    %128 = arith.addf %125, %127 : vector<2x128xf32>
    %129 = vector.extract_strided_slice %128 {offsets = [0, 0], sizes = [2, 32], strides = [1, 1]} : vector<2x128xf32> to vector<2x32xf32>
    %130 = arith.negf %129 : vector<2x32xf32>
    %131 = math.exp %130 : vector<2x32xf32>
    %cst_45 = arith.constant 1.000000e+00 : f32
    %132 = vector.broadcast %cst_45 : f32 to vector<2x32xf32>
    %133 = arith.addf %132, %131 : vector<2x32xf32>
    %134 = arith.divf %132, %133 : vector<2x32xf32>
    %135 = vector.extract_strided_slice %128 {offsets = [0, 32], sizes = [2, 32], strides = [1, 1]} : vector<2x128xf32> to vector<2x32xf32>
    %136 = arith.negf %135 : vector<2x32xf32>
    %137 = math.exp %136 : vector<2x32xf32>
    %cst_46 = arith.constant 1.000000e+00 : f32
    %138 = vector.broadcast %cst_46 : f32 to vector<2x32xf32>
    %139 = arith.addf %138, %137 : vector<2x32xf32>
    %140 = arith.divf %138, %139 : vector<2x32xf32>
    %141 = vector.extract_strided_slice %128 {offsets = [0, 64], sizes = [2, 32], strides = [1, 1]} : vector<2x128xf32> to vector<2x32xf32>
    %142 = math.tanh %141 : vector<2x32xf32>
    %143 = vector.extract_strided_slice %128 {offsets = [0, 96], sizes = [2, 32], strides = [1, 1]} : vector<2x128xf32> to vector<2x32xf32>
    %144 = arith.negf %143 : vector<2x32xf32>
    %145 = math.exp %144 : vector<2x32xf32>
    %cst_47 = arith.constant 1.000000e+00 : f32
    %146 = vector.broadcast %cst_47 : f32 to vector<2x32xf32>
    %147 = arith.addf %146, %145 : vector<2x32xf32>
    %148 = arith.divf %146, %147 : vector<2x32xf32>
    %149 = arith.mulf %140, %112 : vector<2x32xf32>
    %150 = arith.mulf %134, %142 : vector<2x32xf32>
    %151 = arith.addf %149, %150 : vector<2x32xf32>
    %152 = math.tanh %151 : vector<2x32xf32>
    %153 = arith.mulf %148, %152 : vector<2x32xf32>
    %c3_48 = arith.constant 3 : index
    %c0_49 = arith.constant 0 : index
    %c0_50 = arith.constant 0 : index
    %154 = vector.load %arg3[%c3_48, %c0_49, %c0_50] : memref<8x2x32xbf16, #tpu.memory_space<vmem>>, vector<1x2x32xbf16>
    %155 = vector.shape_cast %154 : vector<1x2x32xbf16> to vector<2x32xbf16>
    %156 = arith.extf %155 : vector<2x32xbf16> to vector<2x32xf32>
    %157 = arith.addf %153, %156 : vector<2x32xf32>
    %158 = arith.truncf %157 : vector<2x32xf32> to vector<2x32xbf16>
    %c3_51 = arith.constant 3 : index
    %c0_52 = arith.constant 0 : index
    %c0_53 = arith.constant 0 : index
    %159 = vector.load %arg5[%c3_51, %c0_52, %c0_53] : memref<8x2x32xbf16, #tpu.memory_space<vmem>>, vector<1x2x32xbf16>
    %160 = vector.shape_cast %159 : vector<1x2x32xbf16> to vector<2x32xbf16>
    %161 = vector.shape_cast %158 : vector<2x32xbf16> to vector<1x2x32xbf16>
    tpu.vector_store %arg5[%c3_51, %c0_52, %c0_53], %161 {strides = array<i32>} : memref<8x2x32xbf16, #tpu.memory_space<vmem>>, vector<1x2x32xbf16>,
    %c4 = arith.constant 4 : index
    %c0_54 = arith.constant 0 : index
    %c0_55 = arith.constant 0 : index
    %162 = vector.load %arg2[%c4, %c0_54, %c0_55] : memref<8x2x128xbf16, #tpu.memory_space<vmem>>, vector<1x2x128xbf16>
    %163 = vector.shape_cast %162 : vector<1x2x128xbf16> to vector<2x128xbf16>
    %164 = arith.extf %163 : vector<2x128xbf16> to vector<2x128xf32>
    %165 = arith.truncf %153 : vector<2x32xf32> to vector<2x32xbf16>
    %cst_56 = arith.constant dense<0.000000e+00> : vector<2x128xf32>
    %166 = tpu.matmul %165, %3, %cst_56 {dimension_numbers = #tpu.dot_dimension_numbers<[1], [0], [0], [1], [0, 0, 1, 1], [], []>} : vector<2x32xbf16>, vector<32x128xbf16>, vector<2x128xf32> -> vector<2x128xf32>
    %167 = arith.addf %164, %166 : vector<2x128xf32>
    %168 = vector.extract_strided_slice %167 {offsets = [0, 0], sizes = [2, 32], strides = [1, 1]} : vector<2x128xf32> to vector<2x32xf32>
    %169 = arith.negf %168 : vector<2x32xf32>
    %170 = math.exp %169 : vector<2x32xf32>
    %cst_57 = arith.constant 1.000000e+00 : f32
    %171 = vector.broadcast %cst_57 : f32 to vector<2x32xf32>
    %172 = arith.addf %171, %170 : vector<2x32xf32>
    %173 = arith.divf %171, %172 : vector<2x32xf32>
    %174 = vector.extract_strided_slice %167 {offsets = [0, 32], sizes = [2, 32], strides = [1, 1]} : vector<2x128xf32> to vector<2x32xf32>
    %175 = arith.negf %174 : vector<2x32xf32>
    %176 = math.exp %175 : vector<2x32xf32>
    %cst_58 = arith.constant 1.000000e+00 : f32
    %177 = vector.broadcast %cst_58 : f32 to vector<2x32xf32>
    %178 = arith.addf %177, %176 : vector<2x32xf32>
    %179 = arith.divf %177, %178 : vector<2x32xf32>
    %180 = vector.extract_strided_slice %167 {offsets = [0, 64], sizes = [2, 32], strides = [1, 1]} : vector<2x128xf32> to vector<2x32xf32>
    %181 = math.tanh %180 : vector<2x32xf32>
    %182 = vector.extract_strided_slice %167 {offsets = [0, 96], sizes = [2, 32], strides = [1, 1]} : vector<2x128xf32> to vector<2x32xf32>
    %183 = arith.negf %182 : vector<2x32xf32>
    %184 = math.exp %183 : vector<2x32xf32>
    %cst_59 = arith.constant 1.000000e+00 : f32
    %185 = vector.broadcast %cst_59 : f32 to vector<2x32xf32>
    %186 = arith.addf %185, %184 : vector<2x32xf32>
    %187 = arith.divf %185, %186 : vector<2x32xf32>
    %188 = arith.mulf %179, %151 : vector<2x32xf32>
    %189 = arith.mulf %173, %181 : vector<2x32xf32>
    %190 = arith.addf %188, %189 : vector<2x32xf32>
    %191 = math.tanh %190 : vector<2x32xf32>
    %192 = arith.mulf %187, %191 : vector<2x32xf32>
    %c4_60 = arith.constant 4 : index
    %c0_61 = arith.constant 0 : index
    %c0_62 = arith.constant 0 : index
    %193 = vector.load %arg3[%c4_60, %c0_61, %c0_62] : memref<8x2x32xbf16, #tpu.memory_space<vmem>>, vector<1x2x32xbf16>
    %194 = vector.shape_cast %193 : vector<1x2x32xbf16> to vector<2x32xbf16>
    %195 = arith.extf %194 : vector<2x32xbf16> to vector<2x32xf32>
    %196 = arith.addf %192, %195 : vector<2x32xf32>
    %197 = arith.truncf %196 : vector<2x32xf32> to vector<2x32xbf16>
    %c4_63 = arith.constant 4 : index
    %c0_64 = arith.constant 0 : index
    %c0_65 = arith.constant 0 : index
    %198 = vector.load %arg5[%c4_63, %c0_64, %c0_65] : memref<8x2x32xbf16, #tpu.memory_space<vmem>>, vector<1x2x32xbf16>
    %199 = vector.shape_cast %198 : vector<1x2x32xbf16> to vector<2x32xbf16>
    %200 = vector.shape_cast %197 : vector<2x32xbf16> to vector<1x2x32xbf16>
    tpu.vector_store %arg5[%c4_63, %c0_64, %c0_65], %200 {strides = array<i32>} : memref<8x2x32xbf16, #tpu.memory_space<vmem>>, vector<1x2x32xbf16>,
    %c5 = arith.constant 5 : index
    %c0_66 = arith.constant 0 : index
    %c0_67 = arith.constant 0 : index
    %201 = vector.load %arg2[%c5, %c0_66, %c0_67] : memref<8x2x128xbf16, #tpu.memory_space<vmem>>, vector<1x2x128xbf16>
    %202 = vector.shape_cast %201 : vector<1x2x128xbf16> to vector<2x128xbf16>
    %203 = arith.extf %202 : vector<2x128xbf16> to vector<2x128xf32>
    %204 = arith.truncf %192 : vector<2x32xf32> to vector<2x32xbf16>
    %cst_68 = arith.constant dense<0.000000e+00> : vector<2x128xf32>
    %205 = tpu.matmul %204, %3, %cst_68 {dimension_numbers = #tpu.dot_dimension_numbers<[1], [0], [0], [1], [0, 0, 1, 1], [], []>} : vector<2x32xbf16>, vector<32x128xbf16>, vector<2x128xf32> -> vector<2x128xf32>
    %206 = arith.addf %203, %205 : vector<2x128xf32>
    %207 = vector.extract_strided_slice %206 {offsets = [0, 0], sizes = [2, 32], strides = [1, 1]} : vector<2x128xf32> to vector<2x32xf32>
    %208 = arith.negf %207 : vector<2x32xf32>
    %209 = math.exp %208 : vector<2x32xf32>
    %cst_69 = arith.constant 1.000000e+00 : f32
    %210 = vector.broadcast %cst_69 : f32 to vector<2x32xf32>
    %211 = arith.addf %210, %209 : vector<2x32xf32>
    %212 = arith.divf %210, %211 : vector<2x32xf32>
    %213 = vector.extract_strided_slice %206 {offsets = [0, 32], sizes = [2, 32], strides = [1, 1]} : vector<2x128xf32> to vector<2x32xf32>
    %214 = arith.negf %213 : vector<2x32xf32>
    %215 = math.exp %214 : vector<2x32xf32>
    %cst_70 = arith.constant 1.000000e+00 : f32
    %216 = vector.broadcast %cst_70 : f32 to vector<2x32xf32>
    %217 = arith.addf %216, %215 : vector<2x32xf32>
    %218 = arith.divf %216, %217 : vector<2x32xf32>
    %219 = vector.extract_strided_slice %206 {offsets = [0, 64], sizes = [2, 32], strides = [1, 1]} : vector<2x128xf32> to vector<2x32xf32>
    %220 = math.tanh %219 : vector<2x32xf32>
    %221 = vector.extract_strided_slice %206 {offsets = [0, 96], sizes = [2, 32], strides = [1, 1]} : vector<2x128xf32> to vector<2x32xf32>
    %222 = arith.negf %221 : vector<2x32xf32>
    %223 = math.exp %222 : vector<2x32xf32>
    %cst_71 = arith.constant 1.000000e+00 : f32
    %224 = vector.broadcast %cst_71 : f32 to vector<2x32xf32>
    %225 = arith.addf %224, %223 : vector<2x32xf32>
    %226 = arith.divf %224, %225 : vector<2x32xf32>
    %227 = arith.mulf %218, %190 : vector<2x32xf32>
    %228 = arith.mulf %212, %220 : vector<2x32xf32>
    %229 = arith.addf %227, %228 : vector<2x32xf32>
    %230 = math.tanh %229 : vector<2x32xf32>
    %231 = arith.mulf %226, %230 : vector<2x32xf32>
    %c5_72 = arith.constant 5 : index
    %c0_73 = arith.constant 0 : index
    %c0_74 = arith.constant 0 : index
    %232 = vector.load %arg3[%c5_72, %c0_73, %c0_74] : memref<8x2x32xbf16, #tpu.memory_space<vmem>>, vector<1x2x32xbf16>
    %233 = vector.shape_cast %232 : vector<1x2x32xbf16> to vector<2x32xbf16>
    %234 = arith.extf %233 : vector<2x32xbf16> to vector<2x32xf32>
    %235 = arith.addf %231, %234 : vector<2x32xf32>
    %236 = arith.truncf %235 : vector<2x32xf32> to vector<2x32xbf16>
    %c5_75 = arith.constant 5 : index
    %c0_76 = arith.constant 0 : index
    %c0_77 = arith.constant 0 : index
    %237 = vector.load %arg5[%c5_75, %c0_76, %c0_77] : memref<8x2x32xbf16, #tpu.memory_space<vmem>>, vector<1x2x32xbf16>
    %238 = vector.shape_cast %237 : vector<1x2x32xbf16> to vector<2x32xbf16>
    %239 = vector.shape_cast %236 : vector<2x32xbf16> to vector<1x2x32xbf16>
    tpu.vector_store %arg5[%c5_75, %c0_76, %c0_77], %239 {strides = array<i32>} : memref<8x2x32xbf16, #tpu.memory_space<vmem>>, vector<1x2x32xbf16>,
    %c6 = arith.constant 6 : index
    %c0_78 = arith.constant 0 : index
    %c0_79 = arith.constant 0 : index
    %240 = vector.load %arg2[%c6, %c0_78, %c0_79] : memref<8x2x128xbf16, #tpu.memory_space<vmem>>, vector<1x2x128xbf16>
    %241 = vector.shape_cast %240 : vector<1x2x128xbf16> to vector<2x128xbf16>
    %242 = arith.extf %241 : vector<2x128xbf16> to vector<2x128xf32>
    %243 = arith.truncf %231 : vector<2x32xf32> to vector<2x32xbf16>
    %cst_80 = arith.constant dense<0.000000e+00> : vector<2x128xf32>
    %244 = tpu.matmul %243, %3, %cst_80 {dimension_numbers = #tpu.dot_dimension_numbers<[1], [0], [0], [1], [0, 0, 1, 1], [], []>} : vector<2x32xbf16>, vector<32x128xbf16>, vector<2x128xf32> -> vector<2x128xf32>
    %245 = arith.addf %242, %244 : vector<2x128xf32>
    %246 = vector.extract_strided_slice %245 {offsets = [0, 0], sizes = [2, 32], strides = [1, 1]} : vector<2x128xf32> to vector<2x32xf32>
    %247 = arith.negf %246 : vector<2x32xf32>
    %248 = math.exp %247 : vector<2x32xf32>
    %cst_81 = arith.constant 1.000000e+00 : f32
    %249 = vector.broadcast %cst_81 : f32 to vector<2x32xf32>
    %250 = arith.addf %249, %248 : vector<2x32xf32>
    %251 = arith.divf %249, %250 : vector<2x32xf32>
    %252 = vector.extract_strided_slice %245 {offsets = [0, 32], sizes = [2, 32], strides = [1, 1]} : vector<2x128xf32> to vector<2x32xf32>
    %253 = arith.negf %252 : vector<2x32xf32>
    %254 = math.exp %253 : vector<2x32xf32>
    %cst_82 = arith.constant 1.000000e+00 : f32
    %255 = vector.broadcast %cst_82 : f32 to vector<2x32xf32>
    %256 = arith.addf %255, %254 : vector<2x32xf32>
    %257 = arith.divf %255, %256 : vector<2x32xf32>
    %258 = vector.extract_strided_slice %245 {offsets = [0, 64], sizes = [2, 32], strides = [1, 1]} : vector<2x128xf32> to vector<2x32xf32>
    %259 = math.tanh %258 : vector<2x32xf32>
    %260 = vector.extract_strided_slice %245 {offsets = [0, 96], sizes = [2, 32], strides = [1, 1]} : vector<2x128xf32> to vector<2x32xf32>
    %261 = arith.negf %260 : vector<2x32xf32>
    %262 = math.exp %261 : vector<2x32xf32>
    %cst_83 = arith.constant 1.000000e+00 : f32
    %263 = vector.broadcast %cst_83 : f32 to vector<2x32xf32>
    %264 = arith.addf %263, %262 : vector<2x32xf32>
    %265 = arith.divf %263, %264 : vector<2x32xf32>
    %266 = arith.mulf %257, %229 : vector<2x32xf32>
    %267 = arith.mulf %251, %259 : vector<2x32xf32>
    %268 = arith.addf %266, %267 : vector<2x32xf32>
    %269 = math.tanh %268 : vector<2x32xf32>
    %270 = arith.mulf %265, %269 : vector<2x32xf32>
    %c6_84 = arith.constant 6 : index
    %c0_85 = arith.constant 0 : index
    %c0_86 = arith.constant 0 : index
    %271 = vector.load %arg3[%c6_84, %c0_85, %c0_86] : memref<8x2x32xbf16, #tpu.memory_space<vmem>>, vector<1x2x32xbf16>
    %272 = vector.shape_cast %271 : vector<1x2x32xbf16> to vector<2x32xbf16>
    %273 = arith.extf %272 : vector<2x32xbf16> to vector<2x32xf32>
    %274 = arith.addf %270, %273 : vector<2x32xf32>
    %275 = arith.truncf %274 : vector<2x32xf32> to vector<2x32xbf16>
    %c6_87 = arith.constant 6 : index
    %c0_88 = arith.constant 0 : index
    %c0_89 = arith.constant 0 : index
    %276 = vector.load %arg5[%c6_87, %c0_88, %c0_89] : memref<8x2x32xbf16, #tpu.memory_space<vmem>>, vector<1x2x32xbf16>
    %277 = vector.shape_cast %276 : vector<1x2x32xbf16> to vector<2x32xbf16>
    %278 = vector.shape_cast %275 : vector<2x32xbf16> to vector<1x2x32xbf16>
    tpu.vector_store %arg5[%c6_87, %c0_88, %c0_89], %278 {strides = array<i32>} : memref<8x2x32xbf16, #tpu.memory_space<vmem>>, vector<1x2x32xbf16>,
    %c7 = arith.constant 7 : index
    %c0_90 = arith.constant 0 : index
    %c0_91 = arith.constant 0 : index
    %279 = vector.load %arg2[%c7, %c0_90, %c0_91] : memref<8x2x128xbf16, #tpu.memory_space<vmem>>, vector<1x2x128xbf16>
    %280 = vector.shape_cast %279 : vector<1x2x128xbf16> to vector<2x128xbf16>
    %281 = arith.extf %280 : vector<2x128xbf16> to vector<2x128xf32>
    %282 = arith.truncf %270 : vector<2x32xf32> to vector<2x32xbf16>
    %cst_92 = arith.constant dense<0.000000e+00> : vector<2x128xf32>
    %283 = tpu.matmul %282, %3, %cst_92 {dimension_numbers = #tpu.dot_dimension_numbers<[1], [0], [0], [1], [0, 0, 1, 1], [], []>} : vector<2x32xbf16>, vector<32x128xbf16>, vector<2x128xf32> -> vector<2x128xf32>
    %284 = arith.addf %281, %283 : vector<2x128xf32>
    %285 = vector.extract_strided_slice %284 {offsets = [0, 0], sizes = [2, 32], strides = [1, 1]} : vector<2x128xf32> to vector<2x32xf32>
    %286 = arith.negf %285 : vector<2x32xf32>
    %287 = math.exp %286 : vector<2x32xf32>
    %cst_93 = arith.constant 1.000000e+00 : f32
    %288 = vector.broadcast %cst_93 : f32 to vector<2x32xf32>
    %289 = arith.addf %288, %287 : vector<2x32xf32>
    %290 = arith.divf %288, %289 : vector<2x32xf32>
    %291 = vector.extract_strided_slice %284 {offsets = [0, 32], sizes = [2, 32], strides = [1, 1]} : vector<2x128xf32> to vector<2x32xf32>
    %292 = arith.negf %291 : vector<2x32xf32>
    %293 = math.exp %292 : vector<2x32xf32>
    %cst_94 = arith.constant 1.000000e+00 : f32
    %294 = vector.broadcast %cst_94 : f32 to vector<2x32xf32>
    %295 = arith.addf %294, %293 : vector<2x32xf32>
    %296 = arith.divf %294, %295 : vector<2x32xf32>
    %297 = vector.extract_strided_slice %284 {offsets = [0, 64], sizes = [2, 32], strides = [1, 1]} : vector<2x128xf32> to vector<2x32xf32>
    %298 = math.tanh %297 : vector<2x32xf32>
    %299 = vector.extract_strided_slice %284 {offsets = [0, 96], sizes = [2, 32], strides = [1, 1]} : vector<2x128xf32> to vector<2x32xf32>
    %300 = arith.negf %299 : vector<2x32xf32>
    %301 = math.exp %300 : vector<2x32xf32>
    %cst_95 = arith.constant 1.000000e+00 : f32
    %302 = vector.broadcast %cst_95 : f32 to vector<2x32xf32>
    %303 = arith.addf %302, %301 : vector<2x32xf32>
    %304 = arith.divf %302, %303 : vector<2x32xf32>
    %305 = arith.mulf %296, %268 : vector<2x32xf32>
    %306 = arith.mulf %290, %298 : vector<2x32xf32>
    %307 = arith.addf %305, %306 : vector<2x32xf32>
    %308 = math.tanh %307 : vector<2x32xf32>
    %309 = arith.mulf %304, %308 : vector<2x32xf32>
    %c7_96 = arith.constant 7 : index
    %c0_97 = arith.constant 0 : index
    %c0_98 = arith.constant 0 : index
    %310 = vector.load %arg3[%c7_96, %c0_97, %c0_98] : memref<8x2x32xbf16, #tpu.memory_space<vmem>>, vector<1x2x32xbf16>
    %311 = vector.shape_cast %310 : vector<1x2x32xbf16> to vector<2x32xbf16>
    %312 = arith.extf %311 : vector<2x32xbf16> to vector<2x32xf32>
    %313 = arith.addf %309, %312 : vector<2x32xf32>
    %314 = arith.truncf %313 : vector<2x32xf32> to vector<2x32xbf16>
    %c7_99 = arith.constant 7 : index
    %c0_100 = arith.constant 0 : index
    %c0_101 = arith.constant 0 : index
    %315 = vector.load %arg5[%c7_99, %c0_100, %c0_101] : memref<8x2x32xbf16, #tpu.memory_space<vmem>>, vector<1x2x32xbf16>
    %316 = vector.shape_cast %315 : vector<1x2x32xbf16> to vector<2x32xbf16>
    %317 = vector.shape_cast %314 : vector<2x32xbf16> to vector<1x2x32xbf16>
    tpu.vector_store %arg5[%c7_99, %c0_100, %c0_101], %317 {strides = array<i32>} : memref<8x2x32xbf16, #tpu.memory_space<vmem>>, vector<1x2x32xbf16>,
    %c0_102 = arith.constant 0 : index
    %c0_103 = arith.constant 0 : index
    %318 = vector.load %arg6[%c0_102, %c0_103] : memref<2x32xf32, #tpu.memory_space<vmem>>, vector<2x32xf32>
    tpu.vector_store %arg6[%c0_102, %c0_103], %309 {strides = array<i32>} : memref<2x32xf32, #tpu.memory_space<vmem>>, vector<2x32xf32>,
    %c0_104 = arith.constant 0 : index
    %c0_105 = arith.constant 0 : index
    %319 = vector.load %arg7[%c0_104, %c0_105] : memref<2x32xf32, #tpu.memory_space<vmem>>, vector<2x32xf32>
    tpu.vector_store %arg7[%c0_104, %c0_105], %307 {strides = array<i32>} : memref<2x32xf32, #tpu.memory_space<vmem>>, vector<2x32xf32>,
    return
  }
  func.func @transform_0(%arg0: i32, %arg1: i32) -> (i32, i32, i32) {
    %c0_i32 = arith.constant 0 : i32
    %c0_i32_0 = arith.constant 0 : i32
    return %arg1, %arg0, %c0_i32 : i32, i32, i32
  }
  func.func @transform_1(%arg0: i32, %arg1: i32) -> (i32, i32, i32) {
    %c0_i32 = arith.constant 0 : i32
    %c0_i32_0 = arith.constant 0 : i32
    return %arg1, %arg0, %c0_i32 : i32, i32, i32
  }
  func.func @transform_2(%arg0: i32, %arg1: i32) -> (i32, i32) {
    %c0_i32 = arith.constant 0 : i32
    %c0_i32_0 = arith.constant 0 : i32
    %c0_i32_1 = arith.constant 0 : i32
    return %c0_i32, %c0_i32_0 : i32, i32
  }
  func.func @transform_3(%arg0: i32, %arg1: i32) -> (i32, i32, i32) {
    %c0_i32 = arith.constant 0 : i32
    %c0_i32_0 = arith.constant 0 : i32
    return %arg1, %arg0, %c0_i32 : i32, i32, i32
  }
}

module attributes {stable_mosaic.version = 11 : i64} {
  func.func @_gemm_kernel(%arg0: i32, %arg1: i32, %arg2: i32, %arg3: memref<16x128xbf16, #tpu.memory_space<vmem>>, %arg4: memref<128x128xbf16, #tpu.memory_space<vmem>>, %arg5: memref<1x128xf32, #tpu.memory_space<vmem>>, %arg6: memref<16x128xf32, #tpu.memory_space<vmem>>, %arg7: memref<16x128xf32, #tpu.memory_space<vmem>>) attributes {dimension_semantics = [#tpu.dimension_semantics<parallel>, #tpu.dimension_semantics<parallel>, #tpu.dimension_semantics<arbitrary>], iteration_bounds = array<i64: 1, 1, 1>, scalar_prefetch = 0 : i64, scratch_operands = 1 : i64, tpu.core_type = #tpu.core_type<tc>, window_params = [{transform_indices = @transform_0, window_bounds = array<i64: 16, 128>}, {transform_indices = @transform_1, window_bounds = array<i64: 128, 128>}, {transform_indices = @transform_2, window_bounds = array<i64: 1, 128>}, {transform_indices = @transform_3, window_bounds = array<i64: 16, 128>}]} {
    %c0_i32 = arith.constant 0 : i32
    %0 = arith.cmpi eq, %arg2, %c0_i32 : i32
    %1 = arith.extui %0 : i1 to i32
    %c0_i32_0 = arith.constant 0 : i32
    %2 = arith.cmpi ne, %1, %c0_i32_0 : i32
    scf.if %2 {
      %cst_10 = arith.constant 0.000000e+00 : f32
      %12 = vector.broadcast %cst_10 : f32 to vector<16x128xf32>
      %c0_11 = arith.constant 0 : index
      %c0_12 = arith.constant 0 : index
      %13 = vector.load %arg7[%c0_11, %c0_12] : memref<16x128xf32, #tpu.memory_space<vmem>>, vector<16x128xf32>
      tpu.vector_store %arg7[%c0_11, %c0_12], %12 {strides = array<i32>} : memref<16x128xf32, #tpu.memory_space<vmem>>, vector<16x128xf32>,
    } else {
    }
    %c0 = arith.constant 0 : index
    %c0_1 = arith.constant 0 : index
    %3 = vector.load %arg7[%c0, %c0_1] : memref<16x128xf32, #tpu.memory_space<vmem>>, vector<16x128xf32>
    %c0_2 = arith.constant 0 : index
    %c0_3 = arith.constant 0 : index
    %4 = vector.load %arg3[%c0_2, %c0_3] : memref<16x128xbf16, #tpu.memory_space<vmem>>, vector<16x128xbf16>
    %c0_4 = arith.constant 0 : index
    %c0_5 = arith.constant 0 : index
    %5 = vector.load %arg4[%c0_4, %c0_5] : memref<128x128xbf16, #tpu.memory_space<vmem>>, vector<128x128xbf16>
    %cst = arith.constant dense<0.000000e+00> : vector<16x128xf32>
    %6 = tpu.matmul %4, %5, %cst {dimension_numbers = #tpu.dot_dimension_numbers<[1], [0], [0], [1], [0, 0, 1, 1], [], []>} : vector<16x128xbf16>, vector<128x128xbf16>, vector<16x128xf32> -> vector<16x128xf32>
    %7 = arith.addf %3, %6 : vector<16x128xf32>
    %c0_6 = arith.constant 0 : index
    %c0_7 = arith.constant 0 : index
    %8 = vector.load %arg7[%c0_6, %c0_7] : memref<16x128xf32, #tpu.memory_space<vmem>>, vector<16x128xf32>
    tpu.vector_store %arg7[%c0_6, %c0_7], %7 {strides = array<i32>} : memref<16x128xf32, #tpu.memory_space<vmem>>, vector<16x128xf32>,
    %c0_i32_8 = arith.constant 0 : i32
    %9 = arith.cmpi eq, %arg2, %c0_i32_8 : i32
    %10 = arith.extui %9 : i1 to i32
    %c0_i32_9 = arith.constant 0 : i32
    %11 = arith.cmpi ne, %10, %c0_i32_9 : i32
    scf.if %11 {
      %c0_10 = arith.constant 0 : index
      %c0_11 = arith.constant 0 : index
      %12 = vector.load %arg7[%c0_10, %c0_11] : memref<16x128xf32, #tpu.memory_space<vmem>>, vector<16x128xf32>
      %c0_12 = arith.constant 0 : index
      %c0_13 = arith.constant 0 : index
      %13 = vector.load %arg5[%c0_12, %c0_13] : memref<1x128xf32, #tpu.memory_space<vmem>>, vector<1x128xf32>
      %14 = vector.broadcast %13 : vector<1x128xf32> to vector<16x128xf32>
      %15 = arith.addf %12, %14 : vector<16x128xf32>
      %c0_14 = arith.constant 0 : index
      %c0_15 = arith.constant 0 : index
      %16 = vector.load %arg6[%c0_14, %c0_15] : memref<16x128xf32, #tpu.memory_space<vmem>>, vector<16x128xf32>
      tpu.vector_store %arg6[%c0_14, %c0_15], %15 {strides = array<i32>} : memref<16x128xf32, #tpu.memory_space<vmem>>, vector<16x128xf32>,
    } else {
    }
    return
  }
  func.func @transform_0(%arg0: i32, %arg1: i32, %arg2: i32) -> (i32, i32) {
    %c0_i32 = arith.constant 0 : i32
    return %arg0, %arg2 : i32, i32
  }
  func.func @transform_1(%arg0: i32, %arg1: i32, %arg2: i32) -> (i32, i32) {
    %c0_i32 = arith.constant 0 : i32
    return %arg2, %arg1 : i32, i32
  }
  func.func @transform_2(%arg0: i32, %arg1: i32, %arg2: i32) -> (i32, i32) {
    %c0_i32 = arith.constant 0 : i32
    %c0_i32_0 = arith.constant 0 : i32
    return %c0_i32, %arg1 : i32, i32
  }
  func.func @transform_3(%arg0: i32, %arg1: i32, %arg2: i32) -> (i32, i32) {
    %c0_i32 = arith.constant 0 : i32
    return %arg0, %arg1 : i32, i32
  }
}

module attributes {stable_mosaic.version = 11 : i64} {
  func.func @_lstm_rec_kernel(%arg0: i32, %arg1: i32, %arg2: memref<6x2x128xbf16, #tpu.memory_space<vmem>>, %arg3: memref<32x128xbf16, #tpu.memory_space<vmem>>, %arg4: memref<6x2x32xbf16, #tpu.memory_space<vmem>>, %arg5: memref<2x32xf32, #tpu.memory_space<vmem>>, %arg6: memref<2x32xf32, #tpu.memory_space<vmem>>) attributes {dimension_semantics = [#tpu.dimension_semantics<parallel>, #tpu.dimension_semantics<arbitrary>], iteration_bounds = array<i64: 1, 1>, scalar_prefetch = 0 : i64, scratch_operands = 2 : i64, tpu.core_type = #tpu.core_type<tc>, window_params = [{transform_indices = @transform_0, window_bounds = array<i64: 6, 2, 128>}, {pipeline_mode = #tpu.pipeline_mode<synchronous>, transform_indices = @transform_1, window_bounds = array<i64: 32, 128>}, {transform_indices = @transform_2, window_bounds = array<i64: 6, 2, 32>}]} {
    %c0_i32 = arith.constant 0 : i32
    %0 = arith.cmpi eq, %arg1, %c0_i32 : i32
    %1 = arith.extui %0 : i1 to i32
    %c0_i32_0 = arith.constant 0 : i32
    %2 = arith.cmpi ne, %1, %c0_i32_0 : i32
    scf.if %2 {
      %cst_64 = arith.constant 0.000000e+00 : f32
      %218 = vector.broadcast %cst_64 : f32 to vector<2x32xf32>
      %c0_65 = arith.constant 0 : index
      %c0_66 = arith.constant 0 : index
      %219 = vector.load %arg5[%c0_65, %c0_66] : memref<2x32xf32, #tpu.memory_space<vmem>>, vector<2x32xf32>
      tpu.vector_store %arg5[%c0_65, %c0_66], %218 {strides = array<i32>} : memref<2x32xf32, #tpu.memory_space<vmem>>, vector<2x32xf32>,
      %cst_67 = arith.constant 0.000000e+00 : f32
      %220 = vector.broadcast %cst_67 : f32 to vector<2x32xf32>
      %c0_68 = arith.constant 0 : index
      %c0_69 = arith.constant 0 : index
      %221 = vector.load %arg6[%c0_68, %c0_69] : memref<2x32xf32, #tpu.memory_space<vmem>>, vector<2x32xf32>
      tpu.vector_store %arg6[%c0_68, %c0_69], %220 {strides = array<i32>} : memref<2x32xf32, #tpu.memory_space<vmem>>, vector<2x32xf32>,
    } else {
    }
    %c0 = arith.constant 0 : index
    %c0_1 = arith.constant 0 : index
    %3 = vector.load %arg3[%c0, %c0_1] : memref<32x128xbf16, #tpu.memory_space<vmem>>, vector<32x128xbf16>
    %c0_2 = arith.constant 0 : index
    %c0_3 = arith.constant 0 : index
    %4 = vector.load %arg5[%c0_2, %c0_3] : memref<2x32xf32, #tpu.memory_space<vmem>>, vector<2x32xf32>
    %c0_4 = arith.constant 0 : index
    %c0_5 = arith.constant 0 : index
    %5 = vector.load %arg6[%c0_4, %c0_5] : memref<2x32xf32, #tpu.memory_space<vmem>>, vector<2x32xf32>
    %c0_6 = arith.constant 0 : index
    %c0_7 = arith.constant 0 : index
    %c0_8 = arith.constant 0 : index
    %6 = vector.load %arg2[%c0_6, %c0_7, %c0_8] : memref<6x2x128xbf16, #tpu.memory_space<vmem>>, vector<1x2x128xbf16>
    %7 = vector.shape_cast %6 : vector<1x2x128xbf16> to vector<2x128xbf16>
    %8 = arith.extf %7 : vector<2x128xbf16> to vector<2x128xf32>
    %9 = arith.truncf %4 : vector<2x32xf32> to vector<2x32xbf16>
    %cst = arith.constant dense<0.000000e+00> : vector<2x128xf32>
    %10 = tpu.matmul %9, %3, %cst {dimension_numbers = #tpu.dot_dimension_numbers<[1], [0], [0], [1], [0, 0, 1, 1], [], []>} : vector<2x32xbf16>, vector<32x128xbf16>, vector<2x128xf32> -> vector<2x128xf32>
    %11 = arith.addf %8, %10 : vector<2x128xf32>
    %12 = vector.extract_strided_slice %11 {offsets = [0, 0], sizes = [2, 32], strides = [1, 1]} : vector<2x128xf32> to vector<2x32xf32>
    %13 = arith.negf %12 : vector<2x32xf32>
    %14 = math.exp %13 : vector<2x32xf32>
    %cst_9 = arith.constant 1.000000e+00 : f32
    %15 = vector.broadcast %cst_9 : f32 to vector<2x32xf32>
    %16 = arith.addf %15, %14 : vector<2x32xf32>
    %17 = arith.divf %15, %16 : vector<2x32xf32>
    %18 = vector.extract_strided_slice %11 {offsets = [0, 32], sizes = [2, 32], strides = [1, 1]} : vector<2x128xf32> to vector<2x32xf32>
    %19 = arith.negf %18 : vector<2x32xf32>
    %20 = math.exp %19 : vector<2x32xf32>
    %cst_10 = arith.constant 1.000000e+00 : f32
    %21 = vector.broadcast %cst_10 : f32 to vector<2x32xf32>
    %22 = arith.addf %21, %20 : vector<2x32xf32>
    %23 = arith.divf %21, %22 : vector<2x32xf32>
    %24 = vector.extract_strided_slice %11 {offsets = [0, 64], sizes = [2, 32], strides = [1, 1]} : vector<2x128xf32> to vector<2x32xf32>
    %25 = math.tanh %24 : vector<2x32xf32>
    %26 = vector.extract_strided_slice %11 {offsets = [0, 96], sizes = [2, 32], strides = [1, 1]} : vector<2x128xf32> to vector<2x32xf32>
    %27 = arith.negf %26 : vector<2x32xf32>
    %28 = math.exp %27 : vector<2x32xf32>
    %cst_11 = arith.constant 1.000000e+00 : f32
    %29 = vector.broadcast %cst_11 : f32 to vector<2x32xf32>
    %30 = arith.addf %29, %28 : vector<2x32xf32>
    %31 = arith.divf %29, %30 : vector<2x32xf32>
    %32 = arith.mulf %23, %5 : vector<2x32xf32>
    %33 = arith.mulf %17, %25 : vector<2x32xf32>
    %34 = arith.addf %32, %33 : vector<2x32xf32>
    %35 = math.tanh %34 : vector<2x32xf32>
    %36 = arith.mulf %31, %35 : vector<2x32xf32>
    %37 = arith.truncf %36 : vector<2x32xf32> to vector<2x32xbf16>
    %c0_12 = arith.constant 0 : index
    %c0_13 = arith.constant 0 : index
    %c0_14 = arith.constant 0 : index
    %38 = vector.load %arg4[%c0_12, %c0_13, %c0_14] : memref<6x2x32xbf16, #tpu.memory_space<vmem>>, vector<1x2x32xbf16>
    %39 = vector.shape_cast %38 : vector<1x2x32xbf16> to vector<2x32xbf16>
    %40 = vector.shape_cast %37 : vector<2x32xbf16> to vector<1x2x32xbf16>
    tpu.vector_store %arg4[%c0_12, %c0_13, %c0_14], %40 {strides = array<i32>} : memref<6x2x32xbf16, #tpu.memory_space<vmem>>, vector<1x2x32xbf16>,
    %c1 = arith.constant 1 : index
    %c0_15 = arith.constant 0 : index
    %c0_16 = arith.constant 0 : index
    %41 = vector.load %arg2[%c1, %c0_15, %c0_16] : memref<6x2x128xbf16, #tpu.memory_space<vmem>>, vector<1x2x128xbf16>
    %42 = vector.shape_cast %41 : vector<1x2x128xbf16> to vector<2x128xbf16>
    %43 = arith.extf %42 : vector<2x128xbf16> to vector<2x128xf32>
    %44 = arith.truncf %36 : vector<2x32xf32> to vector<2x32xbf16>
    %cst_17 = arith.constant dense<0.000000e+00> : vector<2x128xf32>
    %45 = tpu.matmul %44, %3, %cst_17 {dimension_numbers = #tpu.dot_dimension_numbers<[1], [0], [0], [1], [0, 0, 1, 1], [], []>} : vector<2x32xbf16>, vector<32x128xbf16>, vector<2x128xf32> -> vector<2x128xf32>
    %46 = arith.addf %43, %45 : vector<2x128xf32>
    %47 = vector.extract_strided_slice %46 {offsets = [0, 0], sizes = [2, 32], strides = [1, 1]} : vector<2x128xf32> to vector<2x32xf32>
    %48 = arith.negf %47 : vector<2x32xf32>
    %49 = math.exp %48 : vector<2x32xf32>
    %cst_18 = arith.constant 1.000000e+00 : f32
    %50 = vector.broadcast %cst_18 : f32 to vector<2x32xf32>
    %51 = arith.addf %50, %49 : vector<2x32xf32>
    %52 = arith.divf %50, %51 : vector<2x32xf32>
    %53 = vector.extract_strided_slice %46 {offsets = [0, 32], sizes = [2, 32], strides = [1, 1]} : vector<2x128xf32> to vector<2x32xf32>
    %54 = arith.negf %53 : vector<2x32xf32>
    %55 = math.exp %54 : vector<2x32xf32>
    %cst_19 = arith.constant 1.000000e+00 : f32
    %56 = vector.broadcast %cst_19 : f32 to vector<2x32xf32>
    %57 = arith.addf %56, %55 : vector<2x32xf32>
    %58 = arith.divf %56, %57 : vector<2x32xf32>
    %59 = vector.extract_strided_slice %46 {offsets = [0, 64], sizes = [2, 32], strides = [1, 1]} : vector<2x128xf32> to vector<2x32xf32>
    %60 = math.tanh %59 : vector<2x32xf32>
    %61 = vector.extract_strided_slice %46 {offsets = [0, 96], sizes = [2, 32], strides = [1, 1]} : vector<2x128xf32> to vector<2x32xf32>
    %62 = arith.negf %61 : vector<2x32xf32>
    %63 = math.exp %62 : vector<2x32xf32>
    %cst_20 = arith.constant 1.000000e+00 : f32
    %64 = vector.broadcast %cst_20 : f32 to vector<2x32xf32>
    %65 = arith.addf %64, %63 : vector<2x32xf32>
    %66 = arith.divf %64, %65 : vector<2x32xf32>
    %67 = arith.mulf %58, %34 : vector<2x32xf32>
    %68 = arith.mulf %52, %60 : vector<2x32xf32>
    %69 = arith.addf %67, %68 : vector<2x32xf32>
    %70 = math.tanh %69 : vector<2x32xf32>
    %71 = arith.mulf %66, %70 : vector<2x32xf32>
    %72 = arith.truncf %71 : vector<2x32xf32> to vector<2x32xbf16>
    %c1_21 = arith.constant 1 : index
    %c0_22 = arith.constant 0 : index
    %c0_23 = arith.constant 0 : index
    %73 = vector.load %arg4[%c1_21, %c0_22, %c0_23] : memref<6x2x32xbf16, #tpu.memory_space<vmem>>, vector<1x2x32xbf16>
    %74 = vector.shape_cast %73 : vector<1x2x32xbf16> to vector<2x32xbf16>
    %75 = vector.shape_cast %72 : vector<2x32xbf16> to vector<1x2x32xbf16>
    tpu.vector_store %arg4[%c1_21, %c0_22, %c0_23], %75 {strides = array<i32>} : memref<6x2x32xbf16, #tpu.memory_space<vmem>>, vector<1x2x32xbf16>,
    %c2 = arith.constant 2 : index
    %c0_24 = arith.constant 0 : index
    %c0_25 = arith.constant 0 : index
    %76 = vector.load %arg2[%c2, %c0_24, %c0_25] : memref<6x2x128xbf16, #tpu.memory_space<vmem>>, vector<1x2x128xbf16>
    %77 = vector.shape_cast %76 : vector<1x2x128xbf16> to vector<2x128xbf16>
    %78 = arith.extf %77 : vector<2x128xbf16> to vector<2x128xf32>
    %79 = arith.truncf %71 : vector<2x32xf32> to vector<2x32xbf16>
    %cst_26 = arith.constant dense<0.000000e+00> : vector<2x128xf32>
    %80 = tpu.matmul %79, %3, %cst_26 {dimension_numbers = #tpu.dot_dimension_numbers<[1], [0], [0], [1], [0, 0, 1, 1], [], []>} : vector<2x32xbf16>, vector<32x128xbf16>, vector<2x128xf32> -> vector<2x128xf32>
    %81 = arith.addf %78, %80 : vector<2x128xf32>
    %82 = vector.extract_strided_slice %81 {offsets = [0, 0], sizes = [2, 32], strides = [1, 1]} : vector<2x128xf32> to vector<2x32xf32>
    %83 = arith.negf %82 : vector<2x32xf32>
    %84 = math.exp %83 : vector<2x32xf32>
    %cst_27 = arith.constant 1.000000e+00 : f32
    %85 = vector.broadcast %cst_27 : f32 to vector<2x32xf32>
    %86 = arith.addf %85, %84 : vector<2x32xf32>
    %87 = arith.divf %85, %86 : vector<2x32xf32>
    %88 = vector.extract_strided_slice %81 {offsets = [0, 32], sizes = [2, 32], strides = [1, 1]} : vector<2x128xf32> to vector<2x32xf32>
    %89 = arith.negf %88 : vector<2x32xf32>
    %90 = math.exp %89 : vector<2x32xf32>
    %cst_28 = arith.constant 1.000000e+00 : f32
    %91 = vector.broadcast %cst_28 : f32 to vector<2x32xf32>
    %92 = arith.addf %91, %90 : vector<2x32xf32>
    %93 = arith.divf %91, %92 : vector<2x32xf32>
    %94 = vector.extract_strided_slice %81 {offsets = [0, 64], sizes = [2, 32], strides = [1, 1]} : vector<2x128xf32> to vector<2x32xf32>
    %95 = math.tanh %94 : vector<2x32xf32>
    %96 = vector.extract_strided_slice %81 {offsets = [0, 96], sizes = [2, 32], strides = [1, 1]} : vector<2x128xf32> to vector<2x32xf32>
    %97 = arith.negf %96 : vector<2x32xf32>
    %98 = math.exp %97 : vector<2x32xf32>
    %cst_29 = arith.constant 1.000000e+00 : f32
    %99 = vector.broadcast %cst_29 : f32 to vector<2x32xf32>
    %100 = arith.addf %99, %98 : vector<2x32xf32>
    %101 = arith.divf %99, %100 : vector<2x32xf32>
    %102 = arith.mulf %93, %69 : vector<2x32xf32>
    %103 = arith.mulf %87, %95 : vector<2x32xf32>
    %104 = arith.addf %102, %103 : vector<2x32xf32>
    %105 = math.tanh %104 : vector<2x32xf32>
    %106 = arith.mulf %101, %105 : vector<2x32xf32>
    %107 = arith.truncf %106 : vector<2x32xf32> to vector<2x32xbf16>
    %c2_30 = arith.constant 2 : index
    %c0_31 = arith.constant 0 : index
    %c0_32 = arith.constant 0 : index
    %108 = vector.load %arg4[%c2_30, %c0_31, %c0_32] : memref<6x2x32xbf16, #tpu.memory_space<vmem>>, vector<1x2x32xbf16>
    %109 = vector.shape_cast %108 : vector<1x2x32xbf16> to vector<2x32xbf16>
    %110 = vector.shape_cast %107 : vector<2x32xbf16> to vector<1x2x32xbf16>
    tpu.vector_store %arg4[%c2_30, %c0_31, %c0_32], %110 {strides = array<i32>} : memref<6x2x32xbf16, #tpu.memory_space<vmem>>, vector<1x2x32xbf16>,
    %c3 = arith.constant 3 : index
    %c0_33 = arith.constant 0 : index
    %c0_34 = arith.constant 0 : index
    %111 = vector.load %arg2[%c3, %c0_33, %c0_34] : memref<6x2x128xbf16, #tpu.memory_space<vmem>>, vector<1x2x128xbf16>
    %112 = vector.shape_cast %111 : vector<1x2x128xbf16> to vector<2x128xbf16>
    %113 = arith.extf %112 : vector<2x128xbf16> to vector<2x128xf32>
    %114 = arith.truncf %106 : vector<2x32xf32> to vector<2x32xbf16>
    %cst_35 = arith.constant dense<0.000000e+00> : vector<2x128xf32>
    %115 = tpu.matmul %114, %3, %cst_35 {dimension_numbers = #tpu.dot_dimension_numbers<[1], [0], [0], [1], [0, 0, 1, 1], [], []>} : vector<2x32xbf16>, vector<32x128xbf16>, vector<2x128xf32> -> vector<2x128xf32>
    %116 = arith.addf %113, %115 : vector<2x128xf32>
    %117 = vector.extract_strided_slice %116 {offsets = [0, 0], sizes = [2, 32], strides = [1, 1]} : vector<2x128xf32> to vector<2x32xf32>
    %118 = arith.negf %117 : vector<2x32xf32>
    %119 = math.exp %118 : vector<2x32xf32>
    %cst_36 = arith.constant 1.000000e+00 : f32
    %120 = vector.broadcast %cst_36 : f32 to vector<2x32xf32>
    %121 = arith.addf %120, %119 : vector<2x32xf32>
    %122 = arith.divf %120, %121 : vector<2x32xf32>
    %123 = vector.extract_strided_slice %116 {offsets = [0, 32], sizes = [2, 32], strides = [1, 1]} : vector<2x128xf32> to vector<2x32xf32>
    %124 = arith.negf %123 : vector<2x32xf32>
    %125 = math.exp %124 : vector<2x32xf32>
    %cst_37 = arith.constant 1.000000e+00 : f32
    %126 = vector.broadcast %cst_37 : f32 to vector<2x32xf32>
    %127 = arith.addf %126, %125 : vector<2x32xf32>
    %128 = arith.divf %126, %127 : vector<2x32xf32>
    %129 = vector.extract_strided_slice %116 {offsets = [0, 64], sizes = [2, 32], strides = [1, 1]} : vector<2x128xf32> to vector<2x32xf32>
    %130 = math.tanh %129 : vector<2x32xf32>
    %131 = vector.extract_strided_slice %116 {offsets = [0, 96], sizes = [2, 32], strides = [1, 1]} : vector<2x128xf32> to vector<2x32xf32>
    %132 = arith.negf %131 : vector<2x32xf32>
    %133 = math.exp %132 : vector<2x32xf32>
    %cst_38 = arith.constant 1.000000e+00 : f32
    %134 = vector.broadcast %cst_38 : f32 to vector<2x32xf32>
    %135 = arith.addf %134, %133 : vector<2x32xf32>
    %136 = arith.divf %134, %135 : vector<2x32xf32>
    %137 = arith.mulf %128, %104 : vector<2x32xf32>
    %138 = arith.mulf %122, %130 : vector<2x32xf32>
    %139 = arith.addf %137, %138 : vector<2x32xf32>
    %140 = math.tanh %139 : vector<2x32xf32>
    %141 = arith.mulf %136, %140 : vector<2x32xf32>
    %142 = arith.truncf %141 : vector<2x32xf32> to vector<2x32xbf16>
    %c3_39 = arith.constant 3 : index
    %c0_40 = arith.constant 0 : index
    %c0_41 = arith.constant 0 : index
    %143 = vector.load %arg4[%c3_39, %c0_40, %c0_41] : memref<6x2x32xbf16, #tpu.memory_space<vmem>>, vector<1x2x32xbf16>
    %144 = vector.shape_cast %143 : vector<1x2x32xbf16> to vector<2x32xbf16>
    %145 = vector.shape_cast %142 : vector<2x32xbf16> to vector<1x2x32xbf16>
    tpu.vector_store %arg4[%c3_39, %c0_40, %c0_41], %145 {strides = array<i32>} : memref<6x2x32xbf16, #tpu.memory_space<vmem>>, vector<1x2x32xbf16>,
    %c4 = arith.constant 4 : index
    %c0_42 = arith.constant 0 : index
    %c0_43 = arith.constant 0 : index
    %146 = vector.load %arg2[%c4, %c0_42, %c0_43] : memref<6x2x128xbf16, #tpu.memory_space<vmem>>, vector<1x2x128xbf16>
    %147 = vector.shape_cast %146 : vector<1x2x128xbf16> to vector<2x128xbf16>
    %148 = arith.extf %147 : vector<2x128xbf16> to vector<2x128xf32>
    %149 = arith.truncf %141 : vector<2x32xf32> to vector<2x32xbf16>
    %cst_44 = arith.constant dense<0.000000e+00> : vector<2x128xf32>
    %150 = tpu.matmul %149, %3, %cst_44 {dimension_numbers = #tpu.dot_dimension_numbers<[1], [0], [0], [1], [0, 0, 1, 1], [], []>} : vector<2x32xbf16>, vector<32x128xbf16>, vector<2x128xf32> -> vector<2x128xf32>
    %151 = arith.addf %148, %150 : vector<2x128xf32>
    %152 = vector.extract_strided_slice %151 {offsets = [0, 0], sizes = [2, 32], strides = [1, 1]} : vector<2x128xf32> to vector<2x32xf32>
    %153 = arith.negf %152 : vector<2x32xf32>
    %154 = math.exp %153 : vector<2x32xf32>
    %cst_45 = arith.constant 1.000000e+00 : f32
    %155 = vector.broadcast %cst_45 : f32 to vector<2x32xf32>
    %156 = arith.addf %155, %154 : vector<2x32xf32>
    %157 = arith.divf %155, %156 : vector<2x32xf32>
    %158 = vector.extract_strided_slice %151 {offsets = [0, 32], sizes = [2, 32], strides = [1, 1]} : vector<2x128xf32> to vector<2x32xf32>
    %159 = arith.negf %158 : vector<2x32xf32>
    %160 = math.exp %159 : vector<2x32xf32>
    %cst_46 = arith.constant 1.000000e+00 : f32
    %161 = vector.broadcast %cst_46 : f32 to vector<2x32xf32>
    %162 = arith.addf %161, %160 : vector<2x32xf32>
    %163 = arith.divf %161, %162 : vector<2x32xf32>
    %164 = vector.extract_strided_slice %151 {offsets = [0, 64], sizes = [2, 32], strides = [1, 1]} : vector<2x128xf32> to vector<2x32xf32>
    %165 = math.tanh %164 : vector<2x32xf32>
    %166 = vector.extract_strided_slice %151 {offsets = [0, 96], sizes = [2, 32], strides = [1, 1]} : vector<2x128xf32> to vector<2x32xf32>
    %167 = arith.negf %166 : vector<2x32xf32>
    %168 = math.exp %167 : vector<2x32xf32>
    %cst_47 = arith.constant 1.000000e+00 : f32
    %169 = vector.broadcast %cst_47 : f32 to vector<2x32xf32>
    %170 = arith.addf %169, %168 : vector<2x32xf32>
    %171 = arith.divf %169, %170 : vector<2x32xf32>
    %172 = arith.mulf %163, %139 : vector<2x32xf32>
    %173 = arith.mulf %157, %165 : vector<2x32xf32>
    %174 = arith.addf %172, %173 : vector<2x32xf32>
    %175 = math.tanh %174 : vector<2x32xf32>
    %176 = arith.mulf %171, %175 : vector<2x32xf32>
    %177 = arith.truncf %176 : vector<2x32xf32> to vector<2x32xbf16>
    %c4_48 = arith.constant 4 : index
    %c0_49 = arith.constant 0 : index
    %c0_50 = arith.constant 0 : index
    %178 = vector.load %arg4[%c4_48, %c0_49, %c0_50] : memref<6x2x32xbf16, #tpu.memory_space<vmem>>, vector<1x2x32xbf16>
    %179 = vector.shape_cast %178 : vector<1x2x32xbf16> to vector<2x32xbf16>
    %180 = vector.shape_cast %177 : vector<2x32xbf16> to vector<1x2x32xbf16>
    tpu.vector_store %arg4[%c4_48, %c0_49, %c0_50], %180 {strides = array<i32>} : memref<6x2x32xbf16, #tpu.memory_space<vmem>>, vector<1x2x32xbf16>,
    %c5 = arith.constant 5 : index
    %c0_51 = arith.constant 0 : index
    %c0_52 = arith.constant 0 : index
    %181 = vector.load %arg2[%c5, %c0_51, %c0_52] : memref<6x2x128xbf16, #tpu.memory_space<vmem>>, vector<1x2x128xbf16>
    %182 = vector.shape_cast %181 : vector<1x2x128xbf16> to vector<2x128xbf16>
    %183 = arith.extf %182 : vector<2x128xbf16> to vector<2x128xf32>
    %184 = arith.truncf %176 : vector<2x32xf32> to vector<2x32xbf16>
    %cst_53 = arith.constant dense<0.000000e+00> : vector<2x128xf32>
    %185 = tpu.matmul %184, %3, %cst_53 {dimension_numbers = #tpu.dot_dimension_numbers<[1], [0], [0], [1], [0, 0, 1, 1], [], []>} : vector<2x32xbf16>, vector<32x128xbf16>, vector<2x128xf32> -> vector<2x128xf32>
    %186 = arith.addf %183, %185 : vector<2x128xf32>
    %187 = vector.extract_strided_slice %186 {offsets = [0, 0], sizes = [2, 32], strides = [1, 1]} : vector<2x128xf32> to vector<2x32xf32>
    %188 = arith.negf %187 : vector<2x32xf32>
    %189 = math.exp %188 : vector<2x32xf32>
    %cst_54 = arith.constant 1.000000e+00 : f32
    %190 = vector.broadcast %cst_54 : f32 to vector<2x32xf32>
    %191 = arith.addf %190, %189 : vector<2x32xf32>
    %192 = arith.divf %190, %191 : vector<2x32xf32>
    %193 = vector.extract_strided_slice %186 {offsets = [0, 32], sizes = [2, 32], strides = [1, 1]} : vector<2x128xf32> to vector<2x32xf32>
    %194 = arith.negf %193 : vector<2x32xf32>
    %195 = math.exp %194 : vector<2x32xf32>
    %cst_55 = arith.constant 1.000000e+00 : f32
    %196 = vector.broadcast %cst_55 : f32 to vector<2x32xf32>
    %197 = arith.addf %196, %195 : vector<2x32xf32>
    %198 = arith.divf %196, %197 : vector<2x32xf32>
    %199 = vector.extract_strided_slice %186 {offsets = [0, 64], sizes = [2, 32], strides = [1, 1]} : vector<2x128xf32> to vector<2x32xf32>
    %200 = math.tanh %199 : vector<2x32xf32>
    %201 = vector.extract_strided_slice %186 {offsets = [0, 96], sizes = [2, 32], strides = [1, 1]} : vector<2x128xf32> to vector<2x32xf32>
    %202 = arith.negf %201 : vector<2x32xf32>
    %203 = math.exp %202 : vector<2x32xf32>
    %cst_56 = arith.constant 1.000000e+00 : f32
    %204 = vector.broadcast %cst_56 : f32 to vector<2x32xf32>
    %205 = arith.addf %204, %203 : vector<2x32xf32>
    %206 = arith.divf %204, %205 : vector<2x32xf32>
    %207 = arith.mulf %198, %174 : vector<2x32xf32>
    %208 = arith.mulf %192, %200 : vector<2x32xf32>
    %209 = arith.addf %207, %208 : vector<2x32xf32>
    %210 = math.tanh %209 : vector<2x32xf32>
    %211 = arith.mulf %206, %210 : vector<2x32xf32>
    %212 = arith.truncf %211 : vector<2x32xf32> to vector<2x32xbf16>
    %c5_57 = arith.constant 5 : index
    %c0_58 = arith.constant 0 : index
    %c0_59 = arith.constant 0 : index
    %213 = vector.load %arg4[%c5_57, %c0_58, %c0_59] : memref<6x2x32xbf16, #tpu.memory_space<vmem>>, vector<1x2x32xbf16>
    %214 = vector.shape_cast %213 : vector<1x2x32xbf16> to vector<2x32xbf16>
    %215 = vector.shape_cast %212 : vector<2x32xbf16> to vector<1x2x32xbf16>
    tpu.vector_store %arg4[%c5_57, %c0_58, %c0_59], %215 {strides = array<i32>} : memref<6x2x32xbf16, #tpu.memory_space<vmem>>, vector<1x2x32xbf16>,
    %c0_60 = arith.constant 0 : index
    %c0_61 = arith.constant 0 : index
    %216 = vector.load %arg5[%c0_60, %c0_61] : memref<2x32xf32, #tpu.memory_space<vmem>>, vector<2x32xf32>
    tpu.vector_store %arg5[%c0_60, %c0_61], %211 {strides = array<i32>} : memref<2x32xf32, #tpu.memory_space<vmem>>, vector<2x32xf32>,
    %c0_62 = arith.constant 0 : index
    %c0_63 = arith.constant 0 : index
    %217 = vector.load %arg6[%c0_62, %c0_63] : memref<2x32xf32, #tpu.memory_space<vmem>>, vector<2x32xf32>
    tpu.vector_store %arg6[%c0_62, %c0_63], %209 {strides = array<i32>} : memref<2x32xf32, #tpu.memory_space<vmem>>, vector<2x32xf32>,
    return
  }
  func.func @transform_0(%arg0: i32, %arg1: i32) -> (i32, i32, i32) {
    %c0_i32 = arith.constant 0 : i32
    %c0_i32_0 = arith.constant 0 : i32
    return %arg1, %arg0, %c0_i32 : i32, i32, i32
  }
  func.func @transform_1(%arg0: i32, %arg1: i32) -> (i32, i32) {
    %c0_i32 = arith.constant 0 : i32
    %c0_i32_0 = arith.constant 0 : i32
    %c0_i32_1 = arith.constant 0 : i32
    return %c0_i32, %c0_i32_0 : i32, i32
  }
  func.func @transform_2(%arg0: i32, %arg1: i32) -> (i32, i32, i32) {
    %c0_i32 = arith.constant 0 : i32
    %c0_i32_0 = arith.constant 0 : i32
    return %arg1, %arg0, %c0_i32 : i32, i32, i32
  }
}

module attributes {stable_mosaic.version = 11 : i64} {
  func.func @_attn_kernel(%arg0: i32, %arg1: i32, %arg2: i32, %arg3: memref<1x8x32xf32, #tpu.memory_space<vmem>>, %arg4: memref<1x8x32xf32, #tpu.memory_space<vmem>>, %arg5: memref<1x8x32xbf16, #tpu.memory_space<vmem>>, %arg6: memref<1x32xf32, #tpu.memory_space<vmem>>, %arg7: memref<1x1x8xf32, #tpu.memory_space<vmem>>, %arg8: memref<1x8x32xbf16, #tpu.memory_space<vmem>>, %arg9: memref<8x1xf32, #tpu.memory_space<vmem>>, %arg10: memref<8x1xf32, #tpu.memory_space<vmem>>, %arg11: memref<8x32xf32, #tpu.memory_space<vmem>>) attributes {dimension_semantics = [#tpu.dimension_semantics<parallel>, #tpu.dimension_semantics<parallel>, #tpu.dimension_semantics<arbitrary>], iteration_bounds = array<i64: 2, 1, 1>, scalar_prefetch = 0 : i64, scratch_operands = 3 : i64, tpu.core_type = #tpu.core_type<tc>, window_params = [{transform_indices = @transform_0, window_bounds = array<i64: 1, 8, 32>}, {transform_indices = @transform_1, window_bounds = array<i64: 1, 8, 32>}, {transform_indices = @transform_2, window_bounds = array<i64: 1, 8, 32>}, {pipeline_mode = #tpu.pipeline_mode<synchronous>, transform_indices = @transform_3, window_bounds = array<i64: 1, 32>}, {transform_indices = @transform_4, window_bounds = array<i64: 1, 1, 8>}, {transform_indices = @transform_5, window_bounds = array<i64: 1, 8, 32>}]} {
    %c0_i32 = arith.constant 0 : i32
    %0 = arith.cmpi eq, %arg2, %c0_i32 : i32
    %1 = arith.extui %0 : i1 to i32
    %c0_i32_0 = arith.constant 0 : i32
    %2 = arith.cmpi ne, %1, %c0_i32_0 : i32
    scf.if %2 {
      %cst_35 = arith.constant 0xFF800000 : f32
      %55 = vector.broadcast %cst_35 : f32 to vector<8x1xf32>
      %c0_36 = arith.constant 0 : index
      %c0_37 = arith.constant 0 : index
      %56 = vector.load %arg9[%c0_36, %c0_37] : memref<8x1xf32, #tpu.memory_space<vmem>>, vector<8x1xf32>
      tpu.vector_store %arg9[%c0_36, %c0_37], %55 {strides = array<i32>} : memref<8x1xf32, #tpu.memory_space<vmem>>, vector<8x1xf32>,
      %cst_38 = arith.constant 0.000000e+00 : f32
      %57 = vector.broadcast %cst_38 : f32 to vector<8x1xf32>
      %c0_39 = arith.constant 0 : index
      %c0_40 = arith.constant 0 : index
      %58 = vector.load %arg10[%c0_39, %c0_40] : memref<8x1xf32, #tpu.memory_space<vmem>>, vector<8x1xf32>
      tpu.vector_store %arg10[%c0_39, %c0_40], %57 {strides = array<i32>} : memref<8x1xf32, #tpu.memory_space<vmem>>, vector<8x1xf32>,
      %cst_41 = arith.constant 0.000000e+00 : f32
      %59 = vector.broadcast %cst_41 : f32 to vector<8x32xf32>
      %c0_42 = arith.constant 0 : index
      %c0_43 = arith.constant 0 : index
      %60 = vector.load %arg11[%c0_42, %c0_43] : memref<8x32xf32, #tpu.memory_space<vmem>>, vector<8x32xf32>
      tpu.vector_store %arg11[%c0_42, %c0_43], %59 {strides = array<i32>} : memref<8x32xf32, #tpu.memory_space<vmem>>, vector<8x32xf32>,
    } else {
    }
    %c0 = arith.constant 0 : index
    %c0_1 = arith.constant 0 : index
    %c0_2 = arith.constant 0 : index
    %3 = vector.load %arg3[%c0, %c0_1, %c0_2] : memref<1x8x32xf32, #tpu.memory_space<vmem>>, vector<1x8x32xf32>
    %4 = vector.shape_cast %3 : vector<1x8x32xf32> to vector<8x32xf32>
    %c0_3 = arith.constant 0 : index
    %c0_4 = arith.constant 0 : index
    %c0_5 = arith.constant 0 : index
    %5 = vector.load %arg4[%c0_3, %c0_4, %c0_5] : memref<1x8x32xf32, #tpu.memory_space<vmem>>, vector<1x8x32xf32>
    %6 = vector.shape_cast %5 : vector<1x8x32xf32> to vector<8x32xf32>
    %c0_6 = arith.constant 0 : index
    %c0_7 = arith.constant 0 : index
    %c0_8 = arith.constant 0 : index
    %7 = vector.load %arg5[%c0_6, %c0_7, %c0_8] : memref<1x8x32xbf16, #tpu.memory_space<vmem>>, vector<1x8x32xbf16>
    %8 = vector.shape_cast %7 : vector<1x8x32xbf16> to vector<8x32xbf16>
    %9 = vector.shape_cast %4 : vector<8x32xf32> to vector<8x1x32xf32>
    %10 = vector.shape_cast %6 : vector<8x32xf32> to vector<1x8x32xf32>
    %11 = vector.broadcast %9 : vector<8x1x32xf32> to vector<8x8x32xf32>
    %12 = vector.broadcast %10 : vector<1x8x32xf32> to vector<8x8x32xf32>
    %13 = arith.addf %11, %12 : vector<8x8x32xf32>
    %14 = math.tanh %13 : vector<8x8x32xf32>
    %c0_9 = arith.constant 0 : index
    %c0_10 = arith.constant 0 : index
    %15 = vector.load %arg6[%c0_9, %c0_10] : memref<1x32xf32, #tpu.memory_space<vmem>>, vector<1x32xf32>
    %16 = vector.shape_cast %15 : vector<1x32xf32> to vector<1x1x32xf32>
    %17 = vector.broadcast %16 : vector<1x1x32xf32> to vector<8x8x32xf32>
    %18 = arith.mulf %14, %17 : vector<8x8x32xf32>
    %cst = arith.constant dense<0.000000e+00> : vector<8x8xf32>
    %19 = vector.multi_reduction <add>, %18, %cst [2] : vector<8x8x32xf32> to vector<8x8xf32>
    %c0_11 = arith.constant 0 : index
    %c0_12 = arith.constant 0 : index
    %c0_13 = arith.constant 0 : index
    %20 = vector.load %arg7[%c0_11, %c0_12, %c0_13] : memref<1x1x8xf32, #tpu.memory_space<vmem>>, vector<1x1x8xf32>
    %21 = vector.shape_cast %20 : vector<1x1x8xf32> to vector<1x8xf32>
    %cst_14 = arith.constant 5.000000e-01 : f32
    %22 = vector.broadcast %cst_14 : f32 to vector<1x8xf32>
    %23 = arith.cmpf ogt, %21, %22 : vector<1x8xf32>
    %cst_15 = arith.constant -1.000000e+30 : f32
    %24 = vector.shape_cast %23 : vector<1x8xi1> to vector<1x8xi1>
    %25 = vector.broadcast %24 : vector<1x8xi1> to vector<8x8xi1>
    %26 = vector.broadcast %cst_15 : f32 to vector<8x8xf32>
    %27 = arith.select %25, %26, %19 : vector<8x8xi1>, vector<8x8xf32>
    %c0_16 = arith.constant 0 : index
    %c0_17 = arith.constant 0 : index
    %28 = vector.load %arg9[%c0_16, %c0_17] : memref<8x1xf32, #tpu.memory_space<vmem>>, vector<8x1xf32>
    %cst_18 = arith.constant dense<0xFF800000> : vector<8xf32>
    %29 = vector.multi_reduction <maximumf>, %27, %cst_18 [1] : vector<8x8xf32> to vector<8xf32>
    %30 = vector.shape_cast %29 : vector<8xf32> to vector<8x1xf32>
    %31 = arith.maximumf %28, %30 : vector<8x1xf32>
    %c0_19 = arith.constant 0 : index
    %c0_20 = arith.constant 0 : index
    %32 = vector.load %arg9[%c0_19, %c0_20] : memref<8x1xf32, #tpu.memory_space<vmem>>, vector<8x1xf32>
    %33 = arith.subf %32, %31 : vector<8x1xf32>
    %34 = math.exp %33 : vector<8x1xf32>
    %35 = vector.broadcast %31 : vector<8x1xf32> to vector<8x8xf32>
    %36 = arith.subf %27, %35 : vector<8x8xf32>
    %37 = math.exp %36 : vector<8x8xf32>
    %c0_21 = arith.constant 0 : index
    %c0_22 = arith.constant 0 : index
    %38 = vector.load %arg10[%c0_21, %c0_22] : memref<8x1xf32, #tpu.memory_space<vmem>>, vector<8x1xf32>
    %39 = arith.mulf %34, %38 : vector<8x1xf32>
    %cst_23 = arith.constant dense<0.000000e+00> : vector<8xf32>
    %40 = vector.multi_reduction <add>, %37, %cst_23 [1] : vector<8x8xf32> to vector<8xf32>
    %41 = vector.shape_cast %40 : vector<8xf32> to vector<8x1xf32>
    %42 = arith.addf %39, %41 : vector<8x1xf32>
    %c0_24 = arith.constant 0 : index
    %c0_25 = arith.constant 0 : index
    %43 = vector.load %arg10[%c0_24, %c0_25] : memref<8x1xf32, #tpu.memory_space<vmem>>, vector<8x1xf32>
    tpu.vector_store %arg10[%c0_24, %c0_25], %42 {strides = array<i32>} : memref<8x1xf32, #tpu.memory_space<vmem>>, vector<8x1xf32>,
    %c0_26 = arith.constant 0 : index
    %c0_27 = arith.constant 0 : index
    %44 = vector.load %arg11[%c0_26, %c0_27] : memref<8x32xf32, #tpu.memory_space<vmem>>, vector<8x32xf32>
    %45 = vector.broadcast %34 : vector<8x1xf32> to vector<8x32xf32>
    %46 = arith.mulf %45, %44 : vector<8x32xf32>
    %47 = arith.truncf %37 : vector<8x8xf32> to vector<8x8xbf16>
    %cst_28 = arith.constant dense<0.000000e+00> : vector<8x32xf32>
    %48 = tpu.matmul %47, %8, %cst_28 {dimension_numbers = #tpu.dot_dimension_numbers<[1], [0], [0], [1], [0, 0, 1, 1], [], []>} : vector<8x8xbf16>, vector<8x32xbf16>, vector<8x32xf32> -> vector<8x32xf32>
    %49 = arith.addf %46, %48 : vector<8x32xf32>
    %c0_29 = arith.constant 0 : index
    %c0_30 = arith.constant 0 : index
    %50 = vector.load %arg11[%c0_29, %c0_30] : memref<8x32xf32, #tpu.memory_space<vmem>>, vector<8x32xf32>
    tpu.vector_store %arg11[%c0_29, %c0_30], %49 {strides = array<i32>} : memref<8x32xf32, #tpu.memory_space<vmem>>, vector<8x32xf32>,
    %c0_31 = arith.constant 0 : index
    %c0_32 = arith.constant 0 : index
    %51 = vector.load %arg9[%c0_31, %c0_32] : memref<8x1xf32, #tpu.memory_space<vmem>>, vector<8x1xf32>
    tpu.vector_store %arg9[%c0_31, %c0_32], %31 {strides = array<i32>} : memref<8x1xf32, #tpu.memory_space<vmem>>, vector<8x1xf32>,
    %c0_i32_33 = arith.constant 0 : i32
    %52 = arith.cmpi eq, %arg2, %c0_i32_33 : i32
    %53 = arith.extui %52 : i1 to i32
    %c0_i32_34 = arith.constant 0 : i32
    %54 = arith.cmpi ne, %53, %c0_i32_34 : i32
    scf.if %54 {
      %c0_35 = arith.constant 0 : index
      %c0_36 = arith.constant 0 : index
      %55 = vector.load %arg10[%c0_35, %c0_36] : memref<8x1xf32, #tpu.memory_space<vmem>>, vector<8x1xf32>
      %cst_37 = arith.constant 1.000000e-30 : f32
      %56 = vector.broadcast %cst_37 : f32 to vector<8x1xf32>
      %57 = arith.maximumf %55, %56 : vector<8x1xf32>
      %c0_38 = arith.constant 0 : index
      %c0_39 = arith.constant 0 : index
      %58 = vector.load %arg11[%c0_38, %c0_39] : memref<8x32xf32, #tpu.memory_space<vmem>>, vector<8x32xf32>
      %59 = vector.broadcast %57 : vector<8x1xf32> to vector<8x32xf32>
      %60 = arith.divf %58, %59 : vector<8x32xf32>
      %61 = arith.truncf %60 : vector<8x32xf32> to vector<8x32xbf16>
      %c0_40 = arith.constant 0 : index
      %c0_41 = arith.constant 0 : index
      %c0_42 = arith.constant 0 : index
      %62 = vector.load %arg8[%c0_40, %c0_41, %c0_42] : memref<1x8x32xbf16, #tpu.memory_space<vmem>>, vector<1x8x32xbf16>
      %63 = vector.shape_cast %62 : vector<1x8x32xbf16> to vector<8x32xbf16>
      %64 = vector.shape_cast %61 : vector<8x32xbf16> to vector<1x8x32xbf16>
      tpu.vector_store %arg8[%c0_40, %c0_41, %c0_42], %64 {strides = array<i32>} : memref<1x8x32xbf16, #tpu.memory_space<vmem>>, vector<1x8x32xbf16>,
    } else {
    }
    return
  }
  func.func @transform_0(%arg0: i32, %arg1: i32, %arg2: i32) -> (i32, i32, i32) {
    %c0_i32 = arith.constant 0 : i32
    %c0_i32_0 = arith.constant 0 : i32
    return %arg0, %arg1, %c0_i32 : i32, i32, i32
  }
  func.func @transform_1(%arg0: i32, %arg1: i32, %arg2: i32) -> (i32, i32, i32) {
    %c0_i32 = arith.constant 0 : i32
    %c0_i32_0 = arith.constant 0 : i32
    return %arg0, %arg2, %c0_i32 : i32, i32, i32
  }
  func.func @transform_2(%arg0: i32, %arg1: i32, %arg2: i32) -> (i32, i32, i32) {
    %c0_i32 = arith.constant 0 : i32
    %c0_i32_0 = arith.constant 0 : i32
    return %arg0, %arg2, %c0_i32 : i32, i32, i32
  }
  func.func @transform_3(%arg0: i32, %arg1: i32, %arg2: i32) -> (i32, i32) {
    %c0_i32 = arith.constant 0 : i32
    %c0_i32_0 = arith.constant 0 : i32
    %c0_i32_1 = arith.constant 0 : i32
    return %c0_i32, %c0_i32_0 : i32, i32
  }
  func.func @transform_4(%arg0: i32, %arg1: i32, %arg2: i32) -> (i32, i32, i32) {
    %c0_i32 = arith.constant 0 : i32
    %c0_i32_0 = arith.constant 0 : i32
    return %arg0, %c0_i32, %arg2 : i32, i32, i32
  }
  func.func @transform_5(%arg0: i32, %arg1: i32, %arg2: i32) -> (i32, i32, i32) {
    %c0_i32 = arith.constant 0 : i32
    %c0_i32_0 = arith.constant 0 : i32
    return %arg0, %arg1, %c0_i32 : i32, i32, i32
  }
}

module attributes {stable_mosaic.version = 11 : i64} {
  func.func @_lstm_rec_res_kernel(%arg0: i32, %arg1: i32, %arg2: memref<6x2x128xbf16, #tpu.memory_space<vmem>>, %arg3: memref<6x2x32xbf16, #tpu.memory_space<vmem>>, %arg4: memref<32x128xbf16, #tpu.memory_space<vmem>>, %arg5: memref<6x2x32xbf16, #tpu.memory_space<vmem>>, %arg6: memref<2x32xf32, #tpu.memory_space<vmem>>, %arg7: memref<2x32xf32, #tpu.memory_space<vmem>>) attributes {dimension_semantics = [#tpu.dimension_semantics<parallel>, #tpu.dimension_semantics<arbitrary>], iteration_bounds = array<i64: 1, 1>, scalar_prefetch = 0 : i64, scratch_operands = 2 : i64, tpu.core_type = #tpu.core_type<tc>, window_params = [{transform_indices = @transform_0, window_bounds = array<i64: 6, 2, 128>}, {transform_indices = @transform_1, window_bounds = array<i64: 6, 2, 32>}, {pipeline_mode = #tpu.pipeline_mode<synchronous>, transform_indices = @transform_2, window_bounds = array<i64: 32, 128>}, {transform_indices = @transform_3, window_bounds = array<i64: 6, 2, 32>}]} {
    %c0_i32 = arith.constant 0 : i32
    %0 = arith.cmpi eq, %arg1, %c0_i32 : i32
    %1 = arith.extui %0 : i1 to i32
    %c0_i32_0 = arith.constant 0 : i32
    %2 = arith.cmpi ne, %1, %c0_i32_0 : i32
    scf.if %2 {
      %cst_82 = arith.constant 0.000000e+00 : f32
      %242 = vector.broadcast %cst_82 : f32 to vector<2x32xf32>
      %c0_83 = arith.constant 0 : index
      %c0_84 = arith.constant 0 : index
      %243 = vector.load %arg6[%c0_83, %c0_84] : memref<2x32xf32, #tpu.memory_space<vmem>>, vector<2x32xf32>
      tpu.vector_store %arg6[%c0_83, %c0_84], %242 {strides = array<i32>} : memref<2x32xf32, #tpu.memory_space<vmem>>, vector<2x32xf32>,
      %cst_85 = arith.constant 0.000000e+00 : f32
      %244 = vector.broadcast %cst_85 : f32 to vector<2x32xf32>
      %c0_86 = arith.constant 0 : index
      %c0_87 = arith.constant 0 : index
      %245 = vector.load %arg7[%c0_86, %c0_87] : memref<2x32xf32, #tpu.memory_space<vmem>>, vector<2x32xf32>
      tpu.vector_store %arg7[%c0_86, %c0_87], %244 {strides = array<i32>} : memref<2x32xf32, #tpu.memory_space<vmem>>, vector<2x32xf32>,
    } else {
    }
    %c0 = arith.constant 0 : index
    %c0_1 = arith.constant 0 : index
    %3 = vector.load %arg4[%c0, %c0_1] : memref<32x128xbf16, #tpu.memory_space<vmem>>, vector<32x128xbf16>
    %c0_2 = arith.constant 0 : index
    %c0_3 = arith.constant 0 : index
    %4 = vector.load %arg6[%c0_2, %c0_3] : memref<2x32xf32, #tpu.memory_space<vmem>>, vector<2x32xf32>
    %c0_4 = arith.constant 0 : index
    %c0_5 = arith.constant 0 : index
    %5 = vector.load %arg7[%c0_4, %c0_5] : memref<2x32xf32, #tpu.memory_space<vmem>>, vector<2x32xf32>
    %c0_6 = arith.constant 0 : index
    %c0_7 = arith.constant 0 : index
    %c0_8 = arith.constant 0 : index
    %6 = vector.load %arg2[%c0_6, %c0_7, %c0_8] : memref<6x2x128xbf16, #tpu.memory_space<vmem>>, vector<1x2x128xbf16>
    %7 = vector.shape_cast %6 : vector<1x2x128xbf16> to vector<2x128xbf16>
    %8 = arith.extf %7 : vector<2x128xbf16> to vector<2x128xf32>
    %9 = arith.truncf %4 : vector<2x32xf32> to vector<2x32xbf16>
    %cst = arith.constant dense<0.000000e+00> : vector<2x128xf32>
    %10 = tpu.matmul %9, %3, %cst {dimension_numbers = #tpu.dot_dimension_numbers<[1], [0], [0], [1], [0, 0, 1, 1], [], []>} : vector<2x32xbf16>, vector<32x128xbf16>, vector<2x128xf32> -> vector<2x128xf32>
    %11 = arith.addf %8, %10 : vector<2x128xf32>
    %12 = vector.extract_strided_slice %11 {offsets = [0, 0], sizes = [2, 32], strides = [1, 1]} : vector<2x128xf32> to vector<2x32xf32>
    %13 = arith.negf %12 : vector<2x32xf32>
    %14 = math.exp %13 : vector<2x32xf32>
    %cst_9 = arith.constant 1.000000e+00 : f32
    %15 = vector.broadcast %cst_9 : f32 to vector<2x32xf32>
    %16 = arith.addf %15, %14 : vector<2x32xf32>
    %17 = arith.divf %15, %16 : vector<2x32xf32>
    %18 = vector.extract_strided_slice %11 {offsets = [0, 32], sizes = [2, 32], strides = [1, 1]} : vector<2x128xf32> to vector<2x32xf32>
    %19 = arith.negf %18 : vector<2x32xf32>
    %20 = math.exp %19 : vector<2x32xf32>
    %cst_10 = arith.constant 1.000000e+00 : f32
    %21 = vector.broadcast %cst_10 : f32 to vector<2x32xf32>
    %22 = arith.addf %21, %20 : vector<2x32xf32>
    %23 = arith.divf %21, %22 : vector<2x32xf32>
    %24 = vector.extract_strided_slice %11 {offsets = [0, 64], sizes = [2, 32], strides = [1, 1]} : vector<2x128xf32> to vector<2x32xf32>
    %25 = math.tanh %24 : vector<2x32xf32>
    %26 = vector.extract_strided_slice %11 {offsets = [0, 96], sizes = [2, 32], strides = [1, 1]} : vector<2x128xf32> to vector<2x32xf32>
    %27 = arith.negf %26 : vector<2x32xf32>
    %28 = math.exp %27 : vector<2x32xf32>
    %cst_11 = arith.constant 1.000000e+00 : f32
    %29 = vector.broadcast %cst_11 : f32 to vector<2x32xf32>
    %30 = arith.addf %29, %28 : vector<2x32xf32>
    %31 = arith.divf %29, %30 : vector<2x32xf32>
    %32 = arith.mulf %23, %5 : vector<2x32xf32>
    %33 = arith.mulf %17, %25 : vector<2x32xf32>
    %34 = arith.addf %32, %33 : vector<2x32xf32>
    %35 = math.tanh %34 : vector<2x32xf32>
    %36 = arith.mulf %31, %35 : vector<2x32xf32>
    %c0_12 = arith.constant 0 : index
    %c0_13 = arith.constant 0 : index
    %c0_14 = arith.constant 0 : index
    %37 = vector.load %arg3[%c0_12, %c0_13, %c0_14] : memref<6x2x32xbf16, #tpu.memory_space<vmem>>, vector<1x2x32xbf16>
    %38 = vector.shape_cast %37 : vector<1x2x32xbf16> to vector<2x32xbf16>
    %39 = arith.extf %38 : vector<2x32xbf16> to vector<2x32xf32>
    %40 = arith.addf %36, %39 : vector<2x32xf32>
    %41 = arith.truncf %40 : vector<2x32xf32> to vector<2x32xbf16>
    %c0_15 = arith.constant 0 : index
    %c0_16 = arith.constant 0 : index
    %c0_17 = arith.constant 0 : index
    %42 = vector.load %arg5[%c0_15, %c0_16, %c0_17] : memref<6x2x32xbf16, #tpu.memory_space<vmem>>, vector<1x2x32xbf16>
    %43 = vector.shape_cast %42 : vector<1x2x32xbf16> to vector<2x32xbf16>
    %44 = vector.shape_cast %41 : vector<2x32xbf16> to vector<1x2x32xbf16>
    tpu.vector_store %arg5[%c0_15, %c0_16, %c0_17], %44 {strides = array<i32>} : memref<6x2x32xbf16, #tpu.memory_space<vmem>>, vector<1x2x32xbf16>,
    %c1 = arith.constant 1 : index
    %c0_18 = arith.constant 0 : index
    %c0_19 = arith.constant 0 : index
    %45 = vector.load %arg2[%c1, %c0_18, %c0_19] : memref<6x2x128xbf16, #tpu.memory_space<vmem>>, vector<1x2x128xbf16>
    %46 = vector.shape_cast %45 : vector<1x2x128xbf16> to vector<2x128xbf16>
    %47 = arith.extf %46 : vector<2x128xbf16> to vector<2x128xf32>
    %48 = arith.truncf %36 : vector<2x32xf32> to vector<2x32xbf16>
    %cst_20 = arith.constant dense<0.000000e+00> : vector<2x128xf32>
    %49 = tpu.matmul %48, %3, %cst_20 {dimension_numbers = #tpu.dot_dimension_numbers<[1], [0], [0], [1], [0, 0, 1, 1], [], []>} : vector<2x32xbf16>, vector<32x128xbf16>, vector<2x128xf32> -> vector<2x128xf32>
    %50 = arith.addf %47, %49 : vector<2x128xf32>
    %51 = vector.extract_strided_slice %50 {offsets = [0, 0], sizes = [2, 32], strides = [1, 1]} : vector<2x128xf32> to vector<2x32xf32>
    %52 = arith.negf %51 : vector<2x32xf32>
    %53 = math.exp %52 : vector<2x32xf32>
    %cst_21 = arith.constant 1.000000e+00 : f32
    %54 = vector.broadcast %cst_21 : f32 to vector<2x32xf32>
    %55 = arith.addf %54, %53 : vector<2x32xf32>
    %56 = arith.divf %54, %55 : vector<2x32xf32>
    %57 = vector.extract_strided_slice %50 {offsets = [0, 32], sizes = [2, 32], strides = [1, 1]} : vector<2x128xf32> to vector<2x32xf32>
    %58 = arith.negf %57 : vector<2x32xf32>
    %59 = math.exp %58 : vector<2x32xf32>
    %cst_22 = arith.constant 1.000000e+00 : f32
    %60 = vector.broadcast %cst_22 : f32 to vector<2x32xf32>
    %61 = arith.addf %60, %59 : vector<2x32xf32>
    %62 = arith.divf %60, %61 : vector<2x32xf32>
    %63 = vector.extract_strided_slice %50 {offsets = [0, 64], sizes = [2, 32], strides = [1, 1]} : vector<2x128xf32> to vector<2x32xf32>
    %64 = math.tanh %63 : vector<2x32xf32>
    %65 = vector.extract_strided_slice %50 {offsets = [0, 96], sizes = [2, 32], strides = [1, 1]} : vector<2x128xf32> to vector<2x32xf32>
    %66 = arith.negf %65 : vector<2x32xf32>
    %67 = math.exp %66 : vector<2x32xf32>
    %cst_23 = arith.constant 1.000000e+00 : f32
    %68 = vector.broadcast %cst_23 : f32 to vector<2x32xf32>
    %69 = arith.addf %68, %67 : vector<2x32xf32>
    %70 = arith.divf %68, %69 : vector<2x32xf32>
    %71 = arith.mulf %62, %34 : vector<2x32xf32>
    %72 = arith.mulf %56, %64 : vector<2x32xf32>
    %73 = arith.addf %71, %72 : vector<2x32xf32>
    %74 = math.tanh %73 : vector<2x32xf32>
    %75 = arith.mulf %70, %74 : vector<2x32xf32>
    %c1_24 = arith.constant 1 : index
    %c0_25 = arith.constant 0 : index
    %c0_26 = arith.constant 0 : index
    %76 = vector.load %arg3[%c1_24, %c0_25, %c0_26] : memref<6x2x32xbf16, #tpu.memory_space<vmem>>, vector<1x2x32xbf16>
    %77 = vector.shape_cast %76 : vector<1x2x32xbf16> to vector<2x32xbf16>
    %78 = arith.extf %77 : vector<2x32xbf16> to vector<2x32xf32>
    %79 = arith.addf %75, %78 : vector<2x32xf32>
    %80 = arith.truncf %79 : vector<2x32xf32> to vector<2x32xbf16>
    %c1_27 = arith.constant 1 : index
    %c0_28 = arith.constant 0 : index
    %c0_29 = arith.constant 0 : index
    %81 = vector.load %arg5[%c1_27, %c0_28, %c0_29] : memref<6x2x32xbf16, #tpu.memory_space<vmem>>, vector<1x2x32xbf16>
    %82 = vector.shape_cast %81 : vector<1x2x32xbf16> to vector<2x32xbf16>
    %83 = vector.shape_cast %80 : vector<2x32xbf16> to vector<1x2x32xbf16>
    tpu.vector_store %arg5[%c1_27, %c0_28, %c0_29], %83 {strides = array<i32>} : memref<6x2x32xbf16, #tpu.memory_space<vmem>>, vector<1x2x32xbf16>,
    %c2 = arith.constant 2 : index
    %c0_30 = arith.constant 0 : index
    %c0_31 = arith.constant 0 : index
    %84 = vector.load %arg2[%c2, %c0_30, %c0_31] : memref<6x2x128xbf16, #tpu.memory_space<vmem>>, vector<1x2x128xbf16>
    %85 = vector.shape_cast %84 : vector<1x2x128xbf16> to vector<2x128xbf16>
    %86 = arith.extf %85 : vector<2x128xbf16> to vector<2x128xf32>
    %87 = arith.truncf %75 : vector<2x32xf32> to vector<2x32xbf16>
    %cst_32 = arith.constant dense<0.000000e+00> : vector<2x128xf32>
    %88 = tpu.matmul %87, %3, %cst_32 {dimension_numbers = #tpu.dot_dimension_numbers<[1], [0], [0], [1], [0, 0, 1, 1], [], []>} : vector<2x32xbf16>, vector<32x128xbf16>, vector<2x128xf32> -> vector<2x128xf32>
    %89 = arith.addf %86, %88 : vector<2x128xf32>
    %90 = vector.extract_strided_slice %89 {offsets = [0, 0], sizes = [2, 32], strides = [1, 1]} : vector<2x128xf32> to vector<2x32xf32>
    %91 = arith.negf %90 : vector<2x32xf32>
    %92 = math.exp %91 : vector<2x32xf32>
    %cst_33 = arith.constant 1.000000e+00 : f32
    %93 = vector.broadcast %cst_33 : f32 to vector<2x32xf32>
    %94 = arith.addf %93, %92 : vector<2x32xf32>
    %95 = arith.divf %93, %94 : vector<2x32xf32>
    %96 = vector.extract_strided_slice %89 {offsets = [0, 32], sizes = [2, 32], strides = [1, 1]} : vector<2x128xf32> to vector<2x32xf32>
    %97 = arith.negf %96 : vector<2x32xf32>
    %98 = math.exp %97 : vector<2x32xf32>
    %cst_34 = arith.constant 1.000000e+00 : f32
    %99 = vector.broadcast %cst_34 : f32 to vector<2x32xf32>
    %100 = arith.addf %99, %98 : vector<2x32xf32>
    %101 = arith.divf %99, %100 : vector<2x32xf32>
    %102 = vector.extract_strided_slice %89 {offsets = [0, 64], sizes = [2, 32], strides = [1, 1]} : vector<2x128xf32> to vector<2x32xf32>
    %103 = math.tanh %102 : vector<2x32xf32>
    %104 = vector.extract_strided_slice %89 {offsets = [0, 96], sizes = [2, 32], strides = [1, 1]} : vector<2x128xf32> to vector<2x32xf32>
    %105 = arith.negf %104 : vector<2x32xf32>
    %106 = math.exp %105 : vector<2x32xf32>
    %cst_35 = arith.constant 1.000000e+00 : f32
    %107 = vector.broadcast %cst_35 : f32 to vector<2x32xf32>
    %108 = arith.addf %107, %106 : vector<2x32xf32>
    %109 = arith.divf %107, %108 : vector<2x32xf32>
    %110 = arith.mulf %101, %73 : vector<2x32xf32>
    %111 = arith.mulf %95, %103 : vector<2x32xf32>
    %112 = arith.addf %110, %111 : vector<2x32xf32>
    %113 = math.tanh %112 : vector<2x32xf32>
    %114 = arith.mulf %109, %113 : vector<2x32xf32>
    %c2_36 = arith.constant 2 : index
    %c0_37 = arith.constant 0 : index
    %c0_38 = arith.constant 0 : index
    %115 = vector.load %arg3[%c2_36, %c0_37, %c0_38] : memref<6x2x32xbf16, #tpu.memory_space<vmem>>, vector<1x2x32xbf16>
    %116 = vector.shape_cast %115 : vector<1x2x32xbf16> to vector<2x32xbf16>
    %117 = arith.extf %116 : vector<2x32xbf16> to vector<2x32xf32>
    %118 = arith.addf %114, %117 : vector<2x32xf32>
    %119 = arith.truncf %118 : vector<2x32xf32> to vector<2x32xbf16>
    %c2_39 = arith.constant 2 : index
    %c0_40 = arith.constant 0 : index
    %c0_41 = arith.constant 0 : index
    %120 = vector.load %arg5[%c2_39, %c0_40, %c0_41] : memref<6x2x32xbf16, #tpu.memory_space<vmem>>, vector<1x2x32xbf16>
    %121 = vector.shape_cast %120 : vector<1x2x32xbf16> to vector<2x32xbf16>
    %122 = vector.shape_cast %119 : vector<2x32xbf16> to vector<1x2x32xbf16>
    tpu.vector_store %arg5[%c2_39, %c0_40, %c0_41], %122 {strides = array<i32>} : memref<6x2x32xbf16, #tpu.memory_space<vmem>>, vector<1x2x32xbf16>,
    %c3 = arith.constant 3 : index
    %c0_42 = arith.constant 0 : index
    %c0_43 = arith.constant 0 : index
    %123 = vector.load %arg2[%c3, %c0_42, %c0_43] : memref<6x2x128xbf16, #tpu.memory_space<vmem>>, vector<1x2x128xbf16>
    %124 = vector.shape_cast %123 : vector<1x2x128xbf16> to vector<2x128xbf16>
    %125 = arith.extf %124 : vector<2x128xbf16> to vector<2x128xf32>
    %126 = arith.truncf %114 : vector<2x32xf32> to vector<2x32xbf16>
    %cst_44 = arith.constant dense<0.000000e+00> : vector<2x128xf32>
    %127 = tpu.matmul %126, %3, %cst_44 {dimension_numbers = #tpu.dot_dimension_numbers<[1], [0], [0], [1], [0, 0, 1, 1], [], []>} : vector<2x32xbf16>, vector<32x128xbf16>, vector<2x128xf32> -> vector<2x128xf32>
    %128 = arith.addf %125, %127 : vector<2x128xf32>
    %129 = vector.extract_strided_slice %128 {offsets = [0, 0], sizes = [2, 32], strides = [1, 1]} : vector<2x128xf32> to vector<2x32xf32>
    %130 = arith.negf %129 : vector<2x32xf32>
    %131 = math.exp %130 : vector<2x32xf32>
    %cst_45 = arith.constant 1.000000e+00 : f32
    %132 = vector.broadcast %cst_45 : f32 to vector<2x32xf32>
    %133 = arith.addf %132, %131 : vector<2x32xf32>
    %134 = arith.divf %132, %133 : vector<2x32xf32>
    %135 = vector.extract_strided_slice %128 {offsets = [0, 32], sizes = [2, 32], strides = [1, 1]} : vector<2x128xf32> to vector<2x32xf32>
    %136 = arith.negf %135 : vector<2x32xf32>
    %137 = math.exp %136 : vector<2x32xf32>
    %cst_46 = arith.constant 1.000000e+00 : f32
    %138 = vector.broadcast %cst_46 : f32 to vector<2x32xf32>
    %139 = arith.addf %138, %137 : vector<2x32xf32>
    %140 = arith.divf %138, %139 : vector<2x32xf32>
    %141 = vector.extract_strided_slice %128 {offsets = [0, 64], sizes = [2, 32], strides = [1, 1]} : vector<2x128xf32> to vector<2x32xf32>
    %142 = math.tanh %141 : vector<2x32xf32>
    %143 = vector.extract_strided_slice %128 {offsets = [0, 96], sizes = [2, 32], strides = [1, 1]} : vector<2x128xf32> to vector<2x32xf32>
    %144 = arith.negf %143 : vector<2x32xf32>
    %145 = math.exp %144 : vector<2x32xf32>
    %cst_47 = arith.constant 1.000000e+00 : f32
    %146 = vector.broadcast %cst_47 : f32 to vector<2x32xf32>
    %147 = arith.addf %146, %145 : vector<2x32xf32>
    %148 = arith.divf %146, %147 : vector<2x32xf32>
    %149 = arith.mulf %140, %112 : vector<2x32xf32>
    %150 = arith.mulf %134, %142 : vector<2x32xf32>
    %151 = arith.addf %149, %150 : vector<2x32xf32>
    %152 = math.tanh %151 : vector<2x32xf32>
    %153 = arith.mulf %148, %152 : vector<2x32xf32>
    %c3_48 = arith.constant 3 : index
    %c0_49 = arith.constant 0 : index
    %c0_50 = arith.constant 0 : index
    %154 = vector.load %arg3[%c3_48, %c0_49, %c0_50] : memref<6x2x32xbf16, #tpu.memory_space<vmem>>, vector<1x2x32xbf16>
    %155 = vector.shape_cast %154 : vector<1x2x32xbf16> to vector<2x32xbf16>
    %156 = arith.extf %155 : vector<2x32xbf16> to vector<2x32xf32>
    %157 = arith.addf %153, %156 : vector<2x32xf32>
    %158 = arith.truncf %157 : vector<2x32xf32> to vector<2x32xbf16>
    %c3_51 = arith.constant 3 : index
    %c0_52 = arith.constant 0 : index
    %c0_53 = arith.constant 0 : index
    %159 = vector.load %arg5[%c3_51, %c0_52, %c0_53] : memref<6x2x32xbf16, #tpu.memory_space<vmem>>, vector<1x2x32xbf16>
    %160 = vector.shape_cast %159 : vector<1x2x32xbf16> to vector<2x32xbf16>
    %161 = vector.shape_cast %158 : vector<2x32xbf16> to vector<1x2x32xbf16>
    tpu.vector_store %arg5[%c3_51, %c0_52, %c0_53], %161 {strides = array<i32>} : memref<6x2x32xbf16, #tpu.memory_space<vmem>>, vector<1x2x32xbf16>,
    %c4 = arith.constant 4 : index
    %c0_54 = arith.constant 0 : index
    %c0_55 = arith.constant 0 : index
    %162 = vector.load %arg2[%c4, %c0_54, %c0_55] : memref<6x2x128xbf16, #tpu.memory_space<vmem>>, vector<1x2x128xbf16>
    %163 = vector.shape_cast %162 : vector<1x2x128xbf16> to vector<2x128xbf16>
    %164 = arith.extf %163 : vector<2x128xbf16> to vector<2x128xf32>
    %165 = arith.truncf %153 : vector<2x32xf32> to vector<2x32xbf16>
    %cst_56 = arith.constant dense<0.000000e+00> : vector<2x128xf32>
    %166 = tpu.matmul %165, %3, %cst_56 {dimension_numbers = #tpu.dot_dimension_numbers<[1], [0], [0], [1], [0, 0, 1, 1], [], []>} : vector<2x32xbf16>, vector<32x128xbf16>, vector<2x128xf32> -> vector<2x128xf32>
    %167 = arith.addf %164, %166 : vector<2x128xf32>
    %168 = vector.extract_strided_slice %167 {offsets = [0, 0], sizes = [2, 32], strides = [1, 1]} : vector<2x128xf32> to vector<2x32xf32>
    %169 = arith.negf %168 : vector<2x32xf32>
    %170 = math.exp %169 : vector<2x32xf32>
    %cst_57 = arith.constant 1.000000e+00 : f32
    %171 = vector.broadcast %cst_57 : f32 to vector<2x32xf32>
    %172 = arith.addf %171, %170 : vector<2x32xf32>
    %173 = arith.divf %171, %172 : vector<2x32xf32>
    %174 = vector.extract_strided_slice %167 {offsets = [0, 32], sizes = [2, 32], strides = [1, 1]} : vector<2x128xf32> to vector<2x32xf32>
    %175 = arith.negf %174 : vector<2x32xf32>
    %176 = math.exp %175 : vector<2x32xf32>
    %cst_58 = arith.constant 1.000000e+00 : f32
    %177 = vector.broadcast %cst_58 : f32 to vector<2x32xf32>
    %178 = arith.addf %177, %176 : vector<2x32xf32>
    %179 = arith.divf %177, %178 : vector<2x32xf32>
    %180 = vector.extract_strided_slice %167 {offsets = [0, 64], sizes = [2, 32], strides = [1, 1]} : vector<2x128xf32> to vector<2x32xf32>
    %181 = math.tanh %180 : vector<2x32xf32>
    %182 = vector.extract_strided_slice %167 {offsets = [0, 96], sizes = [2, 32], strides = [1, 1]} : vector<2x128xf32> to vector<2x32xf32>
    %183 = arith.negf %182 : vector<2x32xf32>
    %184 = math.exp %183 : vector<2x32xf32>
    %cst_59 = arith.constant 1.000000e+00 : f32
    %185 = vector.broadcast %cst_59 : f32 to vector<2x32xf32>
    %186 = arith.addf %185, %184 : vector<2x32xf32>
    %187 = arith.divf %185, %186 : vector<2x32xf32>
    %188 = arith.mulf %179, %151 : vector<2x32xf32>
    %189 = arith.mulf %173, %181 : vector<2x32xf32>
    %190 = arith.addf %188, %189 : vector<2x32xf32>
    %191 = math.tanh %190 : vector<2x32xf32>
    %192 = arith.mulf %187, %191 : vector<2x32xf32>
    %c4_60 = arith.constant 4 : index
    %c0_61 = arith.constant 0 : index
    %c0_62 = arith.constant 0 : index
    %193 = vector.load %arg3[%c4_60, %c0_61, %c0_62] : memref<6x2x32xbf16, #tpu.memory_space<vmem>>, vector<1x2x32xbf16>
    %194 = vector.shape_cast %193 : vector<1x2x32xbf16> to vector<2x32xbf16>
    %195 = arith.extf %194 : vector<2x32xbf16> to vector<2x32xf32>
    %196 = arith.addf %192, %195 : vector<2x32xf32>
    %197 = arith.truncf %196 : vector<2x32xf32> to vector<2x32xbf16>
    %c4_63 = arith.constant 4 : index
    %c0_64 = arith.constant 0 : index
    %c0_65 = arith.constant 0 : index
    %198 = vector.load %arg5[%c4_63, %c0_64, %c0_65] : memref<6x2x32xbf16, #tpu.memory_space<vmem>>, vector<1x2x32xbf16>
    %199 = vector.shape_cast %198 : vector<1x2x32xbf16> to vector<2x32xbf16>
    %200 = vector.shape_cast %197 : vector<2x32xbf16> to vector<1x2x32xbf16>
    tpu.vector_store %arg5[%c4_63, %c0_64, %c0_65], %200 {strides = array<i32>} : memref<6x2x32xbf16, #tpu.memory_space<vmem>>, vector<1x2x32xbf16>,
    %c5 = arith.constant 5 : index
    %c0_66 = arith.constant 0 : index
    %c0_67 = arith.constant 0 : index
    %201 = vector.load %arg2[%c5, %c0_66, %c0_67] : memref<6x2x128xbf16, #tpu.memory_space<vmem>>, vector<1x2x128xbf16>
    %202 = vector.shape_cast %201 : vector<1x2x128xbf16> to vector<2x128xbf16>
    %203 = arith.extf %202 : vector<2x128xbf16> to vector<2x128xf32>
    %204 = arith.truncf %192 : vector<2x32xf32> to vector<2x32xbf16>
    %cst_68 = arith.constant dense<0.000000e+00> : vector<2x128xf32>
    %205 = tpu.matmul %204, %3, %cst_68 {dimension_numbers = #tpu.dot_dimension_numbers<[1], [0], [0], [1], [0, 0, 1, 1], [], []>} : vector<2x32xbf16>, vector<32x128xbf16>, vector<2x128xf32> -> vector<2x128xf32>
    %206 = arith.addf %203, %205 : vector<2x128xf32>
    %207 = vector.extract_strided_slice %206 {offsets = [0, 0], sizes = [2, 32], strides = [1, 1]} : vector<2x128xf32> to vector<2x32xf32>
    %208 = arith.negf %207 : vector<2x32xf32>
    %209 = math.exp %208 : vector<2x32xf32>
    %cst_69 = arith.constant 1.000000e+00 : f32
    %210 = vector.broadcast %cst_69 : f32 to vector<2x32xf32>
    %211 = arith.addf %210, %209 : vector<2x32xf32>
    %212 = arith.divf %210, %211 : vector<2x32xf32>
    %213 = vector.extract_strided_slice %206 {offsets = [0, 32], sizes = [2, 32], strides = [1, 1]} : vector<2x128xf32> to vector<2x32xf32>
    %214 = arith.negf %213 : vector<2x32xf32>
    %215 = math.exp %214 : vector<2x32xf32>
    %cst_70 = arith.constant 1.000000e+00 : f32
    %216 = vector.broadcast %cst_70 : f32 to vector<2x32xf32>
    %217 = arith.addf %216, %215 : vector<2x32xf32>
    %218 = arith.divf %216, %217 : vector<2x32xf32>
    %219 = vector.extract_strided_slice %206 {offsets = [0, 64], sizes = [2, 32], strides = [1, 1]} : vector<2x128xf32> to vector<2x32xf32>
    %220 = math.tanh %219 : vector<2x32xf32>
    %221 = vector.extract_strided_slice %206 {offsets = [0, 96], sizes = [2, 32], strides = [1, 1]} : vector<2x128xf32> to vector<2x32xf32>
    %222 = arith.negf %221 : vector<2x32xf32>
    %223 = math.exp %222 : vector<2x32xf32>
    %cst_71 = arith.constant 1.000000e+00 : f32
    %224 = vector.broadcast %cst_71 : f32 to vector<2x32xf32>
    %225 = arith.addf %224, %223 : vector<2x32xf32>
    %226 = arith.divf %224, %225 : vector<2x32xf32>
    %227 = arith.mulf %218, %190 : vector<2x32xf32>
    %228 = arith.mulf %212, %220 : vector<2x32xf32>
    %229 = arith.addf %227, %228 : vector<2x32xf32>
    %230 = math.tanh %229 : vector<2x32xf32>
    %231 = arith.mulf %226, %230 : vector<2x32xf32>
    %c5_72 = arith.constant 5 : index
    %c0_73 = arith.constant 0 : index
    %c0_74 = arith.constant 0 : index
    %232 = vector.load %arg3[%c5_72, %c0_73, %c0_74] : memref<6x2x32xbf16, #tpu.memory_space<vmem>>, vector<1x2x32xbf16>
    %233 = vector.shape_cast %232 : vector<1x2x32xbf16> to vector<2x32xbf16>
    %234 = arith.extf %233 : vector<2x32xbf16> to vector<2x32xf32>
    %235 = arith.addf %231, %234 : vector<2x32xf32>
    %236 = arith.truncf %235 : vector<2x32xf32> to vector<2x32xbf16>
    %c5_75 = arith.constant 5 : index
    %c0_76 = arith.constant 0 : index
    %c0_77 = arith.constant 0 : index
    %237 = vector.load %arg5[%c5_75, %c0_76, %c0_77] : memref<6x2x32xbf16, #tpu.memory_space<vmem>>, vector<1x2x32xbf16>
    %238 = vector.shape_cast %237 : vector<1x2x32xbf16> to vector<2x32xbf16>
    %239 = vector.shape_cast %236 : vector<2x32xbf16> to vector<1x2x32xbf16>
    tpu.vector_store %arg5[%c5_75, %c0_76, %c0_77], %239 {strides = array<i32>} : memref<6x2x32xbf16, #tpu.memory_space<vmem>>, vector<1x2x32xbf16>,
    %c0_78 = arith.constant 0 : index
    %c0_79 = arith.constant 0 : index
    %240 = vector.load %arg6[%c0_78, %c0_79] : memref<2x32xf32, #tpu.memory_space<vmem>>, vector<2x32xf32>
    tpu.vector_store %arg6[%c0_78, %c0_79], %231 {strides = array<i32>} : memref<2x32xf32, #tpu.memory_space<vmem>>, vector<2x32xf32>,
    %c0_80 = arith.constant 0 : index
    %c0_81 = arith.constant 0 : index
    %241 = vector.load %arg7[%c0_80, %c0_81] : memref<2x32xf32, #tpu.memory_space<vmem>>, vector<2x32xf32>
    tpu.vector_store %arg7[%c0_80, %c0_81], %229 {strides = array<i32>} : memref<2x32xf32, #tpu.memory_space<vmem>>, vector<2x32xf32>,
    return
  }
  func.func @transform_0(%arg0: i32, %arg1: i32) -> (i32, i32, i32) {
    %c0_i32 = arith.constant 0 : i32
    %c0_i32_0 = arith.constant 0 : i32
    return %arg1, %arg0, %c0_i32 : i32, i32, i32
  }
  func.func @transform_1(%arg0: i32, %arg1: i32) -> (i32, i32, i32) {
    %c0_i32 = arith.constant 0 : i32
    %c0_i32_0 = arith.constant 0 : i32
    return %arg1, %arg0, %c0_i32 : i32, i32, i32
  }
  func.func @transform_2(%arg0: i32, %arg1: i32) -> (i32, i32) {
    %c0_i32 = arith.constant 0 : i32
    %c0_i32_0 = arith.constant 0 : i32
    %c0_i32_1 = arith.constant 0 : i32
    return %c0_i32, %c0_i32_0 : i32, i32
  }
  func.func @transform_3(%arg0: i32, %arg1: i32) -> (i32, i32, i32) {
    %c0_i32 = arith.constant 0 : i32
    %c0_i32_0 = arith.constant 0 : i32
    return %arg1, %arg0, %c0_i32 : i32, i32, i32
  }
}

</mosaic_0001>

<bundles_post_ra>
// kernel: gnmt16_forward.40
= control target key start
LH: loop header
LB: loop body
LE: loop exit
PB: predicated region body
PF: predicated region fallthrough
CT: control target
= control target key end

     0   :  { %v227_v0 = vmov 0.0   ;;  %vm228_vm0 = vmmov 0   ;;  %s282_s1 = inlined_call_operand.vmem [shape: bf16[128,128], index: 1, kind: input, shape index: {}]   ;;  %s283_s0 = inlined_call_operand.vmem [shape: bf16[16,128], index: 0, kind: input, shape index: {}]   ;;  %s284_s2 = inlined_call_operand.vmem [shape: f32[1,128], index: 2, kind: input, shape index: {}]   ;;  %s285_s3 = inlined_call_operand.vmem [shape: bf16[16,128], index: 3, kind: output, shape index: {}]  }
   0x1   :  { %196 = vmatprep.subr.bf16.mxu0 %v227_v0  ;;  %v218_v1 = vld [vmem:[%s282_s1 + $0x38] sm:$0xff]   ;;  %212 = vmatprep.mubr.msk.bf16.mxu0 %vm228_vm0, %v227_v0  ;;  %v219_v2 = vld [vmem:[%s282_s1 + $0x30] sm:$0xff]   ;;  %v220_v3 = vld [vmem:[%s282_s1 + $0x28] sm:$0xff]  }
   0x2   :  { %197 = vmatpush3.bf16.msra.mxu0 %v218_v1  ;;  %v221_v4 = vld [vmem:[%s282_s1 + $0x20] sm:$0xff]   ;;  %v222_v5 = vld [vmem:[%s282_s1 + $0x18] sm:$0xff]   ;;  %v223_v6 = vld [vmem:[%s282_s1 + $0x10] sm:$0xff]  }
   0x3   :  { %198 = vmatprep.subr.bf16.mxu0 %v227_v0  ;;  %v224_v7 = vld [vmem:[%s282_s1 + $0x8] sm:$0xff]   ;;  %v225_v8 = vld [vmem:[%s282_s1] sm:$0xff]  }
   0x4   :  { %v226_v9 = vld [vmem:[%s283_s0] sm:$0xff]  }
   0x5   :  { %v177_v11 = vld [vmem:[%s284_s2] ss:$0 sm:$0xff] }
   0x6   :  { %199 = vmatpush3.bf16.msra.mxu0 %v219_v2 }
   0x7   :  { %200 = vmatprep.subr.bf16.mxu0 %v227_v0 }
   0xa   :  { %201 = vmatpush3.bf16.msra.mxu0 %v220_v3 }
   0xb   :  { %202 = vmatprep.subr.bf16.mxu0 %v227_v0 }
   0xe   :  { %203 = vmatpush3.bf16.msra.mxu0 %v221_v4 }
   0xf   :  { %204 = vmatprep.subr.bf16.mxu0 %v227_v0 }
  0x12   :  { %205 = vmatpush3.bf16.msra.mxu0 %v222_v5 }
  0x13   :  { %206 = vmatprep.subr.bf16.mxu0 %v227_v0 }
  0x16   :  { %207 = vmatpush3.bf16.msra.mxu0 %v223_v6 }
  0x17   :  { %208 = vmatprep.subr.bf16.mxu0 %v227_v0 }
  0x1a   :  { %209 = vmatpush3.bf16.msra.mxu0 %v224_v7 }
  0x1b   :  { %210 = vmatprep.subr.bf16.mxu0 %v227_v0 }
  0x1e   :  { %211 = vmatpush3.bf16.msra.mxu0 %v225_v8 }
  0x21   :  { %213 = vmatmul.mubr.bf16.vlgmr.msra.gmra.mxu0 %v226_v9 }
  0xe1   :  { %v129_v10 = vpop.f32.mrf.mxu0 }
  0xe2   :  { %v152_v14 = vadd.f32 %v177_v11, %v129_v10 }
  0xe3   :  { %v214_v12 = vpop.f32.mrf.mxu0 }
  0xe5   :  { %v132_v13 = vpop.f32.mrf.mxu0 }
  0xe6   :  { %v153_v15 = vadd.f32 %v177_v11, %v132_v13 }
  0xe7   :  { %v215_v16 = vpop.f32.mrf.mxu0 }
  0xe8   :  { %v185_v17 = vpack.c.bf16 %v153_v15, %v152_v14 }
  0xea   :  { %186 = vst [vmem:[%s285_s3] sm:$0xff] %v185_v17  }

// kernel: gnmt16_forward.42
= control target key start
LH: loop header
LB: loop body
LE: loop exit
PB: predicated region body
PF: predicated region fallthrough
CT: control target
= control target key end

     0   :  { %v399_v0 = vmov 0.0   ;;  %vm400_vm0 = vmmov 0   ;;  %s491_s1 = inlined_call_operand.vmem [shape: bf16[128,128], index: 1, kind: input, shape index: {}]   ;;  %s492_s3 = inlined_call_operand.vmem [shape: bf16[128,128], index: 3, kind: input, shape index: {}]   ;;  %s493_s0 = inlined_call_operand.vmem [shape: bf16[16,128], index: 0, kind: input, shape index: {}]   ;;  %s494_s2 = inlined_call_operand.vmem [shape: bf16[16,128], index: 2, kind: input, shape index: {}]   ;;  %s495_s4 = inlined_call_operand.vmem [shape: f32[1,128], index: 4, kind: input, shape index: {}]   ;;  %s496_s5 = inlined_call_operand.vmem [shape: bf16[16,128], index: 5, kind: output, shape index: {}]  }
   0x1   :  { %339 = vmatprep.subr.bf16.mxu0 %v399_v0  ;;  %359 = vmatprep.subr.bf16.mxu1 %v399_v0  ;;  %v381_v1 = vld [vmem:[%s491_s1 + $0x38] sm:$0xff]   ;;  %v383_v3 = vld [vmem:[%s491_s1 + $0x30] sm:$0xff]   ;;  %v385_v5 = vld [vmem:[%s491_s1 + $0x28] sm:$0xff]  }
   0x2   :  { %v382_v2 = vld [vmem:[%s492_s3 + $0x38] sm:$0xff]   ;;  %355 = vmatprep.mubr.msk.bf16.mxu0 %vm400_vm0, %v399_v0  ;;  %375 = vmatprep.mubr.msk.bf16.mxu1 %vm400_vm0, %v399_v0  ;;  %v384_v4 = vld [vmem:[%s492_s3 + $0x30] sm:$0xff]   ;;  %v386_v6 = vld [vmem:[%s492_s3 + $0x28] sm:$0xff]  }
   0x3   :  { %340 = vmatpush3.bf16.msra.mxu0 %v381_v1  ;;  %360 = vmatpush3.bf16.msra.mxu1 %v382_v2  ;;  %v387_v7 = vld [vmem:[%s491_s1 + $0x20] sm:$0xff]   ;;  %v389_v9 = vld [vmem:[%s491_s1 + $0x18] sm:$0xff]   ;;  %v391_v11 = vld [vmem:[%s491_s1 + $0x10] sm:$0xff]  }
   0x4   :  { %341 = vmatprep.subr.bf16.mxu0 %v399_v0  ;;  %361 = vmatprep.subr.bf16.mxu1 %v399_v0  ;;  %v388_v8 = vld [vmem:[%s492_s3 + $0x20] sm:$0xff]   ;;  %v390_v10 = vld [vmem:[%s492_s3 + $0x18] sm:$0xff]   ;;  %v392_v12 = vld [vmem:[%s492_s3 + $0x10] sm:$0xff]  }
   0x5   :  { %v393_v13 = vld [vmem:[%s491_s1 + $0x8] sm:$0xff]   ;;  %v395_v15 = vld [vmem:[%s491_s1] sm:$0xff]  }
   0x6   :  { %v394_v14 = vld [vmem:[%s492_s3 + $0x8] sm:$0xff]   ;;  %v396_v16 = vld [vmem:[%s492_s3] sm:$0xff]  }
   0x7   :  { %342 = vmatpush3.bf16.msra.mxu0 %v383_v3  ;;  %362 = vmatpush3.bf16.msra.mxu1 %v384_v4  ;;  %v397_v17 = vld [vmem:[%s493_s0] sm:$0xff]  }
   0x8   :  { %343 = vmatprep.subr.bf16.mxu0 %v399_v0  ;;  %363 = vmatprep.subr.bf16.mxu1 %v399_v0  ;;  %v398_v18 = vld [vmem:[%s494_s2] sm:$0xff]  }
   0x9   :  { %v311_v25 = vld [vmem:[%s495_s4] ss:$0 sm:$0xff] }
   0xb   :  { %344 = vmatpush3.bf16.msra.mxu0 %v385_v5  ;;  %364 = vmatpush3.bf16.msra.mxu1 %v386_v6 }
   0xc   :  { %345 = vmatprep.subr.bf16.mxu0 %v399_v0  ;;  %365 = vmatprep.subr.bf16.mxu1 %v399_v0 }
   0xf   :  { %346 = vmatpush3.bf16.msra.mxu0 %v387_v7  ;;  %366 = vmatpush3.bf16.msra.mxu1 %v388_v8 }
  0x10   :  { %347 = vmatprep.subr.bf16.mxu0 %v399_v0  ;;  %367 = vmatprep.subr.bf16.mxu1 %v399_v0 }
  0x13   :  { %348 = vmatpush3.bf16.msra.mxu0 %v389_v9  ;;  %368 = vmatpush3.bf16.msra.mxu1 %v390_v10 }
  0x14   :  { %349 = vmatprep.subr.bf16.mxu0 %v399_v0  ;;  %369 = vmatprep.subr.bf16.mxu1 %v399_v0 }
  0x17   :  { %350 = vmatpush3.bf16.msra.mxu0 %v391_v11  ;;  %370 = vmatpush3.bf16.msra.mxu1 %v392_v12 }
  0x18   :  { %351 = vmatprep.subr.bf16.mxu0 %v399_v0  ;;  %371 = vmatprep.subr.bf16.mxu1 %v399_v0 }
  0x1b   :  { %352 = vmatpush3.bf16.msra.mxu0 %v393_v13  ;;  %372 = vmatpush3.bf16.msra.mxu1 %v394_v14 }
  0x1c   :  { %353 = vmatprep.subr.bf16.mxu0 %v399_v0  ;;  %373 = vmatprep.subr.bf16.mxu1 %v399_v0 }
  0x1f   :  { %354 = vmatpush3.bf16.msra.mxu0 %v395_v15  ;;  %374 = vmatpush3.bf16.msra.mxu1 %v396_v16 }
  0x22   :  { %356 = vmatmul.mubr.bf16.vlgmr.msra.gmra.mxu0 %v397_v17  ;;  %376 = vmatmul.mubr.bf16.vlgmr.msra.gmra.mxu1 %v398_v18 }
  0xe2   :  { %v135_v19 = vpop.f32.mrf.mxu0  ;;  %v254_v20 = vpop.f32.mrf.mxu1 }
  0xe3   :  { %v261_v23 = vadd.f32 %v254_v20, %v135_v19 }
  0xe4   :  { %v357_v21 = vpop.f32.mrf.mxu0  ;;  %v377_v22 = vpop.f32.mrf.mxu1 }
  0xe5   :  { %v277_v30 = vadd.f32 %v311_v25, %v261_v23 }
  0xe6   :  { %v138_v24 = vpop.f32.mrf.mxu0  ;;  %v257_v26 = vpop.f32.mrf.mxu1 }
  0xe7   :  { %v262_v27 = vadd.f32 %v257_v26, %v138_v24 }
  0xe8   :  { %v358_v28 = vpop.f32.mrf.mxu0  ;;  %v378_v29 = vpop.f32.mrf.mxu1 }
  0xe9   :  { %v278_v31 = vadd.f32 %v311_v25, %v262_v27 }
  0xeb   :  { %v319_v32 = vpack.c.bf16 %v278_v31, %v277_v30 }
  0xed   :  { %320 = vst [vmem:[%s496_s5] sm:$0xff] %v319_v32  }

// kernel: gnmt16_forward.41
= control target key start
LH: loop header
LB: loop body
LE: loop exit
PB: predicated region body
PF: predicated region fallthrough
CT: control target
= control target key end

     0   :  { %vm16_vm0 = vcmask 254976   ;;  %v1022_v0 = vmov 0.0   ;;  %vm1023_vm1 = vmmov 0   ;;  %vm40_vm2 = vcmask 261120   ;;  %s1024_s14 = smov 64   ;;  %s1025_s15 = smov 32   ;;  %s1237_s1 = inlined_call_operand.vmem [shape: bf16[32,128], index: 1, kind: input, shape index: {}]   ;;  %s1238_s0 = inlined_call_operand.vmem [shape: bf16[8,2,128], index: 0, kind: input, shape index: {}]   ;;  %s1239_s2 = inlined_call_operand.vmem [shape: bf16[8,2,32], index: 2, kind: output, shape index: {}]  }
   0x1   :  { %885 = vmatprep.subr.bf16.mxu0 %v1022_v0  ;;  %v1048_v1 = vld [vmem:[%s1237_s1 + $0x8] sm:$0xff]   ;;  %889 = vmatprep.mubr.msk.bf16.mxu0 %vm1023_vm1, %v1022_v0  ;;  %17 = vst.msk [vmem:[#allocation2] sm:$0x3] %vm16_vm0, %v1022_v0  ;;  %18 = vst.msk [vmem:[#allocation3] sm:$0x3] %vm16_vm0, %v1022_v0  ;;  %v1063_v2 = vld [vmem:[%s1237_s1] sm:$0xff]  }
   0x2   :  { %893 = vmatprep.subr.bf16.mxu1 %v1022_v0  ;;  %897 = vmatprep.mubr.msk.bf16.mxu1 %vm1023_vm1, %v1022_v0  ;;  %v25_v5 = vld [vmem:[%s1238_s0] sm:$0x1]  ;;  %v833_v29 = vld [vmem:[%s1238_s0 + $0x1] sm:$0x1]  ;;  %v837_v51 = vld [vmem:[%s1238_s0 + $0x2] sm:$0x1] }
   0x3   :  { %886 = vmatpush3.bf16.msra.mxu0 %v1048_v1  ;;  %894 = vmatpush3.bf16.msra.mxu1 %v1048_v1  ;;  %v26_v6 = vunpack.c.l.bf16 %v25_v5  ;;  %v143_v30 = vunpack.c.l.bf16 %v833_v29  ;;  %v237_v52 = vunpack.c.l.bf16 %v837_v51  ;;  %vm139_vm3 = vcmask 253952  }
   0x4   :  { %887 = vmatprep.subr.bf16.mxu0 %v1022_v0  ;;  %895 = vmatprep.subr.bf16.mxu1 %v1022_v0 }
   0x7   :  { %888 = vmatpush3.bf16.msra.mxu0 %v1063_v2  ;;  %896 = vmatpush3.bf16.msra.mxu1 %v1063_v2 }
   0x8   :  { %v23_v3 = vld [vmem:[#allocation2] sm:$0x3]  ;;  %901 = vmatprep.subr.bf16.mxu0 %v1022_v0  ;;  %909 = vmatprep.subr.bf16.mxu1 %v1022_v0  ;;  %v832_v13 = vld.sshfl [vmem:[#allocation3] sm:$0x3 pattern:$0x76325410] }
   0x9   :  { %v27_v4 = vpack.c.bf16 %v23_v3, %v23_v3 }
   0xb   :  { %890 = vmatmul.mubr.msk.bf16.vlgmr.msra.gmra.mxu0 %vm40_vm2, %v27_v4 }
   0xc   :  { %902 = vmatpush3.bf16.msra.mxu0 %v1048_v1  ;;  %905 = vmatprep.mubr.msk.bf16.mxu0 %vm1023_vm1, %v1022_v0 }
   0xd   :  { %903 = vmatprep.subr.bf16.mxu0 %v1022_v0 }
  0x10   :  { %904 = vmatpush3.bf16.msra.mxu0 %v1063_v2 }
  0x11   :  { %917 = vmatprep.subr.bf16.mxu0 %v1022_v0 }
  0xcb   :  { %v78_v7 = vpop.f32.mrf.mxu0 }
  0xcc   :  { %v84_v8 = vadd.f32 %v78_v7, %v26_v6 }
  0xcd   :  { %v891_v9 = vpop.f32.mrf.mxu0 }
  0xce   :  { %958 = vtanh.f32 %v84_v8  ;;  %v831_v14 = vmul.f32 -1.442695, %v84_v8 }
  0xcf   :  { %v81_v10 = vpop.f32.mrf.mxu0 }
  0xd0   :  { %960 = vpow2.f32 %v831_v14 }
  0xd1   :  { %v892_v11 = vpop.f32.mrf.mxu0 }
  0xdb   :  { %v959_v12 = vpop.eup %958 }
  0xdc   :  { %105 = vrot.lane.b32.xlu0 %v959_v12, %s1024_s14  ;;  %v841_v12 = vld [vmem:[%s1238_s0 + $0x3] sm:$0x1] }
  0xdd   :  { %v961_v15 = vpop.eup %960 }
  0xde   :  { %v88_v16 = vadd.f32 1.0, %v961_v15 }
  0xe0   :  { %100 = vrot.lane.b32.xlu0 %v832_v13, %s1025_s15  ;;  %962 = vrcp.f32 %v88_v16  ;;  %v331_v13 = vunpack.c.l.bf16 %v841_v12 }
  0xed   :  { %v963_v17 = vpop.eup %962 }
 0x14e   :  { %v106_v18 = vpop.permute.xlu0 %105 }
 0x14f   :  { %v108_v19 = vmul.f32 %v963_v17, %v106_v18 }
 0x151   :  { %110 = vrot.lane.b32.xlu1 %v108_v19, %s1025_s15 }
 0x152   :  { %v101_v20 = vpop.permute.xlu0 %100 }
 0x153   :  { %v103_v21 = vmul.f32 %v963_v17, %v101_v20 }
 0x1c3   :  { %v111_v22 = vpop.permute.xlu1 %110 }
 0x1c4   :  { %v113_v23 = vadd.f32 %v111_v22, %v103_v21 }
 0x1c6   :  { %964 = vtanh.f32 %v113_v23 }
 0x1d3   :  { %v965_v24 = vpop.eup %964 }
 0x1d4   :  { %116 = vrot.lane.b32.xlu1 %v965_v24, %s1024_s14 }
 0x246   :  { %v117_v25 = vpop.permute.xlu1 %116 }
 0x247   :  { %v119_v26 = vmul.f32 %v963_v17, %v117_v25 }
 0x249   :  { %v1086_v27 = vpack.c.bf16 %v119_v26, %v119_v26 }
 0x24b   :  { %144 = vrot.lane.b32.xlu0 %v1086_v27, %s1025_s15 }
 0x2bd   :  { %v145_v28 = vpop.permute.xlu0 %144 }
 0x2be   :  { %898 = vmatmul.mubr.msk.bf16.vlgmr.msra.gmra.mxu1 %vm40_vm2, %v145_v28 }
 0x2bf   :  { %910 = vmatpush3.bf16.msra.mxu1 %v1048_v1  ;;  %913 = vmatprep.mubr.msk.bf16.mxu1 %vm1023_vm1, %v1022_v0 }
 0x2c0   :  { %911 = vmatprep.subr.bf16.mxu1 %v1022_v0 }
 0x2c3   :  { %912 = vmatpush3.bf16.msra.mxu1 %v1063_v2 }
 0x2c4   :  { %925 = vmatprep.subr.bf16.mxu1 %v1022_v0 }
 0x37e   :  { %v183_v31 = vpop.f32.mrf.mxu1 }
 0x37f   :  { %v189_v32 = vadd.f32 %v183_v31, %v143_v30 }
 0x380   :  { %v899_v33 = vpop.f32.mrf.mxu1 }
 0x381   :  { %966 = vtanh.f32 %v189_v32  ;;  %v835_v37 = vmul.f32 -1.442695, %v189_v32 }
 0x382   :  { %v186_v34 = vpop.f32.mrf.mxu1 }
 0x383   :  { %968 = vpow2.f32 %v835_v37 }
 0x384   :  { %v900_v35 = vpop.f32.mrf.mxu1 }
 0x385   :  { %v845_v35 = vld [vmem:[%s1238_s0 + $0x4] sm:$0x1] }
 0x38e   :  { %v967_v36 = vpop.eup %966 }
 0x38f   :  { %199 = vrot.lane.b32.xlu1 %v967_v36, %s1024_s14  ;;  %v425_v36 = vunpack.c.l.bf16 %v845_v35 }
 0x390   :  { %v969_v38 = vpop.eup %968 }
 0x391   :  { %v193_v39 = vadd.f32 1.0, %v969_v38 }
 0x393   :  { %970 = vrcp.f32 %v193_v39 }
 0x3a0   :  { %v971_v40 = vpop.eup %970 }
 0x3a1   :  { %v197_v43 = vmul.f32 %v971_v40, %v113_v23 }
 0x401   :  { %v200_v41 = vpop.permute.xlu1 %199 }
 0x402   :  { %v202_v42 = vmul.f32 %v971_v40, %v200_v41 }
 0x404   :  { %204 = vrot.lane.b32.xlu0 %v202_v42, %s1025_s15 }
 0x476   :  { %v205_v44 = vpop.permute.xlu0 %204 }
 0x477   :  { %v207_v45 = vadd.f32 %v205_v44, %v197_v43 }
 0x479   :  { %972 = vtanh.f32 %v207_v45 }
 0x486   :  { %v973_v46 = vpop.eup %972 }
 0x487   :  { %210 = vrot.lane.b32.xlu1 %v973_v46, %s1024_s14 }
 0x4f9   :  { %v211_v47 = vpop.permute.xlu1 %210 }
 0x4fa   :  { %v213_v48 = vmul.f32 %v971_v40, %v211_v47 }
 0x4fc   :  { %v1103_v49 = vpack.c.bf16 %v213_v48, %v213_v48 }
 0x4fe   :  { %238 = vrot.lane.b32.xlu0 %v1103_v49, %s1025_s15 }
 0x570   :  { %v239_v50 = vpop.permute.xlu0 %238 }
 0x571   :  { %906 = vmatmul.mubr.msk.bf16.vlgmr.msra.gmra.mxu0 %vm40_vm2, %v239_v50 }
 0x572   :  { %918 = vmatpush3.bf16.msra.mxu0 %v1048_v1  ;;  %921 = vmatprep.mubr.msk.bf16.mxu0 %vm1023_vm1, %v1022_v0 }
 0x573   :  { %919 = vmatprep.subr.bf16.mxu0 %v1022_v0 }
 0x576   :  { %920 = vmatpush3.bf16.msra.mxu0 %v1063_v2 }
 0x577   :  { %933 = vmatprep.subr.bf16.mxu0 %v1022_v0 }
 0x631   :  { %v277_v53 = vpop.f32.mrf.mxu0 }
 0x632   :  { %v283_v54 = vadd.f32 %v277_v53, %v237_v52 }
 0x633   :  { %v907_v55 = vpop.f32.mrf.mxu0 }
 0x634   :  { %974 = vtanh.f32 %v283_v54  ;;  %v839_v59 = vmul.f32 -1.442695, %v283_v54 }
 0x635   :  { %v280_v56 = vpop.f32.mrf.mxu0 }
 0x636   :  { %976 = vpow2.f32 %v839_v59 }
 0x637   :  { %v908_v57 = vpop.f32.mrf.mxu0 }
 0x641   :  { %v975_v58 = vpop.eup %974 }
 0x642   :  { %293 = vrot.lane.b32.xlu1 %v975_v58, %s1024_s14  ;;  %v849_v58 = vld [vmem:[%s1238_s0 + $0x5] sm:$0x1] }
 0x643   :  { %v977_v60 = vpop.eup %976  ;;  %v519_v59 = vunpack.c.l.bf16 %v849_v58 }
 0x644   :  { %v287_v61 = vadd.f32 1.0, %v977_v60 }
 0x646   :  { %978 = vrcp.f32 %v287_v61 }
 0x653   :  { %v979_v62 = vpop.eup %978 }
 0x654   :  { %v291_v4 = vmul.f32 %v979_v62, %v207_v45 }
 0x6b4   :  { %v294_v63 = vpop.permute.xlu1 %293 }
 0x6b5   :  { %v296_v3 = vmul.f32 %v979_v62, %v294_v63 }
 0x6b7   :  { %298 = vrot.lane.b32.xlu0 %v296_v3, %s1025_s15 }
 0x729   :  { %v299_v5 = vpop.permute.xlu0 %298 }
 0x72a   :  { %v301_v6 = vadd.f32 %v299_v5, %v291_v4 }
 0x72c   :  { %980 = vtanh.f32 %v301_v6 }
 0x739   :  { %v981_v7 = vpop.eup %980 }
 0x73a   :  { %304 = vrot.lane.b32.xlu1 %v981_v7, %s1024_s14 }
 0x7ac   :  { %v305_v8 = vpop.permute.xlu1 %304 }
 0x7ad   :  { %v307_v9 = vmul.f32 %v979_v62, %v305_v8 }
 0x7af   :  { %v1120_v10 = vpack.c.bf16 %v307_v9, %v307_v9 }
 0x7b1   :  { %332 = vrot.lane.b32.xlu0 %v1120_v10, %s1025_s15 }
 0x823   :  { %v333_v11 = vpop.permute.xlu0 %332 }
 0x824   :  { %914 = vmatmul.mubr.msk.bf16.vlgmr.msra.gmra.mxu1 %vm40_vm2, %v333_v11 }
 0x825   :  { %926 = vmatpush3.bf16.msra.mxu1 %v1048_v1  ;;  %929 = vmatprep.mubr.msk.bf16.mxu1 %vm1023_vm1, %v1022_v0 }
 0x826   :  { %927 = vmatprep.subr.bf16.mxu1 %v1022_v0 }
 0x829   :  { %928 = vmatpush3.bf16.msra.mxu1 %v1063_v2 }
 0x82a   :  { %941 = vmatprep.subr.bf16.mxu1 %v1022_v0 }
 0x8e4   :  { %v371_v14 = vpop.f32.mrf.mxu1 }
 0x8e5   :  { %v377_v15 = vadd.f32 %v371_v14, %v331_v13 }
 0x8e6   :  { %v915_v16 = vpop.f32.mrf.mxu1 }
 0x8e7   :  { %982 = vtanh.f32 %v377_v15  ;;  %v843_v20 = vmul.f32 -1.442695, %v377_v15 }
 0x8e8   :  { %v374_v17 = vpop.f32.mrf.mxu1 }
 0x8e9   :  { %984 = vpow2.f32 %v843_v20  ;;  %v853_v17 = vld [vmem:[%s1238_s0 + $0x6] sm:$0x1] }
 0x8ea   :  { %v916_v18 = vpop.f32.mrf.mxu1 }
 0x8eb   :  { %v613_v18 = vunpack.c.l.bf16 %v853_v17 }
 0x8f4   :  { %v983_v19 = vpop.eup %982 }
 0x8f5   :  { %387 = vrot.lane.b32.xlu1 %v983_v19, %s1024_s14 }
 0x8f6   :  { %v985_v21 = vpop.eup %984 }
 0x8f7   :  { %v381_v22 = vadd.f32 1.0, %v985_v21 }
 0x8f9   :  { %986 = vrcp.f32 %v381_v22 }
 0x906   :  { %v987_v23 = vpop.eup %986 }
 0x907   :  { %v385_v26 = vmul.f32 %v987_v23, %v301_v6 }
 0x967   :  { %v388_v24 = vpop.permute.xlu1 %387 }
 0x968   :  { %v390_v25 = vmul.f32 %v987_v23, %v388_v24 }
 0x96a   :  { %392 = vrot.lane.b32.xlu0 %v390_v25, %s1025_s15 }
 0x9dc   :  { %v393_v28 = vpop.permute.xlu0 %392 }
 0x9dd   :  { %v395_v29 = vadd.f32 %v393_v28, %v385_v26 }
 0x9df   :  { %988 = vtanh.f32 %v395_v29 }
 0x9ec   :  { %v989_v30 = vpop.eup %988 }
 0x9ed   :  { %398 = vrot.lane.b32.xlu1 %v989_v30, %s1024_s14 }
 0xa5f   :  { %v399_v31 = vpop.permute.xlu1 %398 }
 0xa60   :  { %v401_v32 = vmul.f32 %v987_v23, %v399_v31 }
 0xa62   :  { %v1137_v33 = vpack.c.bf16 %v401_v32, %v401_v32 }
 0xa64   :  { %426 = vrot.lane.b32.xlu0 %v1137_v33, %s1025_s15 }
 0xad6   :  { %v427_v34 = vpop.permute.xlu0 %426 }
 0xad7   :  { %922 = vmatmul.mubr.msk.bf16.vlgmr.msra.gmra.mxu0 %vm40_vm2, %v427_v34 }
 0xad8   :  { %934 = vmatpush3.bf16.msra.mxu0 %v1048_v1  ;;  %937 = vmatprep.mubr.msk.bf16.mxu0 %vm1023_vm1, %v1022_v0 }
 0xad9   :  { %935 = vmatprep.subr.bf16.mxu0 %v1022_v0 }
 0xadc   :  { %936 = vmatpush3.bf16.msra.mxu0 %v1063_v2 }
 0xb97   :  { %v465_v37 = vpop.f32.mrf.mxu0 }
 0xb98   :  { %v471_v38 = vadd.f32 %v465_v37, %v425_v36 }
 0xb99   :  { %v923_v39 = vpop.f32.mrf.mxu0 }
 0xb9a   :  { %990 = vtanh.f32 %v471_v38  ;;  %v847_v43 = vmul.f32 -1.442695, %v471_v38 }
 0xb9b   :  { %v468_v40 = vpop.f32.mrf.mxu0 }
 0xb9c   :  { %992 = vpow2.f32 %v847_v43 }
 0xb9d   :  { %v924_v41 = vpop.f32.mrf.mxu0 }
 0xb9e   :  { %v857_v41 = vld [vmem:[%s1238_s0 + $0x7] sm:$0x1] }
 0xba7   :  { %v991_v42 = vpop.eup %990 }
 0xba8   :  { %481 = vrot.lane.b32.xlu1 %v991_v42, %s1024_s14  ;;  %v707_v42 = vunpack.c.l.bf16 %v857_v41 }
 0xba9   :  { %v993_v44 = vpop.eup %992 }
 0xbaa   :  { %v475_v45 = vadd.f32 1.0, %v993_v44 }
 0xbac   :  { %994 = vrcp.f32 %v475_v45 }
 0xbb9   :  { %v995_v46 = vpop.eup %994 }
 0xbba   :  { %v479_v50 = vmul.f32 %v995_v46, %v395_v29 }
 0xc1a   :  { %v482_v47 = vpop.permute.xlu1 %481 }
 0xc1b   :  { %v484_v48 = vmul.f32 %v995_v46, %v482_v47 }
 0xc1d   :  { %486 = vrot.lane.b32.xlu0 %v484_v48, %s1025_s15 }
 0xc8f   :  { %v487_v51 = vpop.permute.xlu0 %486 }
 0xc90   :  { %v489_v52 = vadd.f32 %v487_v51, %v479_v50 }
 0xc92   :  { %996 = vtanh.f32 %v489_v52 }
 0xc9f   :  { %v997_v53 = vpop.eup %996 }
 0xca0   :  { %492 = vrot.lane.b32.xlu1 %v997_v53, %s1024_s14  ;;  %v1026_v53 = vmov 1966171168  }
 0xd12   :  { %v493_v54 = vpop.permute.xlu1 %492 }
 0xd13   :  { %v495_v55 = vmul.f32 %v995_v46, %v493_v54  ;;  %v123_v54 = vunpack.c.l.s4 %v1026_v53 }
 0xd15   :  { %v1153_v56 = vpack.c.bf16 %v495_v55, %v495_v55  ;;  %v125_v55 = vlaneseq }
 0xd17   :  { %520 = vrot.lane.b32.xlu0 %v1153_v56, %s1025_s15  ;;  %v126_v58 = vshrl.u32 %v125_v55, 7 }
 0xd89   :  { %v521_v57 = vpop.permute.xlu0 %520 }
 0xd8a   :  { %930 = vmatmul.mubr.msk.bf16.vlgmr.msra.gmra.mxu1 %vm40_vm2, %v521_v57  ;;  %v124_v57 = vunpack.c.0.s8 %v123_v54 }
 0xd8b   :  { %942 = vmatpush3.bf16.msra.mxu1 %v1048_v1  ;;  %945 = vmatprep.mubr.msk.bf16.mxu1 %vm1023_vm1, %v1022_v0 }
 0xd8c   :  { %943 = vmatprep.subr.bf16.mxu1 %v1022_v0 }
 0xd8f   :  { %944 = vmatpush3.bf16.msra.mxu1 %v1063_v2 }
 0xe4a   :  { %v559_v60 = vpop.f32.mrf.mxu1 }
 0xe4b   :  { %v565_v61 = vadd.f32 %v559_v60, %v519_v59  ;;  %v127_v59 = vsub.s32 %v124_v57, %v126_v58 }
 0xe4c   :  { %v931_v62 = vpop.f32.mrf.mxu1 }
 0xe4d   :  { %998 = vtanh.f32 %v565_v61  ;;  %v851_v1 = vmul.f32 -1.442695, %v565_v61  ;;  %v128_v62 = vrot.slane %v1086_v27, %v127_v59 }
 0xe4e   :  { %v562_v63 = vpop.f32.mrf.mxu1 }
 0xe4f   :  { %1000 = vpow2.f32 %v851_v1  ;;  %v504_v1 = vrot.slane %v1153_v56, %v127_v59 }
 0xe50   :  { %v932_v3 = vpop.f32.mrf.mxu1 }
 0xe51   :  { %v316_v3 = vrot.slane %v1120_v10, %v127_v59 }
 0xe5a   :  { %v999_v4 = vpop.eup %998 }
 0xe5b   :  { %575 = vrot.lane.b32.xlu1 %v999_v4, %s1024_s14  ;;  %v135_v4 = vrot.slane %v128_v62, %v127_v59 }
 0xe5c   :  { %v1001_v5 = vpop.eup %1000 }
 0xe5d   :  { %v569_v0 = vadd.f32 1.0, %v1001_v5  ;;  %v323_v5 = vrot.slane %v316_v3, %v127_v59 }
 0xe5f   :  { %1002 = vrcp.f32 %v569_v0 }
 0xe6c   :  { %v1003_v2 = vpop.eup %1002 }
 0xe6d   :  { %v573_v8 = vmul.f32 %v1003_v2, %v489_v52 }
 0xecd   :  { %v576_v6 = vpop.permute.xlu1 %575 }
 0xece   :  { %v578_v7 = vmul.f32 %v1003_v2, %v576_v6 }
 0xed0   :  { %580 = vrot.lane.b32.xlu0 %v578_v7, %s1025_s15 }
 0xf42   :  { %v581_v9 = vpop.permute.xlu0 %580 }
 0xf43   :  { %v583_v11 = vadd.f32 %v581_v9, %v573_v8 }
 0xf45   :  { %1004 = vtanh.f32 %v583_v11 }
 0xf52   :  { %v1005_v12 = vpop.eup %1004 }
 0xf53   :  { %586 = vrot.lane.b32.xlu1 %v1005_v12, %s1024_s14 }
 0xfc5   :  { %v587_v13 = vpop.permute.xlu1 %586 }
 0xfc6   :  { %v589_v14 = vmul.f32 %v1003_v2, %v587_v13  ;;  %v511_v2 = vrot.slane %v504_v1, %v127_v59 }
 0xfc8   :  { %v1169_v15 = vpack.c.bf16 %v589_v14, %v589_v14  ;;  %v410_v14 = vrot.slane %v1137_v33, %v127_v59 }
 0xfca   :  { %614 = vrot.lane.b32.xlu0 %v1169_v15, %s1025_s15  ;;  %v598_v17 = vrot.slane %v1169_v15, %v127_v59 }
0x103c   :  { %v615_v16 = vpop.permute.xlu0 %614 }
0x103d   :  { %938 = vmatmul.mubr.msk.bf16.vlgmr.msra.gmra.mxu0 %vm40_vm2, %v615_v16 }
0x10fd   :  { %v653_v19 = vpop.f32.mrf.mxu0 }
0x10fe   :  { %v659_v20 = vadd.f32 %v653_v19, %v613_v18  ;;  %v417_v18 = vrot.slane %v410_v14, %v127_v59  ;;  %v1027_v19 = vmov 1983009808  }
0x10ff   :  { %v939_v21 = vpop.f32.mrf.mxu0 }
0x1100   :  { %1006 = vtanh.f32 %v659_v20  ;;  %v855_v25 = vmul.f32 -1.442695, %v659_v20  ;;  %v801_v20 = vunpack.c.l.s4 %v1027_v19 }
0x1101   :  { %v656_v22 = vpop.f32.mrf.mxu0 }
0x1102   :  { %1008 = vpow2.f32 %v855_v25  ;;  %v802_v21 = vunpack.c.0.s8 %v801_v20 }
0x1103   :  { %v940_v23 = vpop.f32.mrf.mxu0 }
0x1104   :  { %v805_v23 = vsub.s32 %v802_v21, %v126_v58 }
0x110d   :  { %v1007_v24 = vpop.eup %1006 }
0x110e   :  { %669 = vrot.lane.b32.xlu1 %v1007_v24, %s1024_s14 }
0x110f   :  { %v1009_v26 = vpop.eup %1008 }
0x1110   :  { %v663_v28 = vadd.f32 1.0, %v1009_v26 }
0x1112   :  { %1010 = vrcp.f32 %v663_v28 }
0x111f   :  { %v1011_v29 = vpop.eup %1010 }
0x1120   :  { %v667_v32 = vmul.f32 %v1011_v29, %v583_v11  ;;  %v222_v11 = vrot.slane %v1103_v49, %v127_v59  ;;  %v605_v49 = vrot.slane %v598_v17, %v127_v59 }
0x1122   :  { %v229_v16 = vrot.slane %v222_v11, %v127_v59 }
0x1180   :  { %v670_v30 = vpop.permute.xlu1 %669 }
0x1181   :  { %v672_v31 = vmul.f32 %v1011_v29, %v670_v30 }
0x1183   :  { %674 = vrot.lane.b32.xlu0 %v672_v31, %s1025_s15 }
0x11f5   :  { %v675_v34 = vpop.permute.xlu0 %674 }
0x11f6   :  { %v677_v35 = vadd.f32 %v675_v34, %v667_v32 }
0x11f8   :  { %1012 = vtanh.f32 %v677_v35 }
0x1205   :  { %v1013_v36 = vpop.eup %1012 }
0x1206   :  { %680 = vrot.lane.b32.xlu1 %v1013_v36, %s1024_s14 }
0x1278   :  { %v681_v37 = vpop.permute.xlu1 %680 }
0x1279   :  { %v683_v38 = vmul.f32 %v1011_v29, %v681_v37 }
0x127b   :  { %v684_v39 = vpack.c.bf16 %v683_v38, %v683_v38 }
0x127d   :  { %708 = vrot.lane.b32.xlu0 %v684_v39, %s1025_s15  ;;  %v692_v0 = vrot.slane %v684_v39, %v127_v59 }
0x127f   :  { %v699_v6 = vrot.slane %v692_v0, %v127_v59 }
0x12ef   :  { %v709_v40 = vpop.permute.xlu0 %708 }
0x12f0   :  { %946 = vmatmul.mubr.msk.bf16.vlgmr.msra.gmra.mxu1 %vm40_vm2, %v709_v40 }
0x13b0   :  { %v747_v43 = vpop.f32.mrf.mxu1 }
0x13b1   :  { %v753_v44 = vadd.f32 %v747_v43, %v707_v42 }
0x13b2   :  { %v947_v45 = vpop.f32.mrf.mxu1 }
0x13b3   :  { %1014 = vtanh.f32 %v753_v44  ;;  %v859_v50 = vmul.f32 -1.442695, %v753_v44 }
0x13b4   :  { %v750_v46 = vpop.f32.mrf.mxu1 }
0x13b5   :  { %1016 = vpow2.f32 %v859_v50 }
0x13b6   :  { %v948_v47 = vpop.f32.mrf.mxu1 }
0x13c0   :  { %v1015_v48 = vpop.eup %1014 }
0x13c1   :  { %763 = vrot.lane.b32.xlu1 %v1015_v48, %s1024_s14 }
0x13c2   :  { %v1017_v51 = vpop.eup %1016 }
0x13c3   :  { %v757_v52 = vadd.f32 1.0, %v1017_v51 }
0x13c5   :  { %1018 = vrcp.f32 %v757_v52 }
0x13d2   :  { %v1019_v60 = vpop.eup %1018 }
0x13d3   :  { %v761_v27 = vmul.f32 %v1019_v60, %v677_v35 }
0x1433   :  { %v764_v61 = vpop.permute.xlu1 %763 }
0x1434   :  { %v766_v63 = vmul.f32 %v1019_v60, %v764_v61 }
0x1436   :  { %768 = vrot.lane.b32.xlu0 %v766_v63, %s1025_s15 }
0x143a   :  { %136 = vrot.lane.b32.xlu0 %v135_v4, %s1025_s15 }
0x143e   :  { %324 = vrot.lane.b32.xlu0 %v323_v5, %s1025_s15 }
0x1442   :  { %512 = vrot.lane.b32.xlu0 %v511_v2, %s1025_s15 }
0x1446   :  { %700 = vrot.lane.b32.xlu0 %v699_v6, %s1025_s15 }
0x14a8   :  { %v769_v7 = vpop.permute.xlu0 %768 }
0x14a9   :  { %v771_v8 = vadd.f32 %v769_v7, %v761_v27 }
0x14ab   :  { %1020 = vtanh.f32 %v771_v8  ;;  %v819_v30 = vrot.slane %v771_v8, %v805_v23 }
0x14ac   :  { %v137_v10 = vpop.permute.xlu0 %136 }
0x14ad   :  { %140 = vst.msk [vmem:[%s1239_s2] sm:$0x1] %vm139_vm3, %v137_v10 }
0x14b0   :  { %v325_v56 = vpop.permute.xlu0 %324 }
0x14b1   :  { %840 = vst.msk [vmem:[%s1239_s2 + $0x2] sm:$0x1] %vm139_vm3, %v325_v56 }
0x14b4   :  { %v513_v9 = vpop.permute.xlu0 %512 }
0x14b5   :  { %848 = vst.msk [vmem:[%s1239_s2 + $0x4] sm:$0x1] %vm139_vm3, %v513_v9 }
0x14b8   :  { %v1021_v12 = vpop.eup %1020  ;;  %v701_v13 = vpop.permute.xlu0 %700 }
0x14b9   :  { %856 = vst.msk [vmem:[%s1239_s2 + $0x6] sm:$0x1] %vm139_vm3, %v701_v13  ;;  %774 = vrot.lane.b32.xlu1 %v1021_v12, %s1024_s14  ;;  %s1028_s14 = smov 96  }
0x14bd   :  { %230 = vrot.lane.b32.xlu1 %v229_v16, %s1025_s15 }
0x14c1   :  { %418 = vrot.lane.b32.xlu1 %v417_v18, %s1025_s15 }
0x14c5   :  { %606 = vrot.lane.b32.xlu1 %v605_v49, %s1025_s15 }
0x152b   :  { %v775_v22 = vpop.permute.xlu1 %774 }
0x152c   :  { %v777_v24 = vmul.f32 %v1019_v60, %v775_v22 }
0x152e   :  { %v778_v25 = vpack.c.bf16 %v777_v24, %v777_v24  ;;  %v806_v26 = vrot.slane %v777_v24, %v805_v23 }
0x152f   :  { %v231_v33 = vpop.permute.xlu1 %230 }
0x1530   :  { %v786_v28 = vrot.slane %v778_v25, %v127_v59  ;;  %836 = vst.msk [vmem:[%s1239_s2 + $0x1] sm:$0x1] %vm139_vm3, %v231_v33  ;;  %807 = vrot.lane.b32.xlu0 %v806_v26, %s1025_s15 }
0x1532   :  { %v793_v15 = vrot.slane %v786_v28, %v127_v59 }
0x1533   :  { %v419_v29 = vpop.permute.xlu1 %418 }
0x1534   :  { %844 = vst.msk [vmem:[%s1239_s2 + $0x3] sm:$0x1] %vm139_vm3, %v419_v29  ;;  %794 = vrot.lane.b32.xlu1 %v793_v15, %s1025_s15 }
0x1537   :  { %v607_v31 = vpop.permute.xlu1 %606 }
0x1538   :  { %852 = vst.msk [vmem:[%s1239_s2 + $0x5] sm:$0x1] %vm139_vm3, %v607_v31  ;;  %820 = vrot.lane.b32.xlu1 %v819_v30, %s1028_s14 }
0x15a2   :  { %v808_v32 = vpop.permute.xlu0 %807 }
0x15a3   :  { %811 = vst.msk [vmem:[#allocation2] sm:$0x3] %vm16_vm0, %v808_v32 }
0x15a6   :  { %v795_v34 = vpop.permute.xlu1 %794 }
0x15a7   :  { %860 = vst.msk [vmem:[%s1239_s2 + $0x7] sm:$0x1] %vm139_vm3, %v795_v34 }
0x15aa   :  { %v821_v35 = vpop.permute.xlu1 %820 }
0x15ab   :  { %823 = vst.msk [vmem:[#allocation3] sm:$0x3] %vm16_vm0, %v821_v35 }

// kernel: gnmt16_forward.45
= control target key start
LH: loop header
LB: loop body
LE: loop exit
PB: predicated region body
PF: predicated region fallthrough
CT: control target
= control target key end

     0   :  { %vm19_vm0 = vcmask 254976   ;;  %v1137_v0 = vmov 0.0   ;;  %vm1138_vm1 = vmmov 0   ;;  %vm43_vm2 = vcmask 261120   ;;  %s1139_s17 = smov 64   ;;  %s1140_s18 = smov 32   ;;  %s1413_s2 = inlined_call_operand.vmem [shape: bf16[32,128], index: 2, kind: input, shape index: {}]   ;;  %s1414_s0 = inlined_call_operand.vmem [shape: bf16[8,2,128], index: 0, kind: input, shape index: {}]   ;;  %s1415_s1 = inlined_call_operand.vmem [shape: bf16[8,2,32], index: 1, kind: input, shape index: {}]   ;;  %s1416_s3 = inlined_call_operand.vmem [shape: bf16[8,2,32], index: 3, kind: output, shape index: {}]  }
   0x1   :  { %972 = vmatprep.subr.bf16.mxu0 %v1137_v0  ;;  %v1168_v1 = vld [vmem:[%s1413_s2 + $0x8] sm:$0xff]   ;;  %976 = vmatprep.mubr.msk.bf16.mxu0 %vm1138_vm1, %v1137_v0  ;;  %20 = vst.msk [vmem:[#allocation2] sm:$0x3] %vm19_vm0, %v1137_v0  ;;  %21 = vst.msk [vmem:[#allocation3] sm:$0x3] %vm19_vm0, %v1137_v0  ;;  %v1183_v2 = vld [vmem:[%s1413_s2] sm:$0xff]  }
   0x2   :  { %980 = vmatprep.subr.bf16.mxu1 %v1137_v0  ;;  %984 = vmatprep.mubr.msk.bf16.mxu1 %vm1138_vm1, %v1137_v0  ;;  %v28_v5 = vld [vmem:[%s1414_s0] sm:$0x1]  ;;  %v913_v29 = vld [vmem:[%s1414_s0 + $0x1] sm:$0x1]  ;;  %v918_v51 = vld [vmem:[%s1414_s0 + $0x2] sm:$0x1] }
   0x3   :  { %973 = vmatpush3.bf16.msra.mxu0 %v1168_v1  ;;  %981 = vmatpush3.bf16.msra.mxu1 %v1168_v1  ;;  %v29_v6 = vunpack.c.l.bf16 %v28_v5  ;;  %v153_v30 = vunpack.c.l.bf16 %v913_v29  ;;  %v257_v52 = vunpack.c.l.bf16 %v918_v51  ;;  %vm149_vm3 = vcmask 253952  }
   0x4   :  { %974 = vmatprep.subr.bf16.mxu0 %v1137_v0  ;;  %982 = vmatprep.subr.bf16.mxu1 %v1137_v0 }
   0x7   :  { %975 = vmatpush3.bf16.msra.mxu0 %v1183_v2  ;;  %983 = vmatpush3.bf16.msra.mxu1 %v1183_v2 }
   0x8   :  { %v26_v3 = vld [vmem:[#allocation2] sm:$0x3]  ;;  %988 = vmatprep.subr.bf16.mxu0 %v1137_v0  ;;  %996 = vmatprep.subr.bf16.mxu1 %v1137_v0  ;;  %v912_v13 = vld.sshfl [vmem:[#allocation3] sm:$0x3 pattern:$0x76325410] }
   0x9   :  { %v30_v4 = vpack.c.bf16 %v26_v3, %v26_v3 }
   0xb   :  { %977 = vmatmul.mubr.msk.bf16.vlgmr.msra.gmra.mxu0 %vm43_vm2, %v30_v4 }
   0xc   :  { %989 = vmatpush3.bf16.msra.mxu0 %v1168_v1  ;;  %992 = vmatprep.mubr.msk.bf16.mxu0 %vm1138_vm1, %v1137_v0 }
   0xd   :  { %990 = vmatprep.subr.bf16.mxu0 %v1137_v0 }
  0x10   :  { %991 = vmatpush3.bf16.msra.mxu0 %v1183_v2 }
  0x11   :  { %1004 = vmatprep.subr.bf16.mxu0 %v1137_v0 }
  0xcb   :  { %v81_v7 = vpop.f32.mrf.mxu0 }
  0xcc   :  { %v87_v8 = vadd.f32 %v81_v7, %v29_v6 }
  0xcd   :  { %v978_v9 = vpop.f32.mrf.mxu0 }
  0xce   :  { %1065 = vtanh.f32 %v87_v8  ;;  %v911_v14 = vmul.f32 -1.442695, %v87_v8 }
  0xcf   :  { %v84_v10 = vpop.f32.mrf.mxu0 }
  0xd0   :  { %1067 = vpow2.f32 %v911_v14 }
  0xd1   :  { %v979_v11 = vpop.f32.mrf.mxu0 }
  0xdb   :  { %v1066_v12 = vpop.eup %1065 }
  0xdc   :  { %108 = vrot.lane.b32.xlu0 %v1066_v12, %s1139_s17  ;;  %v923_v12 = vld [vmem:[%s1414_s0 + $0x3] sm:$0x1] }
  0xdd   :  { %v1068_v15 = vpop.eup %1067 }
  0xde   :  { %v91_v16 = vadd.f32 1.0, %v1068_v15 }
  0xe0   :  { %103 = vrot.lane.b32.xlu0 %v912_v13, %s1140_s18  ;;  %1069 = vrcp.f32 %v91_v16  ;;  %v361_v13 = vunpack.c.l.bf16 %v923_v12 }
  0xed   :  { %v1070_v17 = vpop.eup %1069 }
 0x14e   :  { %v109_v18 = vpop.permute.xlu0 %108 }
 0x14f   :  { %v111_v19 = vmul.f32 %v1070_v17, %v109_v18 }
 0x151   :  { %113 = vrot.lane.b32.xlu1 %v111_v19, %s1140_s18 }
 0x152   :  { %v104_v20 = vpop.permute.xlu0 %103 }
 0x153   :  { %v106_v21 = vmul.f32 %v1070_v17, %v104_v20 }
 0x1c3   :  { %v114_v22 = vpop.permute.xlu1 %113 }
 0x1c4   :  { %v116_v23 = vadd.f32 %v114_v22, %v106_v21 }
 0x1c6   :  { %1071 = vtanh.f32 %v116_v23 }
 0x1d3   :  { %v1072_v24 = vpop.eup %1071 }
 0x1d4   :  { %119 = vrot.lane.b32.xlu1 %v1072_v24, %s1139_s17 }
 0x246   :  { %v120_v25 = vpop.permute.xlu1 %119 }
 0x247   :  { %v1206_v26 = vmul.f32 %v1070_v17, %v120_v25 }
 0x249   :  { %v154_v27 = vpack.c.bf16 %v1206_v26, %v1206_v26 }
 0x24b   :  { %156 = vrot.lane.b32.xlu0 %v154_v27, %s1140_s18 }
 0x2bd   :  { %v157_v28 = vpop.permute.xlu0 %156 }
 0x2be   :  { %985 = vmatmul.mubr.msk.bf16.vlgmr.msra.gmra.mxu1 %vm43_vm2, %v157_v28 }
 0x2bf   :  { %997 = vmatpush3.bf16.msra.mxu1 %v1168_v1  ;;  %1000 = vmatprep.mubr.msk.bf16.mxu1 %vm1138_vm1, %v1137_v0 }
 0x2c0   :  { %998 = vmatprep.subr.bf16.mxu1 %v1137_v0 }
 0x2c3   :  { %999 = vmatpush3.bf16.msra.mxu1 %v1183_v2 }
 0x2c4   :  { %1012 = vmatprep.subr.bf16.mxu1 %v1137_v0 }
 0x37e   :  { %v195_v31 = vpop.f32.mrf.mxu1 }
 0x37f   :  { %v201_v32 = vadd.f32 %v195_v31, %v153_v30 }
 0x380   :  { %v986_v33 = vpop.f32.mrf.mxu1 }
 0x381   :  { %1073 = vtanh.f32 %v201_v32  ;;  %v915_v37 = vmul.f32 -1.442695, %v201_v32 }
 0x382   :  { %v198_v34 = vpop.f32.mrf.mxu1 }
 0x383   :  { %1075 = vpow2.f32 %v915_v37 }
 0x384   :  { %v987_v35 = vpop.f32.mrf.mxu1 }
 0x385   :  { %v928_v35 = vld [vmem:[%s1414_s0 + $0x4] sm:$0x1] }
 0x38e   :  { %v1074_v36 = vpop.eup %1073 }
 0x38f   :  { %211 = vrot.lane.b32.xlu1 %v1074_v36, %s1139_s17  ;;  %v465_v36 = vunpack.c.l.bf16 %v928_v35 }
 0x390   :  { %v1076_v38 = vpop.eup %1075 }
 0x391   :  { %v205_v39 = vadd.f32 1.0, %v1076_v38 }
 0x393   :  { %1077 = vrcp.f32 %v205_v39 }
 0x3a0   :  { %v1078_v40 = vpop.eup %1077 }
 0x3a1   :  { %v209_v43 = vmul.f32 %v1078_v40, %v116_v23 }
 0x401   :  { %v212_v41 = vpop.permute.xlu1 %211 }
 0x402   :  { %v214_v42 = vmul.f32 %v1078_v40, %v212_v41 }
 0x404   :  { %216 = vrot.lane.b32.xlu0 %v214_v42, %s1140_s18 }
 0x476   :  { %v217_v44 = vpop.permute.xlu0 %216 }
 0x477   :  { %v219_v45 = vadd.f32 %v217_v44, %v209_v43 }
 0x479   :  { %1079 = vtanh.f32 %v219_v45 }
 0x486   :  { %v1080_v46 = vpop.eup %1079 }
 0x487   :  { %222 = vrot.lane.b32.xlu1 %v1080_v46, %s1139_s17 }
 0x4f9   :  { %v223_v47 = vpop.permute.xlu1 %222 }
 0x4fa   :  { %v1224_v48 = vmul.f32 %v1078_v40, %v223_v47 }
 0x4fc   :  { %v258_v49 = vpack.c.bf16 %v1224_v48, %v1224_v48 }
 0x4fe   :  { %260 = vrot.lane.b32.xlu0 %v258_v49, %s1140_s18 }
 0x570   :  { %v261_v50 = vpop.permute.xlu0 %260 }
 0x571   :  { %993 = vmatmul.mubr.msk.bf16.vlgmr.msra.gmra.mxu0 %vm43_vm2, %v261_v50 }
 0x572   :  { %1005 = vmatpush3.bf16.msra.mxu0 %v1168_v1  ;;  %1008 = vmatprep.mubr.msk.bf16.mxu0 %vm1138_vm1, %v1137_v0 }
 0x573   :  { %1006 = vmatprep.subr.bf16.mxu0 %v1137_v0 }
 0x576   :  { %1007 = vmatpush3.bf16.msra.mxu0 %v1183_v2 }
 0x577   :  { %1020 = vmatprep.subr.bf16.mxu0 %v1137_v0 }
 0x631   :  { %v299_v53 = vpop.f32.mrf.mxu0 }
 0x632   :  { %v305_v54 = vadd.f32 %v299_v53, %v257_v52 }
 0x633   :  { %v994_v55 = vpop.f32.mrf.mxu0 }
 0x634   :  { %1081 = vtanh.f32 %v305_v54  ;;  %v920_v59 = vmul.f32 -1.442695, %v305_v54 }
 0x635   :  { %v302_v56 = vpop.f32.mrf.mxu0 }
 0x636   :  { %1083 = vpow2.f32 %v920_v59 }
 0x637   :  { %v995_v57 = vpop.f32.mrf.mxu0 }
 0x641   :  { %v1082_v58 = vpop.eup %1081 }
 0x642   :  { %315 = vrot.lane.b32.xlu1 %v1082_v58, %s1139_s17  ;;  %v933_v58 = vld [vmem:[%s1414_s0 + $0x5] sm:$0x1] }
 0x643   :  { %v1084_v60 = vpop.eup %1083  ;;  %v569_v59 = vunpack.c.l.bf16 %v933_v58 }
 0x644   :  { %v309_v61 = vadd.f32 1.0, %v1084_v60 }
 0x646   :  { %1085 = vrcp.f32 %v309_v61 }
 0x653   :  { %v1086_v62 = vpop.eup %1085 }
 0x654   :  { %v313_v4 = vmul.f32 %v1086_v62, %v219_v45 }
 0x6b4   :  { %v316_v63 = vpop.permute.xlu1 %315 }
 0x6b5   :  { %v318_v3 = vmul.f32 %v1086_v62, %v316_v63 }
 0x6b7   :  { %320 = vrot.lane.b32.xlu0 %v318_v3, %s1140_s18 }
 0x729   :  { %v321_v5 = vpop.permute.xlu0 %320 }
 0x72a   :  { %v323_v6 = vadd.f32 %v321_v5, %v313_v4 }
 0x72c   :  { %1087 = vtanh.f32 %v323_v6 }
 0x739   :  { %v1088_v7 = vpop.eup %1087 }
 0x73a   :  { %326 = vrot.lane.b32.xlu1 %v1088_v7, %s1139_s17 }
 0x7ac   :  { %v327_v8 = vpop.permute.xlu1 %326 }
 0x7ad   :  { %v1242_v9 = vmul.f32 %v1086_v62, %v327_v8 }
 0x7af   :  { %v362_v10 = vpack.c.bf16 %v1242_v9, %v1242_v9 }
 0x7b1   :  { %364 = vrot.lane.b32.xlu0 %v362_v10, %s1140_s18 }
 0x823   :  { %v365_v11 = vpop.permute.xlu0 %364 }
 0x824   :  { %1001 = vmatmul.mubr.msk.bf16.vlgmr.msra.gmra.mxu1 %vm43_vm2, %v365_v11 }
 0x825   :  { %1013 = vmatpush3.bf16.msra.mxu1 %v1168_v1  ;;  %1016 = vmatprep.mubr.msk.bf16.mxu1 %vm1138_vm1, %v1137_v0 }
 0x826   :  { %1014 = vmatprep.subr.bf16.mxu1 %v1137_v0 }
 0x829   :  { %1015 = vmatpush3.bf16.msra.mxu1 %v1183_v2 }
 0x82a   :  { %1028 = vmatprep.subr.bf16.mxu1 %v1137_v0 }
 0x8e4   :  { %v403_v14 = vpop.f32.mrf.mxu1 }
 0x8e5   :  { %v409_v15 = vadd.f32 %v403_v14, %v361_v13 }
 0x8e6   :  { %v1002_v16 = vpop.f32.mrf.mxu1 }
 0x8e7   :  { %1089 = vtanh.f32 %v409_v15  ;;  %v925_v20 = vmul.f32 -1.442695, %v409_v15 }
 0x8e8   :  { %v406_v17 = vpop.f32.mrf.mxu1 }
 0x8e9   :  { %1091 = vpow2.f32 %v925_v20  ;;  %v938_v17 = vld [vmem:[%s1414_s0 + $0x6] sm:$0x1] }
 0x8ea   :  { %v1003_v18 = vpop.f32.mrf.mxu1 }
 0x8eb   :  { %v673_v18 = vunpack.c.l.bf16 %v938_v17 }
 0x8f4   :  { %v1090_v19 = vpop.eup %1089 }
 0x8f5   :  { %419 = vrot.lane.b32.xlu1 %v1090_v19, %s1139_s17 }
 0x8f6   :  { %v1092_v21 = vpop.eup %1091 }
 0x8f7   :  { %v413_v22 = vadd.f32 1.0, %v1092_v21 }
 0x8f9   :  { %1093 = vrcp.f32 %v413_v22 }
 0x906   :  { %v1094_v23 = vpop.eup %1093 }
 0x907   :  { %v417_v27 = vmul.f32 %v1094_v23, %v323_v6 }
 0x967   :  { %v420_v24 = vpop.permute.xlu1 %419 }
 0x968   :  { %v422_v25 = vmul.f32 %v1094_v23, %v420_v24 }
 0x96a   :  { %424 = vrot.lane.b32.xlu0 %v422_v25, %s1140_s18 }
 0x9dc   :  { %v425_v28 = vpop.permute.xlu0 %424 }
 0x9dd   :  { %v427_v29 = vadd.f32 %v425_v28, %v417_v27 }
 0x9df   :  { %1095 = vtanh.f32 %v427_v29 }
 0x9ec   :  { %v1096_v30 = vpop.eup %1095 }
 0x9ed   :  { %430 = vrot.lane.b32.xlu1 %v1096_v30, %s1139_s17 }
 0xa5f   :  { %v431_v31 = vpop.permute.xlu1 %430 }
 0xa60   :  { %v1260_v32 = vmul.f32 %v1094_v23, %v431_v31 }
 0xa62   :  { %v466_v33 = vpack.c.bf16 %v1260_v32, %v1260_v32 }
 0xa64   :  { %468 = vrot.lane.b32.xlu0 %v466_v33, %s1140_s18 }
 0xad6   :  { %v469_v34 = vpop.permute.xlu0 %468 }
 0xad7   :  { %1009 = vmatmul.mubr.msk.bf16.vlgmr.msra.gmra.mxu0 %vm43_vm2, %v469_v34 }
 0xad8   :  { %1021 = vmatpush3.bf16.msra.mxu0 %v1168_v1  ;;  %1024 = vmatprep.mubr.msk.bf16.mxu0 %vm1138_vm1, %v1137_v0 }
 0xad9   :  { %1022 = vmatprep.subr.bf16.mxu0 %v1137_v0 }
 0xadc   :  { %1023 = vmatpush3.bf16.msra.mxu0 %v1183_v2 }
 0xb97   :  { %v507_v37 = vpop.f32.mrf.mxu0 }
 0xb98   :  { %v513_v38 = vadd.f32 %v507_v37, %v465_v36 }
 0xb99   :  { %v1010_v39 = vpop.f32.mrf.mxu0 }
 0xb9a   :  { %1097 = vtanh.f32 %v513_v38  ;;  %v930_v43 = vmul.f32 -1.442695, %v513_v38 }
 0xb9b   :  { %v510_v40 = vpop.f32.mrf.mxu0 }
 0xb9c   :  { %1099 = vpow2.f32 %v930_v43 }
 0xb9d   :  { %v1011_v41 = vpop.f32.mrf.mxu0 }
 0xb9e   :  { %v943_v41 = vld [vmem:[%s1414_s0 + $0x7] sm:$0x1]  ;;  %s1141_s0 = smov 96  }
 0xba7   :  { %v1098_v42 = vpop.eup %1097 }
 0xba8   :  { %523 = vrot.lane.b32.xlu1 %v1098_v42, %s1139_s17  ;;  %v777_v42 = vunpack.c.l.bf16 %v943_v41 }
 0xba9   :  { %v1100_v44 = vpop.eup %1099 }
 0xbaa   :  { %v517_v45 = vadd.f32 1.0, %v1100_v44 }
 0xbac   :  { %1101 = vrcp.f32 %v517_v45 }
 0xbb9   :  { %v1102_v46 = vpop.eup %1101 }
 0xbba   :  { %v521_v50 = vmul.f32 %v1102_v46, %v427_v29 }
 0xc1a   :  { %v524_v47 = vpop.permute.xlu1 %523 }
 0xc1b   :  { %v526_v49 = vmul.f32 %v1102_v46, %v524_v47 }
 0xc1d   :  { %528 = vrot.lane.b32.xlu0 %v526_v49, %s1140_s18  ;;  %v921_v49 = vld [vmem:[%s1415_s1 + $0x2] sm:$0x1] }
 0xc8f   :  { %v529_v51 = vpop.permute.xlu0 %528 }
 0xc90   :  { %v531_v52 = vadd.f32 %v529_v51, %v521_v50  ;;  %v926_v50 = vld [vmem:[%s1415_s1 + $0x3] sm:$0x1]  ;;  %v332_v51 = vunpack.c.l.bf16 %v921_v49 }
 0xc92   :  { %1103 = vtanh.f32 %v531_v52 }
 0xc9f   :  { %v1104_v53 = vpop.eup %1103 }
 0xca0   :  { %534 = vrot.lane.b32.xlu1 %v1104_v53, %s1139_s17 }
 0xd12   :  { %v535_v54 = vpop.permute.xlu1 %534 }
 0xd13   :  { %v1277_v55 = vmul.f32 %v1102_v46, %v535_v54 }
 0xd15   :  { %v570_v56 = vpack.c.bf16 %v1277_v55, %v1277_v55 }
 0xd17   :  { %572 = vrot.lane.b32.xlu0 %v570_v56, %s1140_s18 }
 0xd89   :  { %v573_v57 = vpop.permute.xlu0 %572 }
 0xd8a   :  { %1017 = vmatmul.mubr.msk.bf16.vlgmr.msra.gmra.mxu1 %vm43_vm2, %v573_v57 }
 0xd8b   :  { %1029 = vmatpush3.bf16.msra.mxu1 %v1168_v1  ;;  %1032 = vmatprep.mubr.msk.bf16.mxu1 %vm1138_vm1, %v1137_v0 }
 0xd8c   :  { %1030 = vmatprep.subr.bf16.mxu1 %v1137_v0 }
 0xd8f   :  { %1031 = vmatpush3.bf16.msra.mxu1 %v1183_v2 }
 0xe4a   :  { %v611_v60 = vpop.f32.mrf.mxu1 }
 0xe4b   :  { %v617_v61 = vadd.f32 %v611_v60, %v569_v59  ;;  %v123_v59 = vld [vmem:[%s1415_s1] sm:$0x1]  ;;  %v916_v60 = vld [vmem:[%s1415_s1 + $0x1] sm:$0x1] }
 0xe4c   :  { %v1018_v62 = vpop.f32.mrf.mxu1 }
 0xe4d   :  { %1105 = vtanh.f32 %v617_v61  ;;  %v935_v1 = vmul.f32 -1.442695, %v617_v61  ;;  %v124_v61 = vunpack.c.l.bf16 %v123_v59  ;;  %v228_v62 = vunpack.c.l.bf16 %v916_v60 }
 0xe4e   :  { %v614_v63 = vpop.f32.mrf.mxu1 }
 0xe4f   :  { %1107 = vpow2.f32 %v935_v1  ;;  %v936_v1 = vld [vmem:[%s1415_s1 + $0x5] sm:$0x1] }
 0xe50   :  { %v1019_v3 = vpop.f32.mrf.mxu1 }
 0xe5a   :  { %v1106_v4 = vpop.eup %1105 }
 0xe5b   :  { %627 = vrot.lane.b32.xlu1 %v1106_v4, %s1139_s17  ;;  %v931_v4 = vld [vmem:[%s1415_s1 + $0x4] sm:$0x1] }
 0xe5c   :  { %v1108_v5 = vpop.eup %1107 }
 0xe5d   :  { %v621_v0 = vadd.f32 1.0, %v1108_v5 }
 0xe5f   :  { %1109 = vrcp.f32 %v621_v0  ;;  %v1043_v0 = vpack.i.bf16 %v228_v62, %v124_v61 }
 0xe6c   :  { %v1110_v2 = vpop.eup %1109 }
 0xe6d   :  { %v625_v8 = vmul.f32 %v1110_v2, %v531_v52  ;;  %v436_v52 = vunpack.c.l.bf16 %v926_v50 }
 0xe6f   :  { %v1048_v54 = vpack.i.bf16 %v436_v52, %v332_v51 }
 0xecd   :  { %v628_v6 = vpop.permute.xlu1 %627 }
 0xece   :  { %v630_v7 = vmul.f32 %v1110_v2, %v628_v6  ;;  %v644_v6 = vunpack.c.l.bf16 %v936_v1 }
 0xed0   :  { %632 = vrot.lane.b32.xlu0 %v630_v7, %s1140_s18 }
 0xf42   :  { %v633_v10 = vpop.permute.xlu0 %632 }
 0xf43   :  { %v635_v11 = vadd.f32 %v633_v10, %v625_v8  ;;  %v1142_v8 = vmov 1983009808  }
 0xf44   :  { %v881_v10 = vunpack.c.l.s4 %v1142_v8 }
 0xf45   :  { %1111 = vtanh.f32 %v635_v11 }
 0xf52   :  { %v1112_v12 = vpop.eup %1111 }
 0xf53   :  { %638 = vrot.lane.b32.xlu1 %v1112_v12, %s1139_s17  ;;  %v882_v12 = vunpack.c.0.s8 %v881_v10 }
 0xfc5   :  { %v639_v13 = vpop.permute.xlu1 %638 }
 0xfc6   :  { %v1294_v14 = vmul.f32 %v1110_v2, %v639_v13  ;;  %v540_v2 = vunpack.c.l.bf16 %v931_v4 }
 0xfc8   :  { %v674_v15 = vpack.c.bf16 %v1294_v14, %v1294_v14  ;;  %v1053_v7 = vpack.i.bf16 %v644_v6, %v540_v2 }
 0xfca   :  { %676 = vrot.lane.b32.xlu0 %v674_v15, %s1140_s18 }
0x103c   :  { %v677_v16 = vpop.permute.xlu0 %676 }
0x103d   :  { %1025 = vmatmul.mubr.msk.bf16.vlgmr.msra.gmra.mxu0 %vm43_vm2, %v677_v16 }
0x10fd   :  { %v715_v19 = vpop.f32.mrf.mxu0 }
0x10fe   :  { %v721_v20 = vadd.f32 %v715_v19, %v673_v18  ;;  %v1143_v19 = vmov 1966171168  }
0x10ff   :  { %v1026_v21 = vpop.f32.mrf.mxu0 }
0x1100   :  { %1113 = vtanh.f32 %v721_v20  ;;  %v940_v25 = vmul.f32 -1.442695, %v721_v20  ;;  %v133_v20 = vunpack.c.l.s4 %v1143_v19 }
0x1101   :  { %v718_v22 = vpop.f32.mrf.mxu0 }
0x1102   :  { %1115 = vpow2.f32 %v940_v25  ;;  %v134_v25 = vunpack.c.0.s8 %v133_v20 }
0x1103   :  { %v1027_v23 = vpop.f32.mrf.mxu0 }
0x110d   :  { %v1114_v24 = vpop.eup %1113 }
0x110e   :  { %731 = vrot.lane.b32.xlu1 %v1114_v24, %s1139_s17 }
0x110f   :  { %v1116_v27 = vpop.eup %1115 }
0x1110   :  { %v725_v28 = vadd.f32 1.0, %v1116_v27 }
0x1112   :  { %1117 = vrcp.f32 %v725_v28 }
0x111f   :  { %v1118_v29 = vpop.eup %1117 }
0x1120   :  { %v729_v33 = vmul.f32 %v1118_v29, %v635_v11  ;;  %v135_v11 = vlaneseq }
0x1122   :  { %v136_v13 = vshrl.u32 %v135_v11, 7 }
0x1124   :  { %v1341_v16 = vsub.s32 %v882_v12, %v136_v13 }
0x1180   :  { %v732_v30 = vpop.permute.xlu1 %731 }
0x1181   :  { %v734_v31 = vmul.f32 %v1118_v29, %v732_v30  ;;  %v137_v30 = vsub.s32 %v134_v25, %v136_v13 }
0x1183   :  { %736 = vrot.lane.b32.xlu0 %v734_v31, %s1140_s18 }
0x11f5   :  { %v737_v34 = vpop.permute.xlu0 %736 }
0x11f6   :  { %v739_v35 = vadd.f32 %v737_v34, %v729_v33  ;;  %v941_v33 = vld [vmem:[%s1415_s1 + $0x6] sm:$0x1]  ;;  %v946_v34 = vld [vmem:[%s1415_s1 + $0x7] sm:$0x1] }
0x11f7   :  { %v852_v41 = vunpack.c.l.bf16 %v946_v34 }
0x11f8   :  { %1119 = vtanh.f32 %v739_v35 }
0x1205   :  { %v1120_v36 = vpop.eup %1119 }
0x1206   :  { %742 = vrot.lane.b32.xlu1 %v1120_v36, %s1139_s17 }
0x1278   :  { %v743_v37 = vpop.permute.xlu1 %742 }
0x1279   :  { %v1306_v38 = vmul.f32 %v1118_v29, %v743_v37  ;;  %v748_v37 = vunpack.c.l.bf16 %v941_v33 }
0x127b   :  { %v778_v39 = vpack.c.bf16 %v1306_v38, %v1306_v38 }
0x127d   :  { %780 = vrot.lane.b32.xlu0 %v778_v39, %s1140_s18 }
0x12ef   :  { %v781_v40 = vpop.permute.xlu0 %780 }
0x12f0   :  { %1033 = vmatmul.mubr.msk.bf16.vlgmr.msra.gmra.mxu1 %vm43_vm2, %v781_v40 }
0x13b0   :  { %v819_v43 = vpop.f32.mrf.mxu1 }
0x13b1   :  { %v825_v44 = vadd.f32 %v819_v43, %v777_v42 }
0x13b2   :  { %v1034_v45 = vpop.f32.mrf.mxu1 }
0x13b3   :  { %1121 = vtanh.f32 %v825_v44  ;;  %v945_v56 = vmul.f32 -1.442695, %v825_v44 }
0x13b4   :  { %v822_v46 = vpop.f32.mrf.mxu1 }
0x13b5   :  { %1123 = vpow2.f32 %v945_v56  ;;  %v1058_v46 = vpack.i.bf16 %v852_v41, %v748_v37 }
0x13b6   :  { %v1035_v47 = vpop.f32.mrf.mxu1 }
0x13c0   :  { %v1122_v53 = vpop.eup %1121 }
0x13c1   :  { %835 = vrot.lane.b32.xlu1 %v1122_v53, %s1139_s17 }
0x13c2   :  { %v1124_v57 = vpop.eup %1123 }
0x13c3   :  { %v829_v58 = vadd.f32 1.0, %v1124_v57 }
0x13c5   :  { %1049 = vrot.lane.b32.xlu1 %v1048_v54, %s1141_s0  ;;  %1125 = vrcp.f32 %v829_v58 }
0x13d2   :  { %v1329_v63 = vpop.eup %1125 }
0x13d3   :  { %v833_v17 = vmul.f32 %v1329_v63, %v739_v35 }
0x1433   :  { %v836_v3 = vpop.permute.xlu1 %835 }
0x1434   :  { %v838_v5 = vmul.f32 %v1329_v63, %v836_v3 }
0x1436   :  { %840 = vrot.lane.b32.xlu0 %v838_v5, %s1140_s18 }
0x1437   :  { %v1050_v15 = vpop.permute.xlu1 %1049 }
0x1438   :  { %v1129_v24 = vadd.low.f32.bf16 %v1242_v9, %v1050_v15  ;;  %v1133_v42 = vadd.high.f32.bf16 %v1260_v32, %v1050_v15 }
0x143a   :  { %1044 = vrot.lane.b32.xlu0 %v1043_v0, %s1141_s0  ;;  %v338_v29 = vpack.c.bf16 %v1129_v24, %v1129_v24 }
0x143c   :  { %v346_v40 = vrot.slane %v338_v29, %v137_v30 }
0x143e   :  { %1054 = vrot.lane.b32.xlu0 %v1053_v7, %s1141_s0  ;;  %v353_v45 = vrot.slane %v346_v40, %v137_v30 }
0x14a8   :  { %v841_v18 = vpop.permute.xlu0 %840 }
0x14a9   :  { %v1344_v21 = vadd.f32 %v841_v18, %v833_v17 }
0x14ab   :  { %1127 = vtanh.f32 %v1344_v21  ;;  %v899_v22 = vrot.slane %v1344_v21, %v1341_v16 }
0x14ac   :  { %v1045_v23 = vpop.permute.xlu0 %1044 }
0x14ad   :  { %v1130_v27 = vadd.low.f32.bf16 %v1206_v26, %v1045_v23  ;;  %v1131_v35 = vadd.high.f32.bf16 %v1224_v48, %v1045_v23  ;;  %v442_v48 = vpack.c.bf16 %v1133_v42, %v1133_v42 }
0x14af   :  { %v130_v31 = vpack.c.bf16 %v1130_v27, %v1130_v27  ;;  %v234_v43 = vpack.c.bf16 %v1131_v35, %v1131_v35  ;;  %v450_v52 = vrot.slane %v442_v48, %v137_v30 }
0x14b0   :  { %v1055_v28 = vpop.permute.xlu0 %1054 }
0x14b1   :  { %v1132_v36 = vadd.low.f32.bf16 %v1277_v55, %v1055_v28  ;;  %v138_v9 = vrot.slane %v130_v31, %v137_v30  ;;  %v1134_v55 = vadd.high.f32.bf16 %v1294_v14, %v1055_v28  ;;  %v242_v49 = vrot.slane %v234_v43, %v137_v30 }
0x14b2   :  { %v457_v53 = vrot.slane %v450_v52, %v137_v30 }
0x14b3   :  { %v546_v39 = vpack.c.bf16 %v1132_v36, %v1132_v36  ;;  %v145_v26 = vrot.slane %v138_v9, %v137_v30  ;;  %v650_v51 = vpack.c.bf16 %v1134_v55, %v1134_v55  ;;  %v249_v32 = vrot.slane %v242_v49, %v137_v30 }
0x14b5   :  { %146 = vrot.lane.b32.xlu0 %v145_v26, %s1140_s18  ;;  %v554_v47 = vrot.slane %v546_v39, %v137_v30  ;;  %v658_v54 = vrot.slane %v650_v51, %v137_v30 }
0x14b7   :  { %v561_v50 = vrot.slane %v554_v47, %v137_v30  ;;  %v665_v56 = vrot.slane %v658_v54, %v137_v30 }
0x14b8   :  { %v1128_v44 = vpop.eup %1127 }
0x14b9   :  { %846 = vrot.lane.b32.xlu1 %v1128_v44, %s1139_s17  ;;  %354 = vrot.lane.b32.xlu0 %v353_v45, %s1140_s18 }
0x14bd   :  { %1059 = vrot.lane.b32.xlu1 %v1058_v46, %s1141_s0  ;;  %562 = vrot.lane.b32.xlu0 %v561_v50, %s1140_s18 }
0x14c1   :  { %250 = vrot.lane.b32.xlu1 %v249_v32, %s1140_s18 }
0x14c5   :  { %458 = vrot.lane.b32.xlu1 %v457_v53, %s1140_s18 }
0x14c9   :  { %666 = vrot.lane.b32.xlu1 %v665_v56, %s1140_s18 }
0x1527   :  { %v147_v14 = vpop.permute.xlu0 %146 }
0x1528   :  { %150 = vst.msk [vmem:[%s1416_s3] sm:$0x1] %vm149_vm3, %v147_v14 }
0x152b   :  { %v847_v57 = vpop.permute.xlu1 %846  ;;  %v355_v58 = vpop.permute.xlu0 %354 }
0x152c   :  { %922 = vst.msk [vmem:[%s1416_s3 + $0x2] sm:$0x1] %vm149_vm3, %v355_v58  ;;  %v849_v60 = vmul.f32 %v1329_v63, %v847_v57 }
0x152e   :  { %v886_v8 = vrot.slane %v849_v60, %v1341_v16 }
0x152f   :  { %v1060_v59 = vpop.permute.xlu1 %1059  ;;  %v563_v61 = vpop.permute.xlu0 %562 }
0x1530   :  { %v1135_v62 = vadd.high.f32.bf16 %v849_v60, %v1060_v59  ;;  %v1136_v3 = vadd.low.f32.bf16 %v1306_v38, %v1060_v59  ;;  %932 = vst.msk [vmem:[%s1416_s3 + $0x4] sm:$0x1] %vm149_vm3, %v563_v61 }
0x1532   :  { %v858_v1 = vpack.c.bf16 %v1135_v62, %v1135_v62  ;;  %v754_v5 = vpack.c.bf16 %v1136_v3, %v1136_v3 }
0x1533   :  { %v251_v4 = vpop.permute.xlu1 %250 }
0x1534   :  { %917 = vst.msk [vmem:[%s1416_s3 + $0x1] sm:$0x1] %vm149_vm3, %v251_v4  ;;  %v866_v0 = vrot.slane %v858_v1, %v137_v30  ;;  %v762_v2 = vrot.slane %v754_v5, %v137_v30 }
0x1536   :  { %v873_v38 = vrot.slane %v866_v0, %v137_v30  ;;  %v769_v6 = vrot.slane %v762_v2, %v137_v30 }
0x1537   :  { %v459_v63 = vpop.permute.xlu1 %458 }
0x1538   :  { %927 = vst.msk [vmem:[%s1416_s3 + $0x3] sm:$0x1] %vm149_vm3, %v459_v63  ;;  %874 = vrot.lane.b32.xlu1 %v873_v38, %s1140_s18  ;;  %770 = vrot.lane.b32.xlu0 %v769_v6, %s1140_s18 }
0x153b   :  { %v667_v7 = vpop.permute.xlu1 %666 }
0x153c   :  { %937 = vst.msk [vmem:[%s1416_s3 + $0x5] sm:$0x1] %vm149_vm3, %v667_v7  ;;  %900 = vrot.lane.b32.xlu1 %v899_v22, %s1141_s0  ;;  %887 = vrot.lane.b32.xlu0 %v886_v8, %s1140_s18 }
0x15aa   :  { %v875_v10 = vpop.permute.xlu1 %874  ;;  %v771_v11 = vpop.permute.xlu0 %770 }
0x15ab   :  { %947 = vst.msk [vmem:[%s1416_s3 + $0x7] sm:$0x1] %vm149_vm3, %v875_v10  ;;  %942 = vst.msk [vmem:[%s1416_s3 + $0x6] sm:$0x1] %vm149_vm3, %v771_v11 }
0x15ae   :  { %v901_v12 = vpop.permute.xlu1 %900  ;;  %v888_v13 = vpop.permute.xlu0 %887 }
0x15af   :  { %903 = vst.msk [vmem:[#allocation3] sm:$0x3] %vm19_vm0, %v901_v12  ;;  %891 = vst.msk [vmem:[#allocation2] sm:$0x3] %vm19_vm0, %v888_v13 }

// kernel: gnmt16_forward.59
= control target key start
LH: loop header
LB: loop body
LE: loop exit
PB: predicated region body
PF: predicated region fallthrough
CT: control target
= control target key end

     0   :  { %v210_v0 = vmov 0.0   ;;  %vm211_vm0 = vmmov 0   ;;  %s268_s1 = inlined_call_operand.vmem [shape: bf16[128,128], index: 1, kind: input, shape index: {}]   ;;  %s269_s0 = inlined_call_operand.vmem [shape: bf16[16,128], index: 0, kind: input, shape index: {}]   ;;  %s270_s2 = inlined_call_operand.vmem [shape: f32[1,128], index: 2, kind: input, shape index: {}]   ;;  %s271_s3 = inlined_call_operand.vmem [shape: f32[16,128], index: 3, kind: output, shape index: {}]  }
   0x1   :  { %179 = vmatprep.subr.bf16.mxu0 %v210_v0  ;;  %v201_v1 = vld [vmem:[%s268_s1 + $0x38] sm:$0xff]   ;;  %195 = vmatprep.mubr.msk.bf16.mxu0 %vm211_vm0, %v210_v0  ;;  %v202_v2 = vld [vmem:[%s268_s1 + $0x30] sm:$0xff]   ;;  %v203_v3 = vld [vmem:[%s268_s1 + $0x28] sm:$0xff]  }
   0x2   :  { %180 = vmatpush3.bf16.msra.mxu0 %v201_v1  ;;  %v204_v4 = vld [vmem:[%s268_s1 + $0x20] sm:$0xff]   ;;  %v205_v5 = vld [vmem:[%s268_s1 + $0x18] sm:$0xff]   ;;  %v206_v6 = vld [vmem:[%s268_s1 + $0x10] sm:$0xff]  }
   0x3   :  { %181 = vmatprep.subr.bf16.mxu0 %v210_v0  ;;  %v207_v7 = vld [vmem:[%s268_s1 + $0x8] sm:$0xff]   ;;  %v208_v8 = vld [vmem:[%s268_s1] sm:$0xff]  }
   0x4   :  { %v209_v9 = vld [vmem:[%s269_s0] sm:$0xff]  }
   0x5   :  { %v169_v10 = vld [vmem:[%s270_s2] ss:$0 sm:$0xff] }
   0x6   :  { %182 = vmatpush3.bf16.msra.mxu0 %v202_v2 }
   0x7   :  { %183 = vmatprep.subr.bf16.mxu0 %v210_v0 }
   0xa   :  { %184 = vmatpush3.bf16.msra.mxu0 %v203_v3 }
   0xb   :  { %185 = vmatprep.subr.bf16.mxu0 %v210_v0 }
   0xe   :  { %186 = vmatpush3.bf16.msra.mxu0 %v204_v4 }
   0xf   :  { %187 = vmatprep.subr.bf16.mxu0 %v210_v0 }
  0x12   :  { %188 = vmatpush3.bf16.msra.mxu0 %v205_v5 }
  0x13   :  { %189 = vmatprep.subr.bf16.mxu0 %v210_v0 }
  0x16   :  { %190 = vmatpush3.bf16.msra.mxu0 %v206_v6 }
  0x17   :  { %191 = vmatprep.subr.bf16.mxu0 %v210_v0 }
  0x1a   :  { %192 = vmatpush3.bf16.msra.mxu0 %v207_v7 }
  0x1b   :  { %193 = vmatprep.subr.bf16.mxu0 %v210_v0 }
  0x1e   :  { %194 = vmatpush3.bf16.msra.mxu0 %v208_v8 }
  0x21   :  { %196 = vmatmul.mubr.bf16.vlgmr.msra.gmra.mxu0 %v209_v9 }
  0xe1   :  { %v129_v11 = vpop.f32.mrf.mxu0 }
  0xe2   :  { %v152_v12 = vadd.f32 %v169_v10, %v129_v11 }
  0xe3   :  { %v197_v13 = vpop.f32.mrf.mxu0 }
  0xe4   :  { %154 = vst [vmem:[%s271_s3] sm:$0xff] %v152_v12 }
  0xe5   :  { %v132_v14 = vpop.f32.mrf.mxu0 }
  0xe6   :  { %v153_v15 = vadd.f32 %v169_v10, %v132_v14 }
  0xe7   :  { %v198_v16 = vpop.f32.mrf.mxu0 }
  0xe8   :  { %155 = vst [vmem:[%s271_s3 + $0x8] sm:$0xff] %v153_v15 }

// kernel: gnmt16_forward.60
= control target key start
LH: loop header
LB: loop body
LE: loop exit
PB: predicated region body
PF: predicated region fallthrough
CT: control target
= control target key end

     0   :  { %s916_s18 = smov 0   ;;  %s918_s19 = smov 0   ;;  %s1008_s0 = inlined_call_operand.vmem [shape: f32[2,8,32], index: 0, kind: input, shape index: {}]   ;;  %s1009_s1 = inlined_call_operand.vmem [shape: f32[2,8,32], index: 1, kind: input, shape index: {}]   ;;  %s1010_s2 = inlined_call_operand.vmem [shape: bf16[2,8,32], index: 2, kind: input, shape index: {}]   ;;  %s1011_s3 = inlined_call_operand.vmem [shape: f32[1,32], index: 3, kind: input, shape index: {}]   ;;  %s1012_s4 = inlined_call_operand.vmem [shape: f32[2,1,8], index: 4, kind: input, shape index: {}]   ;;  %s1013_s5 = inlined_call_operand.vmem [shape: bf16[2,8,32], index: 5, kind: output, shape index: {}]  }
   0x1   :  { %s920_s20 = smov 0  }
   0x2 LB: > { %s34_s21 = sadd.s32 1, %s875_s19  ;;  %p786_p0 = scmp.ge.s32.totalorder %s879_s20, 1  ;;  %s879_s20 = sphi %s920_s20, %s15_s20   ;;  %s875_s19 = sphi %s918_s19, %s1015_s19   ;;  %s871_s18 = sphi %s916_s18, %s1014_s18  }
   0x3   : > { %p36_p1 = scmp.ge.s32.totalorder %s34_s21, 2  ;;  %p253_p2 = scmp.lt.s32.totalorder %s879_s20, 3 }
   0x5   : > { %s1017_s21 = smov (%p36_p1, %s34_s21), 0  ;;  %p254_p3 = pnand %p786_p0, %p253_p2 }
   0x6   : > { %p305_p4 = scmp.lt.s32.totalorder (!%p254_p3), %s871_s18, 1 }
   0x7   : > { %257 = sbr.rel (%p254_p3) target bundleno = 777 (0x309), region = 40 }
   0xc   : > { %v357_v0 = vlaneseq  ;;  %v881_v1 = vmov 1966171168   ;;  %s1019_s18 = smov (!%p305_p4, %s871_s18), 1  ;;  %v791_v40 = vld [vmem:[%s1011_s3] ss:$0 sm:$0xff]  ;;  %vm347_vm0 = vcmask 261120  }
   0xd   : > { %v355_v2 = vunpack.c.l.s4 %v881_v1  ;;  %s787_s22 = sshll.u32 %s1019_s18, 3  ;;  %s331_s8 = scalar_lea.vmem %s1012_s4, %s1019_s18  ;;  %vm344_vm2 = vcmask 7168   ;;  %vm548_vm3 = vcmask 1041409   ;;  %vm550_vm4 = vcmask 1042434  }
   0xe   : > { %v358_v3 = vshrl.u32 %v357_v0, 7  ;;  %v515_v4 = vand.u32 127, %v357_v0  ;;  %s311_s25 = scalar_lea.vmem %s1008_s0, %s787_s22  ;;  %s318_s28 = scalar_lea.vmem %s1009_s1, %s787_s22  ;;  %v498_v1 = vld [vmem:[%s331_s8] sm:$0x1]  ;;  %vm552_vm5 = vcmask 1043459   ;;  %vm554_vm6 = vcmask 1044484  }
   0xf   : > { %v356_v5 = vunpack.c.0.s8 %v355_v2  ;;  %v349_v8 = vld [vmem:[%s311_s25] sm:$0xff]  ;;  %vm499_vm1 = vcmp.gt.f32.partialorder %v498_v1, 0.5  ;;  %v882_v2 = vmov 0   ;;  %vm556_vm7 = vcmask 1045509   ;;  %s789_s9 = sshll.u32 %s1019_s18, 2 }
  0x10   : > { %v937_v6 = vsub.s32 %v515_v4, %v358_v3  ;;  %v945_v10 = vsub.s32 0, %v358_v3  ;;  %v353_v11 = vcombine.high %v349_v8, %v349_v8  ;;  %v350_v15 = vld [vmem:[%s318_s28] sm:$0xff]  ;;  %832 = vset.pattern.permute.xlu1 %v882_v2  ;;  %833 = vset.pattern.permute.xlu0 %v882_v2  ;;  %vm558_vm8 = vcmask 1046534   ;;  %s325_s12 = scalar_lea.vmem %s1010_s2, %s789_s9  ;;  %s338_s15 = scalar_lea.vmem %s1013_s5, %s789_s9 }
  0x11   : > { %v359_v7 = vsub.s32 %v356_v5, %v358_v3  ;;  %v500_v3 = vsel %vm499_vm1, 1, %v882_v2  ;;  %v883_v5 = vmov -inf   ;;  %vm560_vm9 = vcmask 1047559  }
  0x12   : > { %v504_v4 = vrot.slane %v500_v3, %v945_v10  ;;  %345 = vst.msk [vmem:[#allocation2] sm:$0xff] %vm344_vm2, %v883_v5  ;;  %vm565_vm11 = vcmask 64512   ;;  %vm600_vm12 = vcmask 1043456   ;;  %vm885_vm13 = vmmov 0  }
  0x13   : > { %v360_v9 = vrot.slane %v349_v8, %v359_v7  ;;  %v367_v14 = vrot.slane %v353_v11, %v359_v7  ;;  %vm661_vm14 = vcmask 257024  }
  0x14   : > { %vm505_vm10 = vcmp.eq.s32.totalorder %v504_v4, 1 }
  0x15   : > { %v376_v12 = vrot.slane %v360_v9, %v359_v7  ;;  %v368_v13 = vcombine.high %v360_v9, %v360_v9  ;;  %v383_v19 = vrot.slane %v367_v14, %v359_v7  ;;  %v369_v20 = vcombine.high %v367_v14, %v367_v14 }
  0x17   : > { %v405_v16 = vrot.slane %v376_v12, %v945_v10  ;;  %v398_v17 = vcombine.high %v376_v12, %v376_v12  ;;  %v390_v18 = vrot.slane %v368_v13, %v359_v7  ;;  %v421_v25 = vrot.slane %v383_v19, %v945_v10 }
  0x18   : > { %v397_v26 = vrot.slane %v369_v20, %v359_v7  ;;  %v399_v27 = vcombine.high %v383_v19, %v383_v19 }
  0x19   : > { %v442_v21 = vadd.f32 %v405_v16, %v350_v15  ;;  %v413_v22 = vrot.slane %v398_v17, %v945_v10  ;;  %v409_v23 = vrot.slane %v390_v18, %v945_v10  ;;  %v400_v24 = vcombine.high %v390_v18, %v390_v18 }
  0x1a   : > { %v446_v31 = vadd.f32 %v421_v25, %v350_v15  ;;  %v425_v32 = vrot.slane %v397_v26, %v945_v10  ;;  %v429_v33 = vrot.slane %v399_v27, %v945_v10  ;;  %v401_v34 = vcombine.high %v397_v26, %v397_v26 }
  0x1b   : > { %835 = vtanh.f32 %v442_v21  ;;  %v444_v28 = vadd.f32 %v413_v22, %v350_v15  ;;  %v443_v29 = vadd.f32 %v409_v23, %v350_v15  ;;  %v417_v30 = vrot.slane %v400_v24, %v945_v10 }
  0x1c   : > { %v447_v36 = vadd.f32 %v425_v32, %v350_v15  ;;  %v448_v37 = vadd.f32 %v429_v33, %v350_v15  ;;  %v433_v38 = vrot.slane %v401_v34, %v945_v10  ;;  %v884_v32 = vmov 0.0   ;;  %v564_v33 = vld [vmem:[#allocation2] sm:$0xff] }
  0x1d   : > { %837 = vtanh.f32 %v444_v28  ;;  %v445_v35 = vadd.f32 %v417_v30, %v350_v15  ;;  %346 = vst.msk [vmem:[#allocation3] sm:$0xff] %vm344_vm2, %v884_v32  ;;  %797 = vmatprep.subr.bf16.mxu0 %v884_v32  ;;  %799 = vmatprep.mubr.msk.bf16.mxu0 %vm885_vm13, %v884_v32 }
  0x1e   : > { %839 = vtanh.f32 %v443_v29  ;;  %v449_v39 = vadd.f32 %v433_v38, %v350_v15  ;;  %348 = vst.msk [vmem:[#allocation4] sm:$0xff] %vm347_vm0, %v884_v32 }
  0x1f   : > { %841 = vtanh.f32 %v445_v35 }
  0x20   : > { %843 = vtanh.f32 %v446_v31 }
  0x21   : > { %845 = vtanh.f32 %v447_v36 }
  0x22   : > { %847 = vtanh.f32 %v448_v37  ;;  %v351_v37 = vld [vmem:[%s325_s12] sm:$0xf] }
  0x23   : > { %849 = vtanh.f32 %v449_v39  ;;  %v602_v38 = vsel %vm600_vm12, %v351_v37, 0 }
  0x24   : > { %798 = vmatpush3.bf16.msra.mxu0 %v602_v38 }
  0x28   : > { %v836_v41 = vpop.eup %835 }
  0x29   : > { %v465_v42 = vmul.f32 %v836_v41, %v791_v40 }
  0x2a   : > { %v838_v43 = vpop.eup %837 }
  0x2b   : > { %v840_v44 = vpop.eup %839  ;;  %v474_v45 = vsel %vm347_vm0, %v465_v42, 0.0  ;;  %v467_v46 = vmul.f32 %v838_v43, %v791_v40 }
  0x2c   : > { %v842_v47 = vpop.eup %841  ;;  %475 = vadd.xlane.f32.xlu0 %v474_v45  ;;  %v466_v48 = vmul.f32 %v840_v44, %v791_v40 }
  0x2d   : > { %v844_v49 = vpop.eup %843  ;;  %v480_v50 = vsel %vm347_vm0, %v467_v46, 0.0  ;;  %v468_v51 = vmul.f32 %v842_v47, %v791_v40  ;;  %v581_v46 = vld [vmem:[#allocation3] sm:$0xff] }
  0x2e   : > { %v846_v52 = vpop.eup %845  ;;  %481 = vadd.xlane.f32.xlu1 %v480_v50  ;;  %v477_v53 = vsel %vm347_vm0, %v466_v48, 0.0  ;;  %v469_v54 = vmul.f32 %v844_v49, %v791_v40 }
  0x2f   : > { %v848_v55 = vpop.eup %847  ;;  %v483_v56 = vsel %vm347_vm0, %v468_v51, 0.0  ;;  %v470_v57 = vmul.f32 %v846_v52, %v791_v40  ;;  %v589_v52 = vld [vmem:[#allocation4] sm:$0xff] }
  0x30   : > { %v850_v58 = vpop.eup %849  ;;  %478 = vadd.xlane.f32.xlu0 %v477_v53  ;;  %v486_v59 = vsel %vm347_vm0, %v469_v54, 0.0  ;;  %v471_v60 = vmul.f32 %v848_v55, %v791_v40 }
  0x31   : > { %v489_v61 = vsel %vm347_vm0, %v470_v57, 0.0  ;;  %v472_v62 = vmul.f32 %v850_v58, %v791_v40 }
  0x32   : > { %484 = vadd.xlane.f32.xlu1 %v483_v56  ;;  %v492_v63 = vsel %vm347_vm0, %v471_v60, 0.0 }
  0x33   : > { %v495_v0 = vsel %vm347_vm0, %v472_v62, 0.0 }
  0x34   : > { %487 = vadd.xlane.f32.xlu0 %v486_v59 }
  0x36   : > { %490 = vadd.xlane.f32.xlu1 %v489_v61 }
  0x38   : > { %493 = vadd.xlane.f32.xlu0 %v492_v63 }
  0x3a   : > { %496 = vadd.xlane.f32.xlu1 %v495_v0 }
  0xb5   : > { %v476_v7 = vpop.xlane.xlu0 %475 }
  0xb6   : > { %v519_v11 = vrot.slane %v476_v7, %v937_v6 }
  0xb7   : > { %v482_v8 = vpop.xlane.xlu1 %481 }
  0xb8   : > { %v527_v13 = vrot.slane %v482_v8, %v937_v6 }
  0xb9   : > { %v479_v9 = vpop.xlane.xlu0 %478 }
  0xba   : > { %v523_v12 = vrot.slane %v479_v9, %v937_v6 }
  0xbb   : > { %v485_v14 = vpop.xlane.xlu1 %484 }
  0xbc   : > { %v549_v15 = vsel %vm548_vm3, %v523_v12, %v519_v11  ;;  %v531_v10 = vrot.slane %v485_v14, %v937_v6 }
  0xbd   : > { %v551_v16 = vsel %vm550_vm4, %v527_v13, %v549_v15  ;;  %v488_v17 = vpop.xlane.xlu0 %487 }
  0xbe   : > { %v553_v18 = vsel %vm552_vm5, %v531_v10, %v551_v16  ;;  %v535_v19 = vrot.slane %v488_v17, %v937_v6 }
  0xbf   : > { %v491_v20 = vpop.xlane.xlu1 %490 }
  0xc0   : > { %v555_v21 = vsel %vm554_vm6, %v535_v19, %v553_v18  ;;  %v539_v22 = vrot.slane %v491_v20, %v937_v6 }
  0xc1   : > { %v494_v23 = vpop.xlane.xlu0 %493 }
  0xc2   : > { %v557_v24 = vsel %vm556_vm7, %v539_v22, %v555_v21  ;;  %v543_v25 = vrot.slane %v494_v23, %v937_v6 }
  0xc3   : > { %v497_v26 = vpop.xlane.xlu1 %496 }
  0xc4   : > { %v547_v27 = vrot.slane %v497_v26, %v937_v6  ;;  %v559_v28 = vsel %vm558_vm8, %v543_v25, %v557_v24 }
  0xc6   : > { %v561_v29 = vsel %vm560_vm9, %v547_v27, %v559_v28 }
  0xc7   : > { %v563_v30 = vsel %vm505_vm10, -1e+30, %v561_v29 }
  0xc8   : > { %v566_v31 = vsel %vm565_vm11, %v563_v30, -inf }
  0xc9   : > { %567 = vmax.xlane.f32.xlu0 %v566_v31 }
 0x152   : > { %v568_v34 = vpop.xlane.xlu0 %567 }
 0x153   : > { %v569_v35 = vmax.f32 %v564_v33, %v568_v34 }
 0x155   : > { %v570_v6 = vsub.f32 %v564_v33, %v569_v35  ;;  %646 = vst.msk [vmem:[#allocation2] sm:$0xff] %vm344_vm2, %v569_v35  ;;  %575 = vperm.xlu1 %832, %v569_v35  }
 0x157   : > { %v571_v36 = vmul.f32 1.442695, %v570_v6 }
 0x159   : > { %851 = vpow2.f32 %v571_v36 }
 0x166   : > { %v852_v39 = vpop.eup %851 }
 0x167   : > { %592 = vperm.xlu1 %832, %v852_v39   ;;  %v582_v47 = vmul.f32 %v852_v39, %v581_v46 }
 0x1d0   : > { %v576_v40 = vpop.permute.xlu1 %575 }
 0x1d1   : > { %v578_v41 = vsub.f32 %v563_v30, %v576_v40 }
 0x1d3   : > { %v579_v42 = vmul.f32 1.442695, %v578_v41 }
 0x1d5   : > { %853 = vpow2.f32 %v579_v42 }
 0x1e2   : > { %v854_v43 = vpop.eup %853  ;;  %v593_v53 = vpop.permute.xlu1 %592 }
 0x1e3   : > { %v583_v44 = vsel %vm565_vm11, %v854_v43, 0.0  ;;  %v596_v45 = vpack.c.bf16 %v854_v43, %v854_v43  ;;  %v595_v54 = vmul.f32 %v593_v53, %v589_v52 }
 0x1e4   : > { %584 = vadd.xlane.f32.xlu0 %v583_v44 }
 0x1e5   : > { %800 = vmatmul.mubr.msk.bf16.vlgmr.msra.gmra.mxu0 %vm565_vm11, %v596_v45 }
 0x26d   : > { %v585_v48 = vpop.xlane.xlu0 %584 }
 0x26e   : > { %v586_v49 = vadd.f32 %v585_v48, %v582_v47 }
 0x270   : > { %588 = vst.msk [vmem:[#allocation3] sm:$0xff] %vm344_vm2, %v586_v49 }
 0x277   : > { %v650_v50 = vld [vmem:[#allocation3] sm:$0xff] }
 0x278   : > { %v651_v51 = vmax.f32 %v650_v50, 1e-30 }
 0x27a   : > { %655 = vperm.xlu0 %833, %v651_v51  }
 0x2a5   : > { %v638_v55 = vpop.f32.mrf.mxu0 }
 0x2a6   : > { %v644_v56 = vadd.f32 %v638_v55, %v595_v54 }
 0x2a7   : > { %v801_v57 = vpop.f32.mrf.mxu0 }
 0x2a8   : > { %645 = vst.msk [vmem:[#allocation4] sm:$0xff] %vm347_vm0, %v644_v56 }
 0x2a9   : > { %v641_v58 = vpop.f32.mrf.mxu0 }
 0x2ab   : > { %v802_v59 = vpop.f32.mrf.mxu0 }
 0x2af   : > { %v652_v62 = vld [vmem:[#allocation4] sm:$0xff] }
 0x2f5   : > { %v656_v60 = vpop.permute.xlu0 %655 }
 0x2f6   : > { %855 = vrcp.f32 %v656_v60 }
 0x303   : > { %v856_v61 = vpop.eup %855 }
 0x304   : > { %v659_v63 = vmul.f32 %v856_v61, %v652_v62 }
 0x306   : > { %v660_v0 = vpack.c.bf16 %v659_v63, %v659_v63 }
 0x308   : > { %662 = vst.msk [vmem:[%s338_s15] sm:$0xf] %vm661_vm14, %v660_v0 }
 0x309 PF: > { %s15_s20 = sadd.s32 1, %s879_s20   ;;  %s1014_s18 = smov %s875_s19 }
 0x30a   : > { %p12_p5 = scmp.ge.s32.totalorder %s15_s20, 4   ;;  %s1015_s19 = smov %s1017_s21 }
 0x30c   :  { %14 = sbr.rel (!%p12_p5) target bundleno = 2 (0x2), region = 87 }

// kernel: gnmt16_forward.57
= control target key start
LH: loop header
LB: loop body
LE: loop exit
PB: predicated region body
PF: predicated region fallthrough
CT: control target
= control target key end

     0   :  { %vm16_vm0 = vcmask 254976   ;;  %v788_v0 = vmov 0.0   ;;  %vm789_vm1 = vmmov 0   ;;  %vm40_vm2 = vcmask 261120   ;;  %s790_s14 = smov 64   ;;  %s791_s15 = smov 32   ;;  %s957_s1 = inlined_call_operand.vmem [shape: bf16[32,128], index: 1, kind: input, shape index: {}]   ;;  %s958_s0 = inlined_call_operand.vmem [shape: bf16[6,2,128], index: 0, kind: input, shape index: {}]   ;;  %s959_s2 = inlined_call_operand.vmem [shape: bf16[6,2,32], index: 2, kind: output, shape index: {}]  }
   0x1   :  { %683 = vmatprep.subr.bf16.mxu0 %v788_v0  ;;  %v814_v1 = vld [vmem:[%s957_s1 + $0x8] sm:$0xff]   ;;  %687 = vmatprep.mubr.msk.bf16.mxu0 %vm789_vm1, %v788_v0  ;;  %17 = vst.msk [vmem:[#allocation2] sm:$0x3] %vm16_vm0, %v788_v0  ;;  %18 = vst.msk [vmem:[#allocation3] sm:$0x3] %vm16_vm0, %v788_v0  ;;  %v829_v2 = vld [vmem:[%s957_s1] sm:$0xff]  }
   0x2   :  { %691 = vmatprep.subr.bf16.mxu1 %v788_v0  ;;  %695 = vmatprep.mubr.msk.bf16.mxu1 %vm789_vm1, %v788_v0  ;;  %v25_v5 = vld [vmem:[%s958_s0] sm:$0x1]  ;;  %v645_v29 = vld [vmem:[%s958_s0 + $0x1] sm:$0x1]  ;;  %v649_v51 = vld [vmem:[%s958_s0 + $0x2] sm:$0x1] }
   0x3   :  { %684 = vmatpush3.bf16.msra.mxu0 %v814_v1  ;;  %692 = vmatpush3.bf16.msra.mxu1 %v814_v1  ;;  %v26_v6 = vunpack.c.l.bf16 %v25_v5  ;;  %v143_v30 = vunpack.c.l.bf16 %v645_v29  ;;  %v237_v52 = vunpack.c.l.bf16 %v649_v51  ;;  %vm139_vm3 = vcmask 253952   ;;  %s794_s7 = smov 96  }
   0x4   :  { %685 = vmatprep.subr.bf16.mxu0 %v788_v0  ;;  %693 = vmatprep.subr.bf16.mxu1 %v788_v0 }
   0x7   :  { %686 = vmatpush3.bf16.msra.mxu0 %v829_v2  ;;  %694 = vmatpush3.bf16.msra.mxu1 %v829_v2 }
   0x8   :  { %v23_v3 = vld [vmem:[#allocation2] sm:$0x3]  ;;  %699 = vmatprep.subr.bf16.mxu0 %v788_v0  ;;  %707 = vmatprep.subr.bf16.mxu1 %v788_v0  ;;  %v644_v13 = vld.sshfl [vmem:[#allocation3] sm:$0x3 pattern:$0x76325410] }
   0x9   :  { %v27_v4 = vpack.c.bf16 %v23_v3, %v23_v3 }
   0xb   :  { %688 = vmatmul.mubr.msk.bf16.vlgmr.msra.gmra.mxu0 %vm40_vm2, %v27_v4 }
   0xc   :  { %700 = vmatpush3.bf16.msra.mxu0 %v814_v1  ;;  %703 = vmatprep.mubr.msk.bf16.mxu0 %vm789_vm1, %v788_v0 }
   0xd   :  { %701 = vmatprep.subr.bf16.mxu0 %v788_v0 }
  0x10   :  { %702 = vmatpush3.bf16.msra.mxu0 %v829_v2 }
  0x11   :  { %715 = vmatprep.subr.bf16.mxu0 %v788_v0 }
  0xcb   :  { %v78_v7 = vpop.f32.mrf.mxu0 }
  0xcc   :  { %v84_v8 = vadd.f32 %v78_v7, %v26_v6 }
  0xcd   :  { %v689_v9 = vpop.f32.mrf.mxu0 }
  0xce   :  { %740 = vtanh.f32 %v84_v8  ;;  %v643_v14 = vmul.f32 -1.442695, %v84_v8 }
  0xcf   :  { %v81_v10 = vpop.f32.mrf.mxu0 }
  0xd0   :  { %742 = vpow2.f32 %v643_v14 }
  0xd1   :  { %v690_v11 = vpop.f32.mrf.mxu0 }
  0xdb   :  { %v741_v12 = vpop.eup %740 }
  0xdc   :  { %105 = vrot.lane.b32.xlu0 %v741_v12, %s790_s14  ;;  %v653_v12 = vld [vmem:[%s958_s0 + $0x3] sm:$0x1] }
  0xdd   :  { %v743_v15 = vpop.eup %742 }
  0xde   :  { %v88_v16 = vadd.f32 1.0, %v743_v15 }
  0xe0   :  { %100 = vrot.lane.b32.xlu0 %v644_v13, %s791_s15  ;;  %744 = vrcp.f32 %v88_v16  ;;  %v331_v13 = vunpack.c.l.bf16 %v653_v12 }
  0xed   :  { %v745_v17 = vpop.eup %744 }
 0x14e   :  { %v106_v18 = vpop.permute.xlu0 %105 }
 0x14f   :  { %v108_v19 = vmul.f32 %v745_v17, %v106_v18 }
 0x151   :  { %110 = vrot.lane.b32.xlu1 %v108_v19, %s791_s15 }
 0x152   :  { %v101_v20 = vpop.permute.xlu0 %100 }
 0x153   :  { %v103_v21 = vmul.f32 %v745_v17, %v101_v20 }
 0x1c3   :  { %v111_v22 = vpop.permute.xlu1 %110 }
 0x1c4   :  { %v113_v23 = vadd.f32 %v111_v22, %v103_v21 }
 0x1c6   :  { %746 = vtanh.f32 %v113_v23 }
 0x1d3   :  { %v747_v24 = vpop.eup %746 }
 0x1d4   :  { %116 = vrot.lane.b32.xlu1 %v747_v24, %s790_s14 }
 0x246   :  { %v117_v25 = vpop.permute.xlu1 %116 }
 0x247   :  { %v119_v26 = vmul.f32 %v745_v17, %v117_v25 }
 0x249   :  { %v852_v27 = vpack.c.bf16 %v119_v26, %v119_v26 }
 0x24b   :  { %144 = vrot.lane.b32.xlu0 %v852_v27, %s791_s15 }
 0x2bd   :  { %v145_v28 = vpop.permute.xlu0 %144 }
 0x2be   :  { %696 = vmatmul.mubr.msk.bf16.vlgmr.msra.gmra.mxu1 %vm40_vm2, %v145_v28 }
 0x2bf   :  { %708 = vmatpush3.bf16.msra.mxu1 %v814_v1  ;;  %711 = vmatprep.mubr.msk.bf16.mxu1 %vm789_vm1, %v788_v0 }
 0x2c0   :  { %709 = vmatprep.subr.bf16.mxu1 %v788_v0 }
 0x2c3   :  { %710 = vmatpush3.bf16.msra.mxu1 %v829_v2 }
 0x2c4   :  { %723 = vmatprep.subr.bf16.mxu1 %v788_v0 }
 0x37e   :  { %v183_v31 = vpop.f32.mrf.mxu1 }
 0x37f   :  { %v189_v32 = vadd.f32 %v183_v31, %v143_v30 }
 0x380   :  { %v697_v33 = vpop.f32.mrf.mxu1 }
 0x381   :  { %748 = vtanh.f32 %v189_v32  ;;  %v647_v37 = vmul.f32 -1.442695, %v189_v32  ;;  %v657_v32 = vld [vmem:[%s958_s0 + $0x4] sm:$0x1] }
 0x382   :  { %v186_v34 = vpop.f32.mrf.mxu1  ;;  %v425_v33 = vunpack.c.l.bf16 %v657_v32 }
 0x383   :  { %750 = vpow2.f32 %v647_v37 }
 0x384   :  { %v698_v35 = vpop.f32.mrf.mxu1 }
 0x38e   :  { %v749_v36 = vpop.eup %748 }
 0x38f   :  { %199 = vrot.lane.b32.xlu1 %v749_v36, %s790_s14 }
 0x390   :  { %v751_v38 = vpop.eup %750 }
 0x391   :  { %v193_v39 = vadd.f32 1.0, %v751_v38 }
 0x393   :  { %752 = vrcp.f32 %v193_v39 }
 0x3a0   :  { %v753_v40 = vpop.eup %752 }
 0x3a1   :  { %v197_v43 = vmul.f32 %v753_v40, %v113_v23 }
 0x401   :  { %v200_v41 = vpop.permute.xlu1 %199 }
 0x402   :  { %v202_v42 = vmul.f32 %v753_v40, %v200_v41 }
 0x404   :  { %204 = vrot.lane.b32.xlu0 %v202_v42, %s791_s15 }
 0x476   :  { %v205_v44 = vpop.permute.xlu0 %204 }
 0x477   :  { %v207_v45 = vadd.f32 %v205_v44, %v197_v43 }
 0x479   :  { %754 = vtanh.f32 %v207_v45 }
 0x486   :  { %v755_v46 = vpop.eup %754 }
 0x487   :  { %210 = vrot.lane.b32.xlu1 %v755_v46, %s790_s14 }
 0x4f9   :  { %v211_v47 = vpop.permute.xlu1 %210 }
 0x4fa   :  { %v213_v48 = vmul.f32 %v753_v40, %v211_v47 }
 0x4fc   :  { %v869_v49 = vpack.c.bf16 %v213_v48, %v213_v48 }
 0x4fe   :  { %238 = vrot.lane.b32.xlu0 %v869_v49, %s791_s15 }
 0x570   :  { %v239_v50 = vpop.permute.xlu0 %238 }
 0x571   :  { %704 = vmatmul.mubr.msk.bf16.vlgmr.msra.gmra.mxu0 %vm40_vm2, %v239_v50 }
 0x572   :  { %716 = vmatpush3.bf16.msra.mxu0 %v814_v1  ;;  %719 = vmatprep.mubr.msk.bf16.mxu0 %vm789_vm1, %v788_v0 }
 0x573   :  { %717 = vmatprep.subr.bf16.mxu0 %v788_v0 }
 0x576   :  { %718 = vmatpush3.bf16.msra.mxu0 %v829_v2 }
 0x631   :  { %v277_v53 = vpop.f32.mrf.mxu0 }
 0x632   :  { %v283_v54 = vadd.f32 %v277_v53, %v237_v52 }
 0x633   :  { %v705_v55 = vpop.f32.mrf.mxu0 }
 0x634   :  { %756 = vtanh.f32 %v283_v54  ;;  %v651_v59 = vmul.f32 -1.442695, %v283_v54  ;;  %v661_v55 = vld [vmem:[%s958_s0 + $0x5] sm:$0x1] }
 0x635   :  { %v280_v56 = vpop.f32.mrf.mxu0 }
 0x636   :  { %758 = vpow2.f32 %v651_v59  ;;  %v519_v56 = vunpack.c.l.bf16 %v661_v55 }
 0x637   :  { %v706_v57 = vpop.f32.mrf.mxu0 }
 0x641   :  { %v757_v58 = vpop.eup %756 }
 0x642   :  { %293 = vrot.lane.b32.xlu1 %v757_v58, %s790_s14 }
 0x643   :  { %v759_v60 = vpop.eup %758 }
 0x644   :  { %v287_v61 = vadd.f32 1.0, %v759_v60 }
 0x646   :  { %760 = vrcp.f32 %v287_v61 }
 0x653   :  { %v761_v62 = vpop.eup %760 }
 0x654   :  { %v291_v4 = vmul.f32 %v761_v62, %v207_v45 }
 0x6b4   :  { %v294_v63 = vpop.permute.xlu1 %293 }
 0x6b5   :  { %v296_v3 = vmul.f32 %v761_v62, %v294_v63 }
 0x6b7   :  { %298 = vrot.lane.b32.xlu0 %v296_v3, %s791_s15 }
 0x729   :  { %v299_v5 = vpop.permute.xlu0 %298 }
 0x72a   :  { %v301_v6 = vadd.f32 %v299_v5, %v291_v4  ;;  %v792_v5 = vmov 1966171168  }
 0x72c   :  { %762 = vtanh.f32 %v301_v6 }
 0x739   :  { %v763_v7 = vpop.eup %762 }
 0x73a   :  { %304 = vrot.lane.b32.xlu1 %v763_v7, %s790_s14  ;;  %v125_v7 = vlaneseq }
 0x7ac   :  { %v305_v8 = vpop.permute.xlu1 %304 }
 0x7ad   :  { %v307_v9 = vmul.f32 %v761_v62, %v305_v8 }
 0x7af   :  { %v885_v10 = vpack.c.bf16 %v307_v9, %v307_v9  ;;  %v126_v9 = vshrl.u32 %v125_v7, 7 }
 0x7b1   :  { %332 = vrot.lane.b32.xlu0 %v885_v10, %s791_s15 }
 0x823   :  { %v333_v11 = vpop.permute.xlu0 %332 }
 0x824   :  { %712 = vmatmul.mubr.msk.bf16.vlgmr.msra.gmra.mxu1 %vm40_vm2, %v333_v11 }
 0x825   :  { %724 = vmatpush3.bf16.msra.mxu1 %v814_v1  ;;  %727 = vmatprep.mubr.msk.bf16.mxu1 %vm789_vm1, %v788_v0 }
 0x826   :  { %725 = vmatprep.subr.bf16.mxu1 %v788_v0 }
 0x829   :  { %726 = vmatpush3.bf16.msra.mxu1 %v829_v2 }
 0x8e4   :  { %v371_v14 = vpop.f32.mrf.mxu1 }
 0x8e5   :  { %v377_v15 = vadd.f32 %v371_v14, %v331_v13 }
 0x8e6   :  { %v713_v16 = vpop.f32.mrf.mxu1 }
 0x8e7   :  { %764 = vtanh.f32 %v377_v15  ;;  %v655_v1 = vmul.f32 -1.442695, %v377_v15 }
 0x8e8   :  { %v374_v17 = vpop.f32.mrf.mxu1 }
 0x8e9   :  { %766 = vpow2.f32 %v655_v1 }
 0x8ea   :  { %v714_v18 = vpop.f32.mrf.mxu1 }
 0x8f4   :  { %v765_v19 = vpop.eup %764 }
 0x8f5   :  { %387 = vrot.lane.b32.xlu1 %v765_v19, %s790_s14 }
 0x8f6   :  { %v767_v20 = vpop.eup %766 }
 0x8f7   :  { %v381_v0 = vadd.f32 1.0, %v767_v20 }
 0x8f9   :  { %768 = vrcp.f32 %v381_v0 }
 0x906   :  { %v769_v2 = vpop.eup %768 }
 0x907   :  { %v385_v23 = vmul.f32 %v769_v2, %v301_v6  ;;  %v123_v6 = vunpack.c.l.s4 %v792_v5 }
 0x909   :  { %v124_v8 = vunpack.c.0.s8 %v123_v6 }
 0x90b   :  { %v127_v11 = vsub.s32 %v124_v8, %v126_v9 }
 0x90d   :  { %v128_v14 = vrot.slane %v852_v27, %v127_v11  ;;  %v316_v16 = vrot.slane %v885_v10, %v127_v11 }
 0x90f   :  { %v135_v17 = vrot.slane %v128_v14, %v127_v11  ;;  %v323_v19 = vrot.slane %v316_v16, %v127_v11 }
 0x967   :  { %v388_v21 = vpop.permute.xlu1 %387 }
 0x968   :  { %v390_v22 = vmul.f32 %v769_v2, %v388_v21 }
 0x96a   :  { %392 = vrot.lane.b32.xlu0 %v390_v22, %s791_s15  ;;  %v222_v22 = vrot.slane %v869_v49, %v127_v11 }
 0x9dc   :  { %v393_v24 = vpop.permute.xlu0 %392 }
 0x9dd   :  { %v395_v25 = vadd.f32 %v393_v24, %v385_v23 }
 0x9df   :  { %770 = vtanh.f32 %v395_v25 }
 0x9ec   :  { %v771_v26 = vpop.eup %770 }
 0x9ed   :  { %398 = vrot.lane.b32.xlu1 %v771_v26, %s790_s14 }
 0xa5f   :  { %v399_v28 = vpop.permute.xlu1 %398 }
 0xa60   :  { %v401_v29 = vmul.f32 %v769_v2, %v399_v28  ;;  %v793_v28 = vmov 1983009808  }
 0xa62   :  { %v901_v30 = vpack.c.bf16 %v401_v29, %v401_v29  ;;  %v613_v29 = vunpack.c.l.s4 %v793_v28 }
 0xa64   :  { %426 = vrot.lane.b32.xlu0 %v901_v30, %s791_s15  ;;  %v410_v24 = vrot.slane %v901_v30, %v127_v11 }
 0xa66   :  { %v417_v26 = vrot.slane %v410_v24, %v127_v11 }
 0xad6   :  { %v427_v31 = vpop.permute.xlu0 %426 }
 0xad7   :  { %720 = vmatmul.mubr.msk.bf16.vlgmr.msra.gmra.mxu0 %vm40_vm2, %v427_v31  ;;  %v614_v31 = vunpack.c.0.s8 %v613_v29 }
 0xb97   :  { %v465_v34 = vpop.f32.mrf.mxu0 }
 0xb98   :  { %v471_v35 = vadd.f32 %v465_v34, %v425_v33  ;;  %v617_v33 = vsub.s32 %v614_v31, %v126_v9 }
 0xb99   :  { %v721_v36 = vpop.f32.mrf.mxu0 }
 0xb9a   :  { %772 = vtanh.f32 %v471_v35  ;;  %v659_v40 = vmul.f32 -1.442695, %v471_v35 }
 0xb9b   :  { %v468_v37 = vpop.f32.mrf.mxu0 }
 0xb9c   :  { %774 = vpow2.f32 %v659_v40 }
 0xb9d   :  { %v722_v38 = vpop.f32.mrf.mxu0 }
 0xba7   :  { %v773_v39 = vpop.eup %772 }
 0xba8   :  { %481 = vrot.lane.b32.xlu1 %v773_v39, %s790_s14 }
 0xba9   :  { %v775_v41 = vpop.eup %774 }
 0xbaa   :  { %v475_v42 = vadd.f32 1.0, %v775_v41 }
 0xbac   :  { %776 = vrcp.f32 %v475_v42 }
 0xbb9   :  { %v777_v43 = vpop.eup %776 }
 0xbba   :  { %v479_v46 = vmul.f32 %v777_v43, %v395_v25  ;;  %v229_v25 = vrot.slane %v222_v22, %v127_v11 }
 0xc1a   :  { %v482_v44 = vpop.permute.xlu1 %481 }
 0xc1b   :  { %v484_v45 = vmul.f32 %v777_v43, %v482_v44 }
 0xc1d   :  { %486 = vrot.lane.b32.xlu0 %v484_v45, %s791_s15 }
 0xc8f   :  { %v487_v47 = vpop.permute.xlu0 %486 }
 0xc90   :  { %v489_v48 = vadd.f32 %v487_v47, %v479_v46 }
 0xc92   :  { %778 = vtanh.f32 %v489_v48 }
 0xc9f   :  { %v779_v50 = vpop.eup %778 }
 0xca0   :  { %492 = vrot.lane.b32.xlu1 %v779_v50, %s790_s14 }
 0xd12   :  { %v493_v51 = vpop.permute.xlu1 %492 }
 0xd13   :  { %v495_v52 = vmul.f32 %v777_v43, %v493_v51 }
 0xd15   :  { %v496_v53 = vpack.c.bf16 %v495_v52, %v495_v52 }
 0xd17   :  { %520 = vrot.lane.b32.xlu0 %v496_v53, %s791_s15  ;;  %v504_v18 = vrot.slane %v496_v53, %v127_v11 }
 0xd19   :  { %v511_v1 = vrot.slane %v504_v18, %v127_v11 }
 0xd89   :  { %v521_v54 = vpop.permute.xlu0 %520 }
 0xd8a   :  { %728 = vmatmul.mubr.msk.bf16.vlgmr.msra.gmra.mxu1 %vm40_vm2, %v521_v54 }
 0xe4a   :  { %v559_v57 = vpop.f32.mrf.mxu1 }
 0xe4b   :  { %v565_v58 = vadd.f32 %v559_v57, %v519_v56 }
 0xe4c   :  { %v729_v59 = vpop.f32.mrf.mxu1 }
 0xe4d   :  { %780 = vtanh.f32 %v565_v58  ;;  %v663_v63 = vmul.f32 -1.442695, %v565_v58 }
 0xe4e   :  { %v562_v60 = vpop.f32.mrf.mxu1 }
 0xe4f   :  { %782 = vpow2.f32 %v663_v63 }
 0xe50   :  { %v730_v61 = vpop.f32.mrf.mxu1 }
 0xe5a   :  { %v781_v62 = vpop.eup %780 }
 0xe5b   :  { %575 = vrot.lane.b32.xlu1 %v781_v62, %s790_s14 }
 0xe5c   :  { %v783_v3 = vpop.eup %782 }
 0xe5d   :  { %v569_v4 = vadd.f32 1.0, %v783_v3 }
 0xe5f   :  { %784 = vrcp.f32 %v569_v4 }
 0xe6c   :  { %v785_v12 = vpop.eup %784 }
 0xe6d   :  { %v573_v20 = vmul.f32 %v785_v12, %v489_v48 }
 0xecd   :  { %v576_v13 = vpop.permute.xlu1 %575 }
 0xece   :  { %v578_v15 = vmul.f32 %v785_v12, %v576_v13 }
 0xed0   :  { %580 = vrot.lane.b32.xlu0 %v578_v15, %s791_s15 }
 0xed4   :  { %136 = vrot.lane.b32.xlu0 %v135_v17, %s791_s15 }
 0xed8   :  { %324 = vrot.lane.b32.xlu0 %v323_v19, %s791_s15 }
 0xedc   :  { %512 = vrot.lane.b32.xlu0 %v511_v1, %s791_s15 }
 0xf42   :  { %v581_v0 = vpop.permute.xlu0 %580 }
 0xf43   :  { %v583_v2 = vadd.f32 %v581_v0, %v573_v20 }
 0xf45   :  { %786 = vtanh.f32 %v583_v2  ;;  %v631_v39 = vrot.slane %v583_v2, %v617_v33 }
 0xf46   :  { %v137_v27 = vpop.permute.xlu0 %136 }
 0xf47   :  { %140 = vst.msk [vmem:[%s959_s2] sm:$0x1] %vm139_vm3, %v137_v27 }
 0xf4a   :  { %v325_v10 = vpop.permute.xlu0 %324 }
 0xf4b   :  { %652 = vst.msk [vmem:[%s959_s2 + $0x2] sm:$0x1] %vm139_vm3, %v325_v10 }
 0xf4e   :  { %v513_v21 = vpop.permute.xlu0 %512 }
 0xf4f   :  { %660 = vst.msk [vmem:[%s959_s2 + $0x4] sm:$0x1] %vm139_vm3, %v513_v21 }
 0xf52   :  { %v787_v23 = vpop.eup %786 }
 0xf53   :  { %586 = vrot.lane.b32.xlu1 %v787_v23, %s790_s14 }
 0xf57   :  { %230 = vrot.lane.b32.xlu1 %v229_v25, %s791_s15 }
 0xf5b   :  { %418 = vrot.lane.b32.xlu1 %v417_v26, %s791_s15 }
 0xfc5   :  { %v587_v32 = vpop.permute.xlu1 %586 }
 0xfc6   :  { %v589_v34 = vmul.f32 %v785_v12, %v587_v32 }
 0xfc8   :  { %v590_v35 = vpack.c.bf16 %v589_v34, %v589_v34  ;;  %v618_v36 = vrot.slane %v589_v34, %v617_v33 }
 0xfc9   :  { %v231_v49 = vpop.permute.xlu1 %230 }
 0xfca   :  { %v598_v37 = vrot.slane %v590_v35, %v127_v11  ;;  %648 = vst.msk [vmem:[%s959_s2 + $0x1] sm:$0x1] %vm139_vm3, %v231_v49  ;;  %619 = vrot.lane.b32.xlu0 %v618_v36, %s791_s15 }
 0xfcc   :  { %v605_v30 = vrot.slane %v598_v37, %v127_v11 }
 0xfcd   :  { %v419_v38 = vpop.permute.xlu1 %418 }
 0xfce   :  { %656 = vst.msk [vmem:[%s959_s2 + $0x3] sm:$0x1] %vm139_vm3, %v419_v38  ;;  %606 = vrot.lane.b32.xlu1 %v605_v30, %s791_s15 }
 0xfd2   :  { %632 = vrot.lane.b32.xlu1 %v631_v39, %s794_s7 }
0x103c   :  { %v620_v40 = vpop.permute.xlu0 %619 }
0x103d   :  { %623 = vst.msk [vmem:[#allocation2] sm:$0x3] %vm16_vm0, %v620_v40 }
0x1040   :  { %v607_v41 = vpop.permute.xlu1 %606 }
0x1041   :  { %664 = vst.msk [vmem:[%s959_s2 + $0x5] sm:$0x1] %vm139_vm3, %v607_v41 }
0x1044   :  { %v633_v42 = vpop.permute.xlu1 %632 }
0x1045   :  { %635 = vst.msk [vmem:[#allocation3] sm:$0x3] %vm16_vm0, %v633_v42 }

// kernel: gnmt16_forward.64
= control target key start
LH: loop header
LB: loop body
LE: loop exit
PB: predicated region body
PF: predicated region fallthrough
CT: control target
= control target key end

     0   :  { %vm19_vm0 = vcmask 254976   ;;  %v874_v0 = vmov 0.0   ;;  %vm875_vm1 = vmmov 0   ;;  %vm43_vm2 = vcmask 261120   ;;  %s876_s17 = smov 64   ;;  %s877_s18 = smov 32   ;;  %s1079_s2 = inlined_call_operand.vmem [shape: bf16[32,128], index: 2, kind: input, shape index: {}]   ;;  %s1080_s0 = inlined_call_operand.vmem [shape: bf16[6,2,128], index: 0, kind: input, shape index: {}]   ;;  %s1081_s1 = inlined_call_operand.vmem [shape: bf16[6,2,32], index: 1, kind: input, shape index: {}]   ;;  %s1082_s3 = inlined_call_operand.vmem [shape: bf16[6,2,32], index: 3, kind: output, shape index: {}]  }
   0x1   :  { %748 = vmatprep.subr.bf16.mxu0 %v874_v0  ;;  %v905_v1 = vld [vmem:[%s1079_s2 + $0x8] sm:$0xff]   ;;  %752 = vmatprep.mubr.msk.bf16.mxu0 %vm875_vm1, %v874_v0  ;;  %20 = vst.msk [vmem:[#allocation2] sm:$0x3] %vm19_vm0, %v874_v0  ;;  %21 = vst.msk [vmem:[#allocation3] sm:$0x3] %vm19_vm0, %v874_v0  ;;  %v920_v2 = vld [vmem:[%s1079_s2] sm:$0xff]  }
   0x2   :  { %756 = vmatprep.subr.bf16.mxu1 %v874_v0  ;;  %760 = vmatprep.mubr.msk.bf16.mxu1 %vm875_vm1, %v874_v0  ;;  %v28_v5 = vld [vmem:[%s1080_s0] sm:$0x1]  ;;  %v705_v29 = vld [vmem:[%s1080_s0 + $0x1] sm:$0x1]  ;;  %v710_v51 = vld [vmem:[%s1080_s0 + $0x2] sm:$0x1] }
   0x3   :  { %749 = vmatpush3.bf16.msra.mxu0 %v905_v1  ;;  %757 = vmatpush3.bf16.msra.mxu1 %v905_v1  ;;  %v29_v6 = vunpack.c.l.bf16 %v28_v5  ;;  %v153_v30 = vunpack.c.l.bf16 %v705_v29  ;;  %v257_v52 = vunpack.c.l.bf16 %v710_v51  ;;  %s878_s9 = smov 96   ;;  %vm149_vm3 = vcmask 253952  }
   0x4   :  { %750 = vmatprep.subr.bf16.mxu0 %v874_v0  ;;  %758 = vmatprep.subr.bf16.mxu1 %v874_v0 }
   0x7   :  { %751 = vmatpush3.bf16.msra.mxu0 %v920_v2  ;;  %759 = vmatpush3.bf16.msra.mxu1 %v920_v2 }
   0x8   :  { %v26_v3 = vld [vmem:[#allocation2] sm:$0x3]  ;;  %764 = vmatprep.subr.bf16.mxu0 %v874_v0  ;;  %772 = vmatprep.subr.bf16.mxu1 %v874_v0  ;;  %v704_v13 = vld.sshfl [vmem:[#allocation3] sm:$0x3 pattern:$0x76325410] }
   0x9   :  { %v30_v4 = vpack.c.bf16 %v26_v3, %v26_v3 }
   0xb   :  { %753 = vmatmul.mubr.msk.bf16.vlgmr.msra.gmra.mxu0 %vm43_vm2, %v30_v4 }
   0xc   :  { %765 = vmatpush3.bf16.msra.mxu0 %v905_v1  ;;  %768 = vmatprep.mubr.msk.bf16.mxu0 %vm875_vm1, %v874_v0 }
   0xd   :  { %766 = vmatprep.subr.bf16.mxu0 %v874_v0 }
  0x10   :  { %767 = vmatpush3.bf16.msra.mxu0 %v920_v2 }
  0x11   :  { %780 = vmatprep.subr.bf16.mxu0 %v874_v0 }
  0xcb   :  { %v81_v7 = vpop.f32.mrf.mxu0 }
  0xcc   :  { %v87_v8 = vadd.f32 %v81_v7, %v29_v6 }
  0xcd   :  { %v754_v9 = vpop.f32.mrf.mxu0 }
  0xce   :  { %820 = vtanh.f32 %v87_v8  ;;  %v703_v14 = vmul.f32 -1.442695, %v87_v8 }
  0xcf   :  { %v84_v10 = vpop.f32.mrf.mxu0 }
  0xd0   :  { %822 = vpow2.f32 %v703_v14 }
  0xd1   :  { %v755_v11 = vpop.f32.mrf.mxu0 }
  0xdb   :  { %v821_v12 = vpop.eup %820 }
  0xdc   :  { %108 = vrot.lane.b32.xlu0 %v821_v12, %s876_s17  ;;  %v715_v12 = vld [vmem:[%s1080_s0 + $0x3] sm:$0x1] }
  0xdd   :  { %v823_v15 = vpop.eup %822 }
  0xde   :  { %v91_v16 = vadd.f32 1.0, %v823_v15 }
  0xe0   :  { %103 = vrot.lane.b32.xlu0 %v704_v13, %s877_s18  ;;  %824 = vrcp.f32 %v91_v16  ;;  %v361_v13 = vunpack.c.l.bf16 %v715_v12  ;;  %v723_v12 = vld [vmem:[%s1081_s1 + $0x4] sm:$0x1] }
  0xed   :  { %v825_v17 = vpop.eup %824 }
 0x14e   :  { %v109_v18 = vpop.permute.xlu0 %108 }
 0x14f   :  { %v111_v19 = vmul.f32 %v825_v17, %v109_v18 }
 0x151   :  { %113 = vrot.lane.b32.xlu1 %v111_v19, %s877_s18 }
 0x152   :  { %v104_v20 = vpop.permute.xlu0 %103 }
 0x153   :  { %v106_v21 = vmul.f32 %v825_v17, %v104_v20 }
 0x1c3   :  { %v114_v22 = vpop.permute.xlu1 %113 }
 0x1c4   :  { %v116_v23 = vadd.f32 %v114_v22, %v106_v21 }
 0x1c6   :  { %826 = vtanh.f32 %v116_v23 }
 0x1d3   :  { %v827_v24 = vpop.eup %826 }
 0x1d4   :  { %119 = vrot.lane.b32.xlu1 %v827_v24, %s876_s17 }
 0x246   :  { %v120_v25 = vpop.permute.xlu1 %119 }
 0x247   :  { %v943_v26 = vmul.f32 %v825_v17, %v120_v25 }
 0x249   :  { %v154_v27 = vpack.c.bf16 %v943_v26, %v943_v26 }
 0x24b   :  { %156 = vrot.lane.b32.xlu0 %v154_v27, %s877_s18 }
 0x2bd   :  { %v157_v28 = vpop.permute.xlu0 %156 }
 0x2be   :  { %761 = vmatmul.mubr.msk.bf16.vlgmr.msra.gmra.mxu1 %vm43_vm2, %v157_v28 }
 0x2bf   :  { %773 = vmatpush3.bf16.msra.mxu1 %v905_v1  ;;  %776 = vmatprep.mubr.msk.bf16.mxu1 %vm875_vm1, %v874_v0 }
 0x2c0   :  { %774 = vmatprep.subr.bf16.mxu1 %v874_v0 }
 0x2c3   :  { %775 = vmatpush3.bf16.msra.mxu1 %v920_v2 }
 0x2c4   :  { %788 = vmatprep.subr.bf16.mxu1 %v874_v0 }
 0x37e   :  { %v195_v31 = vpop.f32.mrf.mxu1 }
 0x37f   :  { %v201_v32 = vadd.f32 %v195_v31, %v153_v30 }
 0x380   :  { %v762_v33 = vpop.f32.mrf.mxu1 }
 0x381   :  { %828 = vtanh.f32 %v201_v32  ;;  %v707_v37 = vmul.f32 -1.442695, %v201_v32  ;;  %v720_v32 = vld [vmem:[%s1080_s0 + $0x4] sm:$0x1] }
 0x382   :  { %v198_v34 = vpop.f32.mrf.mxu1  ;;  %v465_v33 = vunpack.c.l.bf16 %v720_v32 }
 0x383   :  { %830 = vpow2.f32 %v707_v37 }
 0x384   :  { %v763_v35 = vpop.f32.mrf.mxu1 }
 0x38e   :  { %v829_v36 = vpop.eup %828 }
 0x38f   :  { %211 = vrot.lane.b32.xlu1 %v829_v36, %s876_s17 }
 0x390   :  { %v831_v38 = vpop.eup %830 }
 0x391   :  { %v205_v39 = vadd.f32 1.0, %v831_v38 }
 0x393   :  { %832 = vrcp.f32 %v205_v39 }
 0x3a0   :  { %v833_v40 = vpop.eup %832 }
 0x3a1   :  { %v209_v43 = vmul.f32 %v833_v40, %v116_v23 }
 0x401   :  { %v212_v41 = vpop.permute.xlu1 %211 }
 0x402   :  { %v214_v42 = vmul.f32 %v833_v40, %v212_v41 }
 0x404   :  { %216 = vrot.lane.b32.xlu0 %v214_v42, %s877_s18 }
 0x476   :  { %v217_v44 = vpop.permute.xlu0 %216 }
 0x477   :  { %v219_v45 = vadd.f32 %v217_v44, %v209_v43 }
 0x479   :  { %834 = vtanh.f32 %v219_v45 }
 0x486   :  { %v835_v46 = vpop.eup %834 }
 0x487   :  { %222 = vrot.lane.b32.xlu1 %v835_v46, %s876_s17 }
 0x4f9   :  { %v223_v47 = vpop.permute.xlu1 %222 }
 0x4fa   :  { %v961_v48 = vmul.f32 %v833_v40, %v223_v47 }
 0x4fc   :  { %v258_v49 = vpack.c.bf16 %v961_v48, %v961_v48 }
 0x4fe   :  { %260 = vrot.lane.b32.xlu0 %v258_v49, %s877_s18 }
 0x570   :  { %v261_v50 = vpop.permute.xlu0 %260 }
 0x571   :  { %769 = vmatmul.mubr.msk.bf16.vlgmr.msra.gmra.mxu0 %vm43_vm2, %v261_v50 }
 0x572   :  { %781 = vmatpush3.bf16.msra.mxu0 %v905_v1  ;;  %784 = vmatprep.mubr.msk.bf16.mxu0 %vm875_vm1, %v874_v0 }
 0x573   :  { %782 = vmatprep.subr.bf16.mxu0 %v874_v0 }
 0x576   :  { %783 = vmatpush3.bf16.msra.mxu0 %v920_v2 }
 0x631   :  { %v299_v53 = vpop.f32.mrf.mxu0 }
 0x632   :  { %v305_v54 = vadd.f32 %v299_v53, %v257_v52 }
 0x633   :  { %v770_v55 = vpop.f32.mrf.mxu0 }
 0x634   :  { %836 = vtanh.f32 %v305_v54  ;;  %v712_v59 = vmul.f32 -1.442695, %v305_v54  ;;  %v725_v55 = vld [vmem:[%s1080_s0 + $0x5] sm:$0x1] }
 0x635   :  { %v302_v56 = vpop.f32.mrf.mxu0 }
 0x636   :  { %838 = vpow2.f32 %v712_v59  ;;  %v569_v56 = vunpack.c.l.bf16 %v725_v55 }
 0x637   :  { %v771_v57 = vpop.f32.mrf.mxu0 }
 0x641   :  { %v837_v58 = vpop.eup %836 }
 0x642   :  { %315 = vrot.lane.b32.xlu1 %v837_v58, %s876_s17 }
 0x643   :  { %v839_v60 = vpop.eup %838 }
 0x644   :  { %v309_v61 = vadd.f32 1.0, %v839_v60 }
 0x646   :  { %840 = vrcp.f32 %v309_v61 }
 0x653   :  { %v841_v62 = vpop.eup %840 }
 0x654   :  { %v313_v4 = vmul.f32 %v841_v62, %v219_v45 }
 0x6b4   :  { %v316_v63 = vpop.permute.xlu1 %315 }
 0x6b5   :  { %v318_v3 = vmul.f32 %v841_v62, %v316_v63 }
 0x6b7   :  { %320 = vrot.lane.b32.xlu0 %v318_v3, %s877_s18 }
 0x729   :  { %v321_v5 = vpop.permute.xlu0 %320 }
 0x72a   :  { %v323_v6 = vadd.f32 %v321_v5, %v313_v4  ;;  %v123_v5 = vld [vmem:[%s1081_s1] sm:$0x1] }
 0x72c   :  { %842 = vtanh.f32 %v323_v6 }
 0x739   :  { %v843_v7 = vpop.eup %842 }
 0x73a   :  { %326 = vrot.lane.b32.xlu1 %v843_v7, %s876_s17  ;;  %v124_v7 = vunpack.c.l.bf16 %v123_v5 }
 0x7ac   :  { %v327_v8 = vpop.permute.xlu1 %326 }
 0x7ad   :  { %v978_v9 = vmul.f32 %v841_v62, %v327_v8 }
 0x7af   :  { %v362_v10 = vpack.c.bf16 %v978_v9, %v978_v9 }
 0x7b1   :  { %364 = vrot.lane.b32.xlu0 %v362_v10, %s877_s18 }
 0x823   :  { %v365_v11 = vpop.permute.xlu0 %364 }
 0x824   :  { %777 = vmatmul.mubr.msk.bf16.vlgmr.msra.gmra.mxu1 %vm43_vm2, %v365_v11 }
 0x825   :  { %789 = vmatpush3.bf16.msra.mxu1 %v905_v1  ;;  %792 = vmatprep.mubr.msk.bf16.mxu1 %vm875_vm1, %v874_v0 }
 0x826   :  { %790 = vmatprep.subr.bf16.mxu1 %v874_v0 }
 0x829   :  { %791 = vmatpush3.bf16.msra.mxu1 %v920_v2 }
 0x8e4   :  { %v403_v14 = vpop.f32.mrf.mxu1 }
 0x8e5   :  { %v409_v15 = vadd.f32 %v403_v14, %v361_v13  ;;  %v728_v13 = vld [vmem:[%s1081_s1 + $0x5] sm:$0x1] }
 0x8e6   :  { %v778_v16 = vpop.f32.mrf.mxu1 }
 0x8e7   :  { %844 = vtanh.f32 %v409_v15  ;;  %v717_v1 = vmul.f32 -1.442695, %v409_v15  ;;  %v540_v16 = vunpack.c.l.bf16 %v723_v12 }
 0x8e8   :  { %v406_v17 = vpop.f32.mrf.mxu1 }
 0x8e9   :  { %846 = vpow2.f32 %v717_v1  ;;  %v644_v17 = vunpack.c.l.bf16 %v728_v13  ;;  %v879_v1 = vmov 1983009808  }
 0x8ea   :  { %v779_v18 = vpop.f32.mrf.mxu1 }
 0x8eb   :  { %v813_v18 = vpack.i.bf16 %v644_v17, %v540_v16 }
 0x8f4   :  { %v845_v19 = vpop.eup %844 }
 0x8f5   :  { %419 = vrot.lane.b32.xlu1 %v845_v19, %s876_s17  ;;  %v135_v19 = vlaneseq }
 0x8f6   :  { %v847_v20 = vpop.eup %846 }
 0x8f7   :  { %v413_v0 = vadd.f32 1.0, %v847_v20  ;;  %v673_v20 = vunpack.c.l.s4 %v879_v1 }
 0x8f9   :  { %848 = vrcp.f32 %v413_v0  ;;  %v136_v0 = vshrl.u32 %v135_v19, 7 }
 0x906   :  { %v849_v2 = vpop.eup %848 }
 0x907   :  { %v417_v23 = vmul.f32 %v849_v2, %v323_v6  ;;  %v708_v6 = vld [vmem:[%s1081_s1 + $0x1] sm:$0x1] }
 0x908   :  { %v228_v8 = vunpack.c.l.bf16 %v708_v6 }
 0x90a   :  { %v803_v15 = vpack.i.bf16 %v228_v8, %v124_v7 }
 0x967   :  { %v420_v21 = vpop.permute.xlu1 %419 }
 0x968   :  { %v422_v22 = vmul.f32 %v849_v2, %v420_v21  ;;  %v880_v21 = vmov 1966171168  }
 0x96a   :  { %424 = vrot.lane.b32.xlu0 %v422_v22, %s877_s18  ;;  %v133_v22 = vunpack.c.l.s4 %v880_v21 }
 0x9dc   :  { %v425_v24 = vpop.permute.xlu0 %424 }
 0x9dd   :  { %v427_v25 = vadd.f32 %v425_v24, %v417_v23 }
 0x9df   :  { %850 = vtanh.f32 %v427_v25 }
 0x9ec   :  { %v851_v27 = vpop.eup %850 }
 0x9ed   :  { %430 = vrot.lane.b32.xlu1 %v851_v27, %s876_s17 }
 0xa5f   :  { %v431_v28 = vpop.permute.xlu1 %430 }
 0xa60   :  { %v995_v29 = vmul.f32 %v849_v2, %v431_v28  ;;  %v674_v2 = vunpack.c.0.s8 %v673_v20  ;;  %v134_v28 = vunpack.c.0.s8 %v133_v22 }
 0xa62   :  { %v466_v30 = vpack.c.bf16 %v995_v29, %v995_v29  ;;  %v677_v23 = vsub.s32 %v674_v2, %v136_v0  ;;  %v137_v32 = vsub.s32 %v134_v28, %v136_v0 }
 0xa64   :  { %468 = vrot.lane.b32.xlu0 %v466_v30, %s877_s18 }
 0xad6   :  { %v469_v31 = vpop.permute.xlu0 %468 }
 0xad7   :  { %785 = vmatmul.mubr.msk.bf16.vlgmr.msra.gmra.mxu0 %vm43_vm2, %v469_v31 }
 0xb97   :  { %v507_v34 = vpop.f32.mrf.mxu0 }
 0xb98   :  { %v513_v35 = vadd.f32 %v507_v34, %v465_v33 }
 0xb99   :  { %v786_v36 = vpop.f32.mrf.mxu0 }
 0xb9a   :  { %852 = vtanh.f32 %v513_v35  ;;  %v722_v40 = vmul.f32 -1.442695, %v513_v35  ;;  %v713_v35 = vld [vmem:[%s1081_s1 + $0x2] sm:$0x1]  ;;  %v718_v36 = vld [vmem:[%s1081_s1 + $0x3] sm:$0x1] }
 0xb9b   :  { %v510_v37 = vpop.f32.mrf.mxu0 }
 0xb9c   :  { %854 = vpow2.f32 %v722_v40  ;;  %v332_v40 = vunpack.c.l.bf16 %v713_v35 }
 0xb9d   :  { %v787_v38 = vpop.f32.mrf.mxu0 }
 0xba7   :  { %v853_v39 = vpop.eup %852 }
 0xba8   :  { %523 = vrot.lane.b32.xlu1 %v853_v39, %s876_s17 }
 0xba9   :  { %v855_v41 = vpop.eup %854 }
 0xbaa   :  { %v517_v42 = vadd.f32 1.0, %v855_v41  ;;  %v436_v41 = vunpack.c.l.bf16 %v718_v36 }
 0xbac   :  { %856 = vrcp.f32 %v517_v42 }
 0xbb9   :  { %v857_v43 = vpop.eup %856 }
 0xbba   :  { %v521_v46 = vmul.f32 %v857_v43, %v427_v25 }
 0xc1a   :  { %v524_v44 = vpop.permute.xlu1 %523 }
 0xc1b   :  { %v526_v45 = vmul.f32 %v857_v43, %v524_v44 }
 0xc1d   :  { %528 = vrot.lane.b32.xlu0 %v526_v45, %s877_s18 }
 0xc8f   :  { %v529_v47 = vpop.permute.xlu0 %528 }
 0xc90   :  { %v531_v49 = vadd.f32 %v529_v47, %v521_v46 }
 0xc92   :  { %858 = vtanh.f32 %v531_v49 }
 0xc9f   :  { %v859_v50 = vpop.eup %858 }
 0xca0   :  { %534 = vrot.lane.b32.xlu1 %v859_v50, %s876_s17 }
 0xd12   :  { %v535_v51 = vpop.permute.xlu1 %534 }
 0xd13   :  { %v1007_v52 = vmul.f32 %v857_v43, %v535_v51 }
 0xd15   :  { %v570_v53 = vpack.c.bf16 %v1007_v52, %v1007_v52 }
 0xd17   :  { %572 = vrot.lane.b32.xlu0 %v570_v53, %s877_s18 }
 0xd89   :  { %v573_v54 = vpop.permute.xlu0 %572 }
 0xd8a   :  { %793 = vmatmul.mubr.msk.bf16.vlgmr.msra.gmra.mxu1 %vm43_vm2, %v573_v54 }
 0xe4a   :  { %v611_v57 = vpop.f32.mrf.mxu1 }
 0xe4b   :  { %v617_v58 = vadd.f32 %v611_v57, %v569_v56 }
 0xe4c   :  { %v794_v59 = vpop.f32.mrf.mxu1 }
 0xe4d   :  { %860 = vtanh.f32 %v617_v58  ;;  %v727_v63 = vmul.f32 -1.442695, %v617_v58 }
 0xe4e   :  { %v614_v60 = vpop.f32.mrf.mxu1 }
 0xe4f   :  { %862 = vpow2.f32 %v727_v63 }
 0xe50   :  { %v795_v61 = vpop.f32.mrf.mxu1 }
 0xe5a   :  { %v861_v62 = vpop.eup %860 }
 0xe5b   :  { %627 = vrot.lane.b32.xlu1 %v861_v62, %s876_s17 }
 0xe5c   :  { %v863_v3 = vpop.eup %862 }
 0xe5d   :  { %v621_v4 = vadd.f32 1.0, %v863_v3 }
 0xe5f   :  { %864 = vrcp.f32 %v621_v4 }
 0xe6c   :  { %v865_v10 = vpop.eup %864 }
 0xe6d   :  { %v625_v24 = vmul.f32 %v865_v10, %v531_v49 }
 0xecd   :  { %v628_v11 = vpop.permute.xlu1 %627 }
 0xece   :  { %v630_v14 = vmul.f32 %v865_v10, %v628_v11 }
 0xed0   :  { %632 = vrot.lane.b32.xlu0 %v630_v14, %s877_s18 }
 0xed4   :  { %804 = vrot.lane.b32.xlu0 %v803_v15, %s878_s9 }
 0xed8   :  { %814 = vrot.lane.b32.xlu0 %v813_v18, %s878_s9 }
 0xf42   :  { %v633_v25 = vpop.permute.xlu0 %632 }
 0xf43   :  { %v635_v27 = vadd.f32 %v633_v25, %v625_v24 }
 0xf45   :  { %866 = vtanh.f32 %v635_v27  ;;  %v691_v30 = vrot.slane %v635_v27, %v677_v23 }
 0xf46   :  { %v805_v31 = vpop.permute.xlu0 %804 }
 0xf47   :  { %v868_v33 = vadd.high.f32.bf16 %v961_v48, %v805_v31  ;;  %v869_v37 = vadd.low.f32.bf16 %v943_v26, %v805_v31  ;;  %v808_v48 = vpack.i.bf16 %v436_v41, %v332_v40 }
 0xf49   :  { %v234_v34 = vpack.c.bf16 %v868_v33, %v868_v33  ;;  %v130_v42 = vpack.c.bf16 %v869_v37, %v869_v37 }
 0xf4a   :  { %v815_v46 = vpop.permute.xlu0 %814 }
 0xf4b   :  { %v242_v38 = vrot.slane %v234_v34, %v137_v32  ;;  %v138_v44 = vrot.slane %v130_v42, %v137_v32  ;;  %v870_v51 = vadd.low.f32.bf16 %v1007_v52, %v815_v46 }
 0xf4d   :  { %v249_v39 = vrot.slane %v242_v38, %v137_v32  ;;  %v145_v45 = vrot.slane %v138_v44, %v137_v32  ;;  %v546_v57 = vpack.c.bf16 %v870_v51, %v870_v51 }
 0xf4f   :  { %250 = vrot.lane.b32.xlu0 %v249_v39, %s877_s18  ;;  %v554_v4 = vrot.slane %v546_v57, %v137_v32 }
 0xf52   :  { %v867_v43 = vpop.eup %866 }
 0xf53   :  { %638 = vrot.lane.b32.xlu1 %v867_v43, %s876_s17 }
 0xf57   :  { %809 = vrot.lane.b32.xlu1 %v808_v48, %s878_s9 }
 0xf5b   :  { %146 = vrot.lane.b32.xlu1 %v145_v45, %s877_s18 }
 0xfc1   :  { %v251_v26 = vpop.permute.xlu0 %250 }
 0xfc2   :  { %709 = vst.msk [vmem:[%s1082_s3 + $0x1] sm:$0x1] %vm149_vm3, %v251_v26 }
 0xfc5   :  { %v639_v47 = vpop.permute.xlu1 %638 }
 0xfc6   :  { %v641_v49 = vmul.f32 %v865_v10, %v639_v47 }
 0xfc8   :  { %v871_v53 = vadd.high.f32.bf16 %v641_v49, %v815_v46  ;;  %v678_v5 = vrot.slane %v641_v49, %v677_v23 }
 0xfc9   :  { %v810_v50 = vpop.permute.xlu1 %809 }
 0xfca   :  { %v872_v54 = vadd.high.f32.bf16 %v995_v29, %v810_v50  ;;  %v873_v55 = vadd.low.f32.bf16 %v978_v9, %v810_v50  ;;  %v650_v58 = vpack.c.bf16 %v871_v53, %v871_v53  ;;  %v561_v29 = vrot.slane %v554_v4, %v137_v32 }
 0xfcc   :  { %v442_v59 = vpack.c.bf16 %v872_v54, %v872_v54  ;;  %v338_v60 = vpack.c.bf16 %v873_v55, %v873_v55  ;;  %v658_v63 = vrot.slane %v650_v58, %v137_v32 }
 0xfcd   :  { %v147_v56 = vpop.permute.xlu1 %146 }
 0xfce   :  { %150 = vst.msk [vmem:[%s1082_s3] sm:$0x1] %vm149_vm3, %v147_v56  ;;  %v450_v61 = vrot.slane %v442_v59, %v137_v32  ;;  %v346_v62 = vrot.slane %v338_v60, %v137_v32  ;;  %v665_v9 = vrot.slane %v658_v63, %v137_v32 }
 0xfd0   :  { %v457_v3 = vrot.slane %v450_v61, %v137_v32  ;;  %v353_v52 = vrot.slane %v346_v62, %v137_v32 }
 0xfd2   :  { %458 = vrot.lane.b32.xlu0 %v457_v3, %s877_s18  ;;  %354 = vrot.lane.b32.xlu1 %v353_v52, %s877_s18 }
 0xfd6   :  { %666 = vrot.lane.b32.xlu0 %v665_v9, %s877_s18  ;;  %562 = vrot.lane.b32.xlu1 %v561_v29, %s877_s18 }
 0xfda   :  { %692 = vrot.lane.b32.xlu0 %v691_v30, %s878_s9  ;;  %679 = vrot.lane.b32.xlu1 %v678_v5, %s877_s18 }
0x1044   :  { %v459_v6 = vpop.permute.xlu0 %458  ;;  %v355_v7 = vpop.permute.xlu1 %354 }
0x1045   :  { %719 = vst.msk [vmem:[%s1082_s3 + $0x3] sm:$0x1] %vm149_vm3, %v459_v6  ;;  %714 = vst.msk [vmem:[%s1082_s3 + $0x2] sm:$0x1] %vm149_vm3, %v355_v7 }
0x1048   :  { %v667_v8 = vpop.permute.xlu0 %666  ;;  %v563_v10 = vpop.permute.xlu1 %562 }
0x1049   :  { %729 = vst.msk [vmem:[%s1082_s3 + $0x5] sm:$0x1] %vm149_vm3, %v667_v8  ;;  %724 = vst.msk [vmem:[%s1082_s3 + $0x4] sm:$0x1] %vm149_vm3, %v563_v10 }
0x104c   :  { %v693_v11 = vpop.permute.xlu0 %692  ;;  %v680_v12 = vpop.permute.xlu1 %679 }
0x104d   :  { %695 = vst.msk [vmem:[#allocation3] sm:$0x3] %vm19_vm0, %v693_v11  ;;  %683 = vst.msk [vmem:[#allocation2] sm:$0x3] %vm19_vm0, %v680_v12 }

</bundles_post_ra>
